<compile_context>
chip_gen: v5e
topology: v5e:2x2
jax: 0.10.0
libtpu: 0.0.40
codegen_flags: <defaults>
</compile_context>

<pallas_src>
import functools
import math

import jax
import jax.numpy as jnp
from jax.experimental import pallas as pl
from jax.experimental.pallas import tpu as pltpu

# ----------------------------- model config (small) -------------------------
IMG_SIZE = 16
PATCH = 8
CHANNELS = 3
D_V = 32          # vision hidden
HEADS_V = 4
MLP_V = 64
LAYERS_V = 2

VOCAB = 64
SEQ_T = 8         # text tokens per label (power of two)
D_T = 32          # text hidden
HEADS_T = 4
MLP_T = 64
LAYERS_T = 2

PROJ = 32         # shared projection dim
LOGIT_SCALE_INIT = math.log(1.0 / 0.07)
NEG_INF = -1e9

N_PATCH = (IMG_SIZE // PATCH) ** 2   # 4 patches per image
T_V = N_PATCH + 1                    # CLS + patches = 5 tokens per image
T_V_PAD = 8                          # per-image rows padded to one 8-sublane block

LAYER_PARAMS = ("ln1_g", "ln1_b", "w_qkv", "b_qkv", "w_o", "b_o",
                "ln2_g", "ln2_b", "w_fc1", "b_fc1", "w_fc2", "b_fc2")


# ----------------------------- in-kernel helpers -----------------------------
def _ln(x, g, b, eps=1e-5):
    mu = jnp.mean(x, axis=-1, keepdims=True)
    xc = x - mu
    var = jnp.mean(xc * xc, axis=-1, keepdims=True)
    return xc * jax.lax.rsqrt(var + eps) * g + b


def _softmax_rows(s):
    s = s - jnp.max(s, axis=-1, keepdims=True)
    p = jnp.exp(s)
    return p * pl.reciprocal(jnp.sum(p, axis=-1, keepdims=True), approx=True)


def _encoder_stack(x, mask, layer_refs, *, n_layers, n_heads):
    """Statically-unrolled pre-LN transformer encoder over a [BT, D] slab."""
    (ln1_g, ln1_b, w_qkv, b_qkv, w_o, b_o,
     ln2_g, ln2_b, w_fc1, b_fc1, w_fc2, b_fc2) = layer_refs
    bt, d = x.shape
    dh = d // n_heads
    scale = 1.0 / math.sqrt(dh)
    for l in range(n_layers):                      # static unroll: no grid-step overhead
        h = _ln(x, ln1_g[l], ln1_b[l])
        qkv = jnp.dot(h, w_qkv[l], preferred_element_type=jnp.float32) + b_qkv[l]
        outs = []
        for hh in range(n_heads):                  # per-head 2-D matmuls on the whole slab
            q = qkv[:, hh * dh:(hh + 1) * dh]
            k = qkv[:, d + hh * dh:d + (hh + 1) * dh]
            v = qkv[:, 2 * d + hh * dh:2 * d + (hh + 1) * dh]
            s = jnp.dot(q, k.T, preferred_element_type=jnp.float32) * scale + mask
            outs.append(jnp.dot(_softmax_rows(s), v, preferred_element_type=jnp.float32))
        o_all = jnp.concatenate(outs, axis=-1)     # one deep output projection (1 MXU pass)
        x = x + jnp.dot(o_all, w_o[l], preferred_element_type=jnp.float32) + b_o[l]
        h2 = _ln(x, ln2_g[l], ln2_b[l])
        m = jnp.dot(h2, w_fc1[l], preferred_element_type=jnp.float32) + b_fc1[l]
        m = m * jax.nn.sigmoid(1.702 * m)          # quick_gelu
        x = x + jnp.dot(m, w_fc2[l], preferred_element_type=jnp.float32) + b_fc2[l]
    return x


# ----------------------------- fused forward kernel --------------------------
def _clip_forward_kernel(*refs, cfg):
    B, N, Tv, Tpad = cfg["B"], cfg["N"], cfg["Tv"], cfg["Tpad"]
    L, Tt = cfg["L"], cfg["Tt"]

    it = iter(refs)
    # vision inputs
    patch_ref = next(it); patch_w_ref = next(it); cls_ref = next(it); posv_ref = next(it)
    lnpre_g = next(it); lnpre_b = next(it)
    v_layers = tuple(next(it) for _ in range(12))
    lnpost_g = next(it); lnpost_b = next(it); v_proj_ref = next(it)
    # text inputs
    x0t_ref = next(it); keyvalid_ref = next(it)
    t_layers = tuple(next(it) for _ in range(12))
    lnfin_g = next(it); lnfin_b = next(it); t_proj_ref = next(it)
    # scalars
    eos_ref = next(it)       # SMEM int32 [L]: per-sequence EOS position
    scale_ref = next(it)     # VMEM f32 [1,1]: logit_scale
    # output / scratch
    probs_ref = next(it)
    xv_scr = next(it)        # VMEM f32 [B*Tpad, D_V]

    # ---------------- vision tower ----------------
    # patch "conv" == in-kernel matmul; rows written straight into the padded slab
    pe = jnp.dot(patch_ref[...], patch_w_ref[...], preferred_element_type=jnp.float32)
    xv_scr[...] = jnp.zeros(xv_scr.shape, jnp.float32)
    for b in range(B):
        base = b * Tpad
        xv_scr[base:base + 1, :] = cls_ref[...] + posv_ref[0:1, :]                  # CLS row
        xv_scr[base + 1:base + 1 + N, :] = pe[b * N:(b + 1) * N, :] + posv_ref[1:1 + N, :]
    xv = _ln(xv_scr[...], lnpre_g[...], lnpre_b[...])                               # pre-LN

    # per-image (block-diagonal) attention bias, built in-kernel from iota
    btv = B * Tpad
    shv = Tpad.bit_length() - 1
    ri = jax.lax.broadcasted_iota(jnp.int32, (btv, btv), 0)
    ci = jax.lax.broadcasted_iota(jnp.int32, (btv, btv), 1)
    same_img = (ri >> shv) == (ci >> shv)
    key_real = (ci & (Tpad - 1)) < Tv
    mask_v = jnp.where(same_img & key_real, 0.0, NEG_INF).astype(jnp.float32)

    xv = _encoder_stack(xv, mask_v, v_layers,
                        n_layers=cfg["layers_v"], n_heads=cfg["heads_v"])

    # CLS pooling: direct row reads (no one-hot matmul)
    pooled_v = jnp.concatenate([xv[b * Tpad:b * Tpad + 1, :] for b in range(B)], axis=0)
    img = jnp.dot(_ln(pooled_v, lnpost_g[...], lnpost_b[...]), v_proj_ref[...],
                  preferred_element_type=jnp.float32)                               # [B, PROJ]

    # ---------------- text tower ----------------
    xt = x0t_ref[...]
    btt = L * Tt
    sht = Tt.bit_length() - 1
    ri = jax.lax.broadcasted_iota(jnp.int32, (btt, btt), 0)
    ci = jax.lax.broadcasted_iota(jnp.int32, (btt, btt), 1)
    same_seq = (ri >> sht) == (ci >> sht)
    causal = (ri & (Tt - 1)) >= (ci & (Tt - 1))
    key_ok = keyvalid_ref[...] > 0.5                                                # [1, L*Tt]
    mask_t = jnp.where(same_seq & causal & key_ok, 0.0, NEG_INF).astype(jnp.float32)

    xt = _encoder_stack(xt, mask_t, t_layers,
                        n_layers=cfg["layers_t"], n_heads=cfg["heads_t"])

    # EOS pooling: iota-select against SMEM indices (no one-hot pool matmul)
    tio = jax.lax.broadcasted_iota(jnp.int32, (Tt, 1), 0)
    pooled_rows = []
    for l in range(L):
        seg = xt[l * Tt:(l + 1) * Tt, :]
        sel = tio == eos_ref[l]
        pooled_rows.append(jnp.sum(jnp.where(sel, seg, 0.0), axis=0, keepdims=True))
    pooled_t = jnp.concatenate(pooled_rows, axis=0)                                 # [L, D_T]
    txt = jnp.dot(_ln(pooled_t, lnfin_g[...], lnfin_b[...]), t_proj_ref[...],
                  preferred_element_type=jnp.float32)                               # [L, PROJ]

    # ---------------- contrastive head ----------------
    img = img * jax.lax.rsqrt(jnp.sum(img * img, axis=-1, keepdims=True) + 1e-12)
    txt = txt * jax.lax.rsqrt(jnp.sum(txt * txt, axis=-1, keepdims=True) + 1e-12)
    logits = jnp.dot(img, txt.T, preferred_element_type=jnp.float32) * jnp.exp(scale_ref[...])
    logits = logits - jnp.max(logits, axis=-1, keepdims=True)
    e = jnp.exp(logits)
    probs_ref[...] = e / jnp.sum(e, axis=-1, keepdims=True)     # exact: rows sum to 1


# ----------------------------- wrapper ---------------------------------------
def _approx_cost(inputs, B, L):
    btv, btt = B * T_V_PAD, L * SEQ_T
    flops = 2 * B * N_PATCH * (CHANNELS * PATCH * PATCH) * D_V
    flops += LAYERS_V * (2 * btv * D_V * 3 * D_V + 4 * btv * btv * D_V
                         + 2 * btv * D_V * D_V + 4 * btv * D_V * MLP_V)
    flops += LAYERS_T * (2 * btt * D_T * 3 * D_T + 4 * btt * btt * D_T
                         + 2 * btt * D_T * D_T + 4 * btt * D_T * MLP_T)
    flops += 2 * B * D_V * PROJ + 2 * L * D_T * PROJ + 2 * B * L * PROJ
    transcendentals = (LAYERS_V * HEADS_V * btv * btv + LAYERS_T * HEADS_T * btt * btt
                       + LAYERS_V * btv * MLP_V + LAYERS_T * btt * MLP_T + B * L)
    bytes_accessed = sum(int(a.size) * a.dtype.itemsize for a in inputs) + B * L * 4
    return pl.CostEstimate(flops=int(flops), transcendentals=int(transcendentals),
                           bytes_accessed=int(bytes_accessed))


def image_classifier_forward(params, pixel_values, input_ids, attention_mask):
    vp, tp = params["vision"], params["text"]
    B, C, H, W = pixel_values.shape
    hp, wp = H // PATCH, W // PATCH
    n = hp * wp
    L, T = input_ids.shape
    assert n == N_PATCH and T == SEQ_T

    # ---- wrapper glue: pure layout + tiny embedding gather (no kernel-worthy compute) ----
    patches = pixel_values.reshape(B, C, hp, PATCH, wp, PATCH)
    patches = patches.transpose(0, 2, 4, 1, 3, 5).reshape(B * n, C * PATCH * PATCH)
    patches = patches.astype(jnp.float32)
    # TODO(synk): real tokenizer; token-embedding gather kept in plain JAX (tiny).
    x0_t = (tp["tok_emb"][input_ids] + tp["pos_emb"][None, :T, :]).reshape(L * T, D_T)
    x0_t = x0_t.astype(jnp.float32)
    key_valid = attention_mask.reshape(1, L * T).astype(jnp.float32)
    eos_pos = (attention_mask.sum(axis=-1) - 1).astype(jnp.int32)      # per-sequence EOS pos

    vmem = pl.BlockSpec(memory_space=pltpu.MemorySpace.VMEM)
    smem = pl.BlockSpec(memory_space=pltpu.MemorySpace.SMEM)
    inputs, specs = [], []

    def add(a, spec=vmem):
        inputs.append(a)
        specs.append(spec)

    add(patches); add(vp["patch_w"]); add(vp["class_emb"]); add(vp["pos_emb"])
    add(vp["ln_pre_g"]); add(vp["ln_pre_b"])
    for name in LAYER_PARAMS:
        add(vp["layers"][name])
    add(vp["ln_post_g"]); add(vp["ln_post_b"]); add(vp["proj_w"])
    add(x0_t); add(key_valid)
    for name in LAYER_PARAMS:
        add(tp["layers"][name])
    add(tp["ln_final_g"]); add(tp["ln_final_b"]); add(tp["proj_w"])
    add(eos_pos, smem)
    add(params["logit_scale"])

    cfg = dict(B=B, N=n, Tv=n + 1, Tpad=T_V_PAD, L=L, Tt=T,
               heads_v=HEADS_V, heads_t=HEADS_T, layers_v=LAYERS_V, layers_t=LAYERS_T)
    kernel = functools.partial(_clip_forward_kernel, cfg=cfg)

    return pl.pallas_call(
        kernel,
        out_shape=jax.ShapeDtypeStruct((B, L), jnp.float32),
        in_specs=specs,
        out_specs=vmem,
        scratch_shapes=[pltpu.VMEM((B * T_V_PAD, D_V), jnp.float32)],
        cost_estimate=_approx_cost(inputs, B, L),
    )(*inputs)


# ----------------------------- parameter init --------------------------------
def init_params(key):
    keys = iter(jax.random.split(key, 64))

    def nrm(shape, std=0.02):
        return jax.random.normal(next(keys), shape, jnp.float32) * std

    def enc_layers(nl, d, mlp):
        # per-layer weights stacked along a leading layer axis; biases pre-shaped [nl,1,dim]
        return dict(
            ln1_g=jnp.ones((nl, 1, d), jnp.float32), ln1_b=jnp.zeros((nl, 1, d), jnp.float32),
            w_qkv=nrm((nl, d, 3 * d)), b_qkv=jnp.zeros((nl, 1, 3 * d), jnp.float32),
            w_o=nrm((nl, d, d)), b_o=jnp.zeros((nl, 1, d), jnp.float32),
            ln2_g=jnp.ones((nl, 1, d), jnp.float32), ln2_b=jnp.zeros((nl, 1, d), jnp.float32),
            w_fc1=nrm((nl, d, mlp)), b_fc1=jnp.zeros((nl, 1, mlp), jnp.float32),
            w_fc2=nrm((nl, mlp, d)), b_fc2=jnp.zeros((nl, 1, d), jnp.float32),
        )

    vision = dict(
        patch_w=nrm((CHANNELS * PATCH * PATCH, D_V)),
        class_emb=nrm((1, D_V)),
        pos_emb=nrm((T_V, D_V)),
        ln_pre_g=jnp.ones((1, D_V), jnp.float32), ln_pre_b=jnp.zeros((1, D_V), jnp.float32),
        layers=enc_layers(LAYERS_V, D_V, MLP_V),
        ln_post_g=jnp.ones((1, D_V), jnp.float32), ln_post_b=jnp.zeros((1, D_V), jnp.float32),
        proj_w=nrm((D_V, PROJ)),
    )
    text = dict(
        tok_emb=nrm((VOCAB, D_T)),
        pos_emb=nrm((SEQ_T, D_T)),
        layers=enc_layers(LAYERS_T, D_T, MLP_T),
        ln_final_g=jnp.ones((1, D_T), jnp.float32), ln_final_b=jnp.zeros((1, D_T), jnp.float32),
        proj_w=nrm((D_T, PROJ)),
    )
    return dict(vision=vision, text=text,
                logit_scale=jnp.full((1, 1), LOGIT_SCALE_INIT, jnp.float32))


# ----------------------------- main -----------------------------------------
if __name__ == "__main__":
    key = jax.random.PRNGKey(0)
    k_params, k_img, k_ids = jax.random.split(key, 3)

    params = init_params(k_params)

    labels = ["a photo of a cat", "a photo of a dog", "a photo of a car"]
    L = len(labels)

    # Image batch: NCHW, B=2, C=3, H=W=16
    x = jax.random.normal(k_img, (2, CHANNELS, IMG_SIZE, IMG_SIZE), jnp.float32)

    # Synthetic deterministic "tokenization" of the labels (TODO(synk): real tokenizer)
    lengths = jnp.array([4, 5, 6], jnp.int32)
    pos = jnp.arange(SEQ_T)[None, :]
    rand_ids = jax.random.randint(k_ids, (L, SEQ_T), 1, VOCAB - 1)
    input_ids = jnp.where(pos < lengths[:, None] - 1, rand_ids, 0)
    input_ids = jnp.where(pos == lengths[:, None] - 1, VOCAB - 1, input_ids)  # EOS token
    attention_mask = (pos < lengths[:, None]).astype(jnp.int32)

    forward = jax.jit(image_classifier_forward)
    probs = jax.block_until_ready(forward(params, x, input_ids, attention_mask))

    assert probs.shape == (x.shape[0], L)
    assert bool(jnp.all(jnp.isfinite(probs)))
    assert bool(jnp.allclose(probs.sum(axis=1), 1.0, atol=1e-4))

    # mirrors the module's per-label print for the first image
    for label, prob in zip(labels, probs[0]):
        print(f"{label}: {float(prob):.4f}")

    print("KERNEL_OK")
</pallas_src>

<mosaic_0001>
module attributes {stable_mosaic.version = 11 : i64} {
  func.func @_clip_forward_kernel(%arg0: memref<8x192xf32, #tpu.memory_space<vmem>>, %arg1: memref<192x32xf32, #tpu.memory_space<vmem>>, %arg2: memref<1x32xf32, #tpu.memory_space<vmem>>, %arg3: memref<5x32xf32, #tpu.memory_space<vmem>>, %arg4: memref<1x32xf32, #tpu.memory_space<vmem>>, %arg5: memref<1x32xf32, #tpu.memory_space<vmem>>, %arg6: memref<2x1x32xf32, #tpu.memory_space<vmem>>, %arg7: memref<2x1x32xf32, #tpu.memory_space<vmem>>, %arg8: memref<2x32x96xf32, #tpu.memory_space<vmem>>, %arg9: memref<2x1x96xf32, #tpu.memory_space<vmem>>, %arg10: memref<2x32x32xf32, #tpu.memory_space<vmem>>, %arg11: memref<2x1x32xf32, #tpu.memory_space<vmem>>, %arg12: memref<2x1x32xf32, #tpu.memory_space<vmem>>, %arg13: memref<2x1x32xf32, #tpu.memory_space<vmem>>, %arg14: memref<2x32x64xf32, #tpu.memory_space<vmem>>, %arg15: memref<2x1x64xf32, #tpu.memory_space<vmem>>, %arg16: memref<2x64x32xf32, #tpu.memory_space<vmem>>, %arg17: memref<2x1x32xf32, #tpu.memory_space<vmem>>, %arg18: memref<1x32xf32, #tpu.memory_space<vmem>>, %arg19: memref<1x32xf32, #tpu.memory_space<vmem>>, %arg20: memref<32x32xf32, #tpu.memory_space<vmem>>, %arg21: memref<24x32xf32, #tpu.memory_space<vmem>>, %arg22: memref<1x24xf32, #tpu.memory_space<vmem>>, %arg23: memref<2x1x32xf32, #tpu.memory_space<vmem>>, %arg24: memref<2x1x32xf32, #tpu.memory_space<vmem>>, %arg25: memref<2x32x96xf32, #tpu.memory_space<vmem>>, %arg26: memref<2x1x96xf32, #tpu.memory_space<vmem>>, %arg27: memref<2x32x32xf32, #tpu.memory_space<vmem>>, %arg28: memref<2x1x32xf32, #tpu.memory_space<vmem>>, %arg29: memref<2x1x32xf32, #tpu.memory_space<vmem>>, %arg30: memref<2x1x32xf32, #tpu.memory_space<vmem>>, %arg31: memref<2x32x64xf32, #tpu.memory_space<vmem>>, %arg32: memref<2x1x64xf32, #tpu.memory_space<vmem>>, %arg33: memref<2x64x32xf32, #tpu.memory_space<vmem>>, %arg34: memref<2x1x32xf32, #tpu.memory_space<vmem>>, %arg35: memref<1x32xf32, #tpu.memory_space<vmem>>, %arg36: memref<1x32xf32, #tpu.memory_space<vmem>>, %arg37: memref<32x32xf32, #tpu.memory_space<vmem>>, %arg38: memref<3xi32, #tpu.memory_space<smem>>, %arg39: memref<1x1xf32, #tpu.memory_space<vmem>>, %arg40: memref<2x3xf32, #tpu.memory_space<vmem>>, %arg41: memref<16x32xf32, #tpu.memory_space<vmem>>) attributes {dimension_semantics = [], scalar_prefetch = 0 : i64, scratch_operands = 1 : i64, tpu.core_type = #tpu.core_type<tc>} {
    %c0 = arith.constant 0 : index
    %c0_0 = arith.constant 0 : index
    %0 = vector.load %arg0[%c0, %c0_0] : memref<8x192xf32, #tpu.memory_space<vmem>>, vector<8x192xf32>
    %c0_1 = arith.constant 0 : index
    %c0_2 = arith.constant 0 : index
    %1 = vector.load %arg1[%c0_1, %c0_2] : memref<192x32xf32, #tpu.memory_space<vmem>>, vector<192x32xf32>
    %cst = arith.constant dense<0.000000e+00> : vector<8x32xf32>
    %2 = tpu.matmul %0, %1, %cst {dimension_numbers = #tpu.dot_dimension_numbers<[1], [0], [0], [1], [0, 0, 1, 1], [], []>} : vector<8x192xf32>, vector<192x32xf32>, vector<8x32xf32> -> vector<8x32xf32>
    %cst_3 = arith.constant 0.000000e+00 : f32
    %3 = vector.broadcast %cst_3 : f32 to vector<16x32xf32>
    %c0_4 = arith.constant 0 : index
    %c0_5 = arith.constant 0 : index
    %4 = vector.load %arg41[%c0_4, %c0_5] : memref<16x32xf32, #tpu.memory_space<vmem>>, vector<16x32xf32>
    tpu.vector_store %arg41[%c0_4, %c0_5], %3 {strides = array<i32>} : memref<16x32xf32, #tpu.memory_space<vmem>>, vector<16x32xf32>,
    %c0_6 = arith.constant 0 : index
    %c0_7 = arith.constant 0 : index
    %5 = vector.load %arg2[%c0_6, %c0_7] : memref<1x32xf32, #tpu.memory_space<vmem>>, vector<1x32xf32>
    %c0_8 = arith.constant 0 : index
    %c0_9 = arith.constant 0 : index
    %6 = vector.load %arg3[%c0_8, %c0_9] : memref<5x32xf32, #tpu.memory_space<vmem>>, vector<1x32xf32>
    %7 = arith.addf %5, %6 : vector<1x32xf32>
    %c0_10 = arith.constant 0 : index
    %c0_11 = arith.constant 0 : index
    %8 = vector.load %arg41[%c0_10, %c0_11] : memref<16x32xf32, #tpu.memory_space<vmem>>, vector<1x32xf32>
    tpu.vector_store %arg41[%c0_10, %c0_11], %7 {strides = array<i32>} : memref<16x32xf32, #tpu.memory_space<vmem>>, vector<1x32xf32>,
    %9 = vector.extract_strided_slice %2 {offsets = [0, 0], sizes = [4, 32], strides = [1, 1]} : vector<8x32xf32> to vector<4x32xf32>
    %c1 = arith.constant 1 : index
    %c0_12 = arith.constant 0 : index
    %10 = vector.load %arg3[%c1, %c0_12] : memref<5x32xf32, #tpu.memory_space<vmem>>, vector<4x32xf32>
    %11 = arith.addf %9, %10 : vector<4x32xf32>
    %c1_13 = arith.constant 1 : index
    %c0_14 = arith.constant 0 : index
    %12 = vector.load %arg41[%c1_13, %c0_14] : memref<16x32xf32, #tpu.memory_space<vmem>>, vector<4x32xf32>
    tpu.vector_store %arg41[%c1_13, %c0_14], %11 {strides = array<i32>} : memref<16x32xf32, #tpu.memory_space<vmem>>, vector<4x32xf32>,
    %c0_15 = arith.constant 0 : index
    %c0_16 = arith.constant 0 : index
    %13 = vector.load %arg2[%c0_15, %c0_16] : memref<1x32xf32, #tpu.memory_space<vmem>>, vector<1x32xf32>
    %c0_17 = arith.constant 0 : index
    %c0_18 = arith.constant 0 : index
    %14 = vector.load %arg3[%c0_17, %c0_18] : memref<5x32xf32, #tpu.memory_space<vmem>>, vector<1x32xf32>
    %15 = arith.addf %13, %14 : vector<1x32xf32>
    %c8 = arith.constant 8 : index
    %c0_19 = arith.constant 0 : index
    %16 = vector.load %arg41[%c8, %c0_19] : memref<16x32xf32, #tpu.memory_space<vmem>>, vector<1x32xf32>
    tpu.vector_store %arg41[%c8, %c0_19], %15 {strides = array<i32>} : memref<16x32xf32, #tpu.memory_space<vmem>>, vector<1x32xf32>,
    %17 = vector.extract_strided_slice %2 {offsets = [4, 0], sizes = [4, 32], strides = [1, 1]} : vector<8x32xf32> to vector<4x32xf32>
    %c1_20 = arith.constant 1 : index
    %c0_21 = arith.constant 0 : index
    %18 = vector.load %arg3[%c1_20, %c0_21] : memref<5x32xf32, #tpu.memory_space<vmem>>, vector<4x32xf32>
    %19 = arith.addf %17, %18 : vector<4x32xf32>
    %c9 = arith.constant 9 : index
    %c0_22 = arith.constant 0 : index
    %20 = vector.load %arg41[%c9, %c0_22] : memref<16x32xf32, #tpu.memory_space<vmem>>, vector<4x32xf32>
    tpu.vector_store %arg41[%c9, %c0_22], %19 {strides = array<i32>} : memref<16x32xf32, #tpu.memory_space<vmem>>, vector<4x32xf32>,
    %c0_23 = arith.constant 0 : index
    %c0_24 = arith.constant 0 : index
    %21 = vector.load %arg41[%c0_23, %c0_24] : memref<16x32xf32, #tpu.memory_space<vmem>>, vector<16x32xf32>
    %c0_25 = arith.constant 0 : index
    %c0_26 = arith.constant 0 : index
    %22 = vector.load %arg4[%c0_25, %c0_26] : memref<1x32xf32, #tpu.memory_space<vmem>>, vector<1x32xf32>
    %c0_27 = arith.constant 0 : index
    %c0_28 = arith.constant 0 : index
    %23 = vector.load %arg5[%c0_27, %c0_28] : memref<1x32xf32, #tpu.memory_space<vmem>>, vector<1x32xf32>
    %cst_29 = arith.constant dense<0.000000e+00> : vector<16xf32>
    %24 = vector.multi_reduction <add>, %21, %cst_29 [1] : vector<16x32xf32> to vector<16xf32>
    %25 = vector.shape_cast %24 : vector<16xf32> to vector<16x1xf32>
    %cst_30 = arith.constant 3.200000e+01 : f32
    %26 = vector.broadcast %cst_30 : f32 to vector<16x1xf32>
    %27 = arith.divf %25, %26 : vector<16x1xf32>
    %28 = vector.broadcast %27 : vector<16x1xf32> to vector<16x32xf32>
    %29 = arith.subf %21, %28 : vector<16x32xf32>
    %30 = arith.mulf %29, %29 : vector<16x32xf32>
    %cst_31 = arith.constant dense<0.000000e+00> : vector<16xf32>
    %31 = vector.multi_reduction <add>, %30, %cst_31 [1] : vector<16x32xf32> to vector<16xf32>
    %32 = vector.shape_cast %31 : vector<16xf32> to vector<16x1xf32>
    %cst_32 = arith.constant 3.200000e+01 : f32
    %33 = vector.broadcast %cst_32 : f32 to vector<16x1xf32>
    %34 = arith.divf %32, %33 : vector<16x1xf32>
    %cst_33 = arith.constant 9.99999974E-6 : f32
    %35 = vector.broadcast %cst_33 : f32 to vector<16x1xf32>
    %36 = arith.addf %34, %35 : vector<16x1xf32>
    %37 = math.rsqrt %36 : vector<16x1xf32>
    %38 = vector.broadcast %37 : vector<16x1xf32> to vector<16x32xf32>
    %39 = arith.mulf %29, %38 : vector<16x32xf32>
    %40 = vector.broadcast %22 : vector<1x32xf32> to vector<16x32xf32>
    %41 = arith.mulf %39, %40 : vector<16x32xf32>
    %42 = vector.broadcast %23 : vector<1x32xf32> to vector<16x32xf32>
    %43 = arith.addf %41, %42 : vector<16x32xf32>
    %44 = tpu.iota {dimensions = array<i32: 0>} : vector<16x16xi32>
    %45 = tpu.iota {dimensions = array<i32: 1>} : vector<16x16xi32>
    %c3_i32 = arith.constant 3 : i32
    %46 = vector.broadcast %c3_i32 : i32 to vector<16x16xi32>
    %47 = arith.shrsi %44, %46 : vector<16x16xi32>
    %c3_i32_34 = arith.constant 3 : i32
    %48 = vector.broadcast %c3_i32_34 : i32 to vector<16x16xi32>
    %49 = arith.shrsi %45, %48 : vector<16x16xi32>
    %50 = arith.cmpi eq, %47, %49 : vector<16x16xi32>
    %c7_i32 = arith.constant 7 : i32
    %51 = vector.broadcast %c7_i32 : i32 to vector<16x16xi32>
    %52 = arith.andi %45, %51 : vector<16x16xi32>
    %c5_i32 = arith.constant 5 : i32
    %53 = vector.broadcast %c5_i32 : i32 to vector<16x16xi32>
    %54 = arith.cmpi slt, %52, %53 : vector<16x16xi32>
    %55 = arith.andi %50, %54 : vector<16x16xi1>
    %cst_35 = arith.constant 0.000000e+00 : f32
    %cst_36 = arith.constant -1.000000e+09 : f32
    %56 = vector.broadcast %cst_35 : f32 to vector<16x16xf32>
    %57 = vector.broadcast %cst_36 : f32 to vector<16x16xf32>
    %58 = arith.select %55, %56, %57 : vector<16x16xi1>, vector<16x16xf32>
    %c0_37 = arith.constant 0 : index
    %c0_38 = arith.constant 0 : index
    %c0_39 = arith.constant 0 : index
    %59 = vector.load %arg6[%c0_37, %c0_38, %c0_39] : memref<2x1x32xf32, #tpu.memory_space<vmem>>, vector<1x1x32xf32>
    %60 = vector.shape_cast %59 : vector<1x1x32xf32> to vector<1x32xf32>
    %c0_40 = arith.constant 0 : index
    %c0_41 = arith.constant 0 : index
    %c0_42 = arith.constant 0 : index
    %61 = vector.load %arg7[%c0_40, %c0_41, %c0_42] : memref<2x1x32xf32, #tpu.memory_space<vmem>>, vector<1x1x32xf32>
    %62 = vector.shape_cast %61 : vector<1x1x32xf32> to vector<1x32xf32>
    %cst_43 = arith.constant dense<0.000000e+00> : vector<16xf32>
    %63 = vector.multi_reduction <add>, %43, %cst_43 [1] : vector<16x32xf32> to vector<16xf32>
    %64 = vector.shape_cast %63 : vector<16xf32> to vector<16x1xf32>
    %cst_44 = arith.constant 3.200000e+01 : f32
    %65 = vector.broadcast %cst_44 : f32 to vector<16x1xf32>
    %66 = arith.divf %64, %65 : vector<16x1xf32>
    %67 = vector.broadcast %66 : vector<16x1xf32> to vector<16x32xf32>
    %68 = arith.subf %43, %67 : vector<16x32xf32>
    %69 = arith.mulf %68, %68 : vector<16x32xf32>
    %cst_45 = arith.constant dense<0.000000e+00> : vector<16xf32>
    %70 = vector.multi_reduction <add>, %69, %cst_45 [1] : vector<16x32xf32> to vector<16xf32>
    %71 = vector.shape_cast %70 : vector<16xf32> to vector<16x1xf32>
    %cst_46 = arith.constant 3.200000e+01 : f32
    %72 = vector.broadcast %cst_46 : f32 to vector<16x1xf32>
    %73 = arith.divf %71, %72 : vector<16x1xf32>
    %cst_47 = arith.constant 9.99999974E-6 : f32
    %74 = vector.broadcast %cst_47 : f32 to vector<16x1xf32>
    %75 = arith.addf %73, %74 : vector<16x1xf32>
    %76 = math.rsqrt %75 : vector<16x1xf32>
    %77 = vector.broadcast %76 : vector<16x1xf32> to vector<16x32xf32>
    %78 = arith.mulf %68, %77 : vector<16x32xf32>
    %79 = vector.broadcast %60 : vector<1x32xf32> to vector<16x32xf32>
    %80 = arith.mulf %78, %79 : vector<16x32xf32>
    %81 = vector.broadcast %62 : vector<1x32xf32> to vector<16x32xf32>
    %82 = arith.addf %80, %81 : vector<16x32xf32>
    %c0_48 = arith.constant 0 : index
    %c0_49 = arith.constant 0 : index
    %c0_50 = arith.constant 0 : index
    %83 = vector.load %arg8[%c0_48, %c0_49, %c0_50] : memref<2x32x96xf32, #tpu.memory_space<vmem>>, vector<1x32x96xf32>
    %84 = vector.shape_cast %83 : vector<1x32x96xf32> to vector<32x96xf32>
    %cst_51 = arith.constant dense<0.000000e+00> : vector<16x96xf32>
    %85 = tpu.matmul %82, %84, %cst_51 {dimension_numbers = #tpu.dot_dimension_numbers<[1], [0], [0], [1], [0, 0, 1, 1], [], []>} : vector<16x32xf32>, vector<32x96xf32>, vector<16x96xf32> -> vector<16x96xf32>
    %c0_52 = arith.constant 0 : index
    %c0_53 = arith.constant 0 : index
    %c0_54 = arith.constant 0 : index
    %86 = vector.load %arg9[%c0_52, %c0_53, %c0_54] : memref<2x1x96xf32, #tpu.memory_space<vmem>>, vector<1x1x96xf32>
    %87 = vector.shape_cast %86 : vector<1x1x96xf32> to vector<1x96xf32>
    %88 = vector.broadcast %87 : vector<1x96xf32> to vector<16x96xf32>
    %89 = arith.addf %85, %88 : vector<16x96xf32>
    %90 = vector.extract_strided_slice %89 {offsets = [0, 0], sizes = [16, 8], strides = [1, 1]} : vector<16x96xf32> to vector<16x8xf32>
    %91 = vector.extract_strided_slice %89 {offsets = [0, 32], sizes = [16, 8], strides = [1, 1]} : vector<16x96xf32> to vector<16x8xf32>
    %92 = vector.extract_strided_slice %89 {offsets = [0, 64], sizes = [16, 8], strides = [1, 1]} : vector<16x96xf32> to vector<16x8xf32>
    %93 = tpu.transpose %91, [1, 0] : vector<16x8xf32> -> vector<8x16xf32>
    %cst_55 = arith.constant dense<0.000000e+00> : vector<16x16xf32>
    %94 = tpu.matmul %90, %93, %cst_55 {dimension_numbers = #tpu.dot_dimension_numbers<[1], [0], [0], [1], [0, 0, 1, 1], [], []>} : vector<16x8xf32>, vector<8x16xf32>, vector<16x16xf32> -> vector<16x16xf32>
    %cst_56 = arith.constant 0.353553385 : f32
    %95 = vector.broadcast %cst_56 : f32 to vector<16x16xf32>
    %96 = arith.mulf %94, %95 : vector<16x16xf32>
    %97 = arith.addf %96, %58 : vector<16x16xf32>
    %cst_57 = arith.constant dense<0xFF800000> : vector<16xf32>
    %98 = vector.multi_reduction <maximumf>, %97, %cst_57 [1] : vector<16x16xf32> to vector<16xf32>
    %99 = vector.shape_cast %98 : vector<16xf32> to vector<16x1xf32>
    %100 = vector.broadcast %99 : vector<16x1xf32> to vector<16x16xf32>
    %101 = arith.subf %97, %100 : vector<16x16xf32>
    %102 = math.exp %101 : vector<16x16xf32>
    %cst_58 = arith.constant dense<0.000000e+00> : vector<16xf32>
    %103 = vector.multi_reduction <add>, %102, %cst_58 [1] : vector<16x16xf32> to vector<16xf32>
    %104 = vector.shape_cast %103 : vector<16xf32> to vector<16x1xf32>
    %105 = tpu.reciprocal %104 {approx = true} : vector<16x1xf32> -> vector<16x1xf32>
    %106 = vector.broadcast %105 : vector<16x1xf32> to vector<16x16xf32>
    %107 = arith.mulf %102, %106 : vector<16x16xf32>
    %cst_59 = arith.constant dense<0.000000e+00> : vector<16x8xf32>
    %108 = tpu.matmul %107, %92, %cst_59 {dimension_numbers = #tpu.dot_dimension_numbers<[1], [0], [0], [1], [0, 0, 1, 1], [], []>} : vector<16x16xf32>, vector<16x8xf32>, vector<16x8xf32> -> vector<16x8xf32>
    %109 = vector.extract_strided_slice %89 {offsets = [0, 8], sizes = [16, 8], strides = [1, 1]} : vector<16x96xf32> to vector<16x8xf32>
    %110 = vector.extract_strided_slice %89 {offsets = [0, 40], sizes = [16, 8], strides = [1, 1]} : vector<16x96xf32> to vector<16x8xf32>
    %111 = vector.extract_strided_slice %89 {offsets = [0, 72], sizes = [16, 8], strides = [1, 1]} : vector<16x96xf32> to vector<16x8xf32>
    %112 = tpu.transpose %110, [1, 0] : vector<16x8xf32> -> vector<8x16xf32>
    %cst_60 = arith.constant dense<0.000000e+00> : vector<16x16xf32>
    %113 = tpu.matmul %109, %112, %cst_60 {dimension_numbers = #tpu.dot_dimension_numbers<[1], [0], [0], [1], [0, 0, 1, 1], [], []>} : vector<16x8xf32>, vector<8x16xf32>, vector<16x16xf32> -> vector<16x16xf32>
    %cst_61 = arith.constant 0.353553385 : f32
    %114 = vector.broadcast %cst_61 : f32 to vector<16x16xf32>
    %115 = arith.mulf %113, %114 : vector<16x16xf32>
    %116 = arith.addf %115, %58 : vector<16x16xf32>
    %cst_62 = arith.constant dense<0xFF800000> : vector<16xf32>
    %117 = vector.multi_reduction <maximumf>, %116, %cst_62 [1] : vector<16x16xf32> to vector<16xf32>
    %118 = vector.shape_cast %117 : vector<16xf32> to vector<16x1xf32>
    %119 = vector.broadcast %118 : vector<16x1xf32> to vector<16x16xf32>
    %120 = arith.subf %116, %119 : vector<16x16xf32>
    %121 = math.exp %120 : vector<16x16xf32>
    %cst_63 = arith.constant dense<0.000000e+00> : vector<16xf32>
    %122 = vector.multi_reduction <add>, %121, %cst_63 [1] : vector<16x16xf32> to vector<16xf32>
    %123 = vector.shape_cast %122 : vector<16xf32> to vector<16x1xf32>
    %124 = tpu.reciprocal %123 {approx = true} : vector<16x1xf32> -> vector<16x1xf32>
    %125 = vector.broadcast %124 : vector<16x1xf32> to vector<16x16xf32>
    %126 = arith.mulf %121, %125 : vector<16x16xf32>
    %cst_64 = arith.constant dense<0.000000e+00> : vector<16x8xf32>
    %127 = tpu.matmul %126, %111, %cst_64 {dimension_numbers = #tpu.dot_dimension_numbers<[1], [0], [0], [1], [0, 0, 1, 1], [], []>} : vector<16x16xf32>, vector<16x8xf32>, vector<16x8xf32> -> vector<16x8xf32>
    %128 = vector.extract_strided_slice %89 {offsets = [0, 16], sizes = [16, 8], strides = [1, 1]} : vector<16x96xf32> to vector<16x8xf32>
    %129 = vector.extract_strided_slice %89 {offsets = [0, 48], sizes = [16, 8], strides = [1, 1]} : vector<16x96xf32> to vector<16x8xf32>
    %130 = vector.extract_strided_slice %89 {offsets = [0, 80], sizes = [16, 8], strides = [1, 1]} : vector<16x96xf32> to vector<16x8xf32>
    %131 = tpu.transpose %129, [1, 0] : vector<16x8xf32> -> vector<8x16xf32>
    %cst_65 = arith.constant dense<0.000000e+00> : vector<16x16xf32>
    %132 = tpu.matmul %128, %131, %cst_65 {dimension_numbers = #tpu.dot_dimension_numbers<[1], [0], [0], [1], [0, 0, 1, 1], [], []>} : vector<16x8xf32>, vector<8x16xf32>, vector<16x16xf32> -> vector<16x16xf32>
    %cst_66 = arith.constant 0.353553385 : f32
    %133 = vector.broadcast %cst_66 : f32 to vector<16x16xf32>
    %134 = arith.mulf %132, %133 : vector<16x16xf32>
    %135 = arith.addf %134, %58 : vector<16x16xf32>
    %cst_67 = arith.constant dense<0xFF800000> : vector<16xf32>
    %136 = vector.multi_reduction <maximumf>, %135, %cst_67 [1] : vector<16x16xf32> to vector<16xf32>
    %137 = vector.shape_cast %136 : vector<16xf32> to vector<16x1xf32>
    %138 = vector.broadcast %137 : vector<16x1xf32> to vector<16x16xf32>
    %139 = arith.subf %135, %138 : vector<16x16xf32>
    %140 = math.exp %139 : vector<16x16xf32>
    %cst_68 = arith.constant dense<0.000000e+00> : vector<16xf32>
    %141 = vector.multi_reduction <add>, %140, %cst_68 [1] : vector<16x16xf32> to vector<16xf32>
    %142 = vector.shape_cast %141 : vector<16xf32> to vector<16x1xf32>
    %143 = tpu.reciprocal %142 {approx = true} : vector<16x1xf32> -> vector<16x1xf32>
    %144 = vector.broadcast %143 : vector<16x1xf32> to vector<16x16xf32>
    %145 = arith.mulf %140, %144 : vector<16x16xf32>
    %cst_69 = arith.constant dense<0.000000e+00> : vector<16x8xf32>
    %146 = tpu.matmul %145, %130, %cst_69 {dimension_numbers = #tpu.dot_dimension_numbers<[1], [0], [0], [1], [0, 0, 1, 1], [], []>} : vector<16x16xf32>, vector<16x8xf32>, vector<16x8xf32> -> vector<16x8xf32>
    %147 = vector.extract_strided_slice %89 {offsets = [0, 24], sizes = [16, 8], strides = [1, 1]} : vector<16x96xf32> to vector<16x8xf32>
    %148 = vector.extract_strided_slice %89 {offsets = [0, 56], sizes = [16, 8], strides = [1, 1]} : vector<16x96xf32> to vector<16x8xf32>
    %149 = vector.extract_strided_slice %89 {offsets = [0, 88], sizes = [16, 8], strides = [1, 1]} : vector<16x96xf32> to vector<16x8xf32>
    %150 = tpu.transpose %148, [1, 0] : vector<16x8xf32> -> vector<8x16xf32>
    %cst_70 = arith.constant dense<0.000000e+00> : vector<16x16xf32>
    %151 = tpu.matmul %147, %150, %cst_70 {dimension_numbers = #tpu.dot_dimension_numbers<[1], [0], [0], [1], [0, 0, 1, 1], [], []>} : vector<16x8xf32>, vector<8x16xf32>, vector<16x16xf32> -> vector<16x16xf32>
    %cst_71 = arith.constant 0.353553385 : f32
    %152 = vector.broadcast %cst_71 : f32 to vector<16x16xf32>
    %153 = arith.mulf %151, %152 : vector<16x16xf32>
    %154 = arith.addf %153, %58 : vector<16x16xf32>
    %cst_72 = arith.constant dense<0xFF800000> : vector<16xf32>
    %155 = vector.multi_reduction <maximumf>, %154, %cst_72 [1] : vector<16x16xf32> to vector<16xf32>
    %156 = vector.shape_cast %155 : vector<16xf32> to vector<16x1xf32>
    %157 = vector.broadcast %156 : vector<16x1xf32> to vector<16x16xf32>
    %158 = arith.subf %154, %157 : vector<16x16xf32>
    %159 = math.exp %158 : vector<16x16xf32>
    %cst_73 = arith.constant dense<0.000000e+00> : vector<16xf32>
    %160 = vector.multi_reduction <add>, %159, %cst_73 [1] : vector<16x16xf32> to vector<16xf32>
    %161 = vector.shape_cast %160 : vector<16xf32> to vector<16x1xf32>
    %162 = tpu.reciprocal %161 {approx = true} : vector<16x1xf32> -> vector<16x1xf32>
    %163 = vector.broadcast %162 : vector<16x1xf32> to vector<16x16xf32>
    %164 = arith.mulf %159, %163 : vector<16x16xf32>
    %cst_74 = arith.constant dense<0.000000e+00> : vector<16x8xf32>
    %165 = tpu.matmul %164, %149, %cst_74 {dimension_numbers = #tpu.dot_dimension_numbers<[1], [0], [0], [1], [0, 0, 1, 1], [], []>} : vector<16x16xf32>, vector<16x8xf32>, vector<16x8xf32> -> vector<16x8xf32>
    %166 = tpu.concatenate %108, %127, %146, %165 in 1 : vector<16x8xf32>, vector<16x8xf32>, vector<16x8xf32>, vector<16x8xf32> -> vector<16x32xf32>
    %c0_75 = arith.constant 0 : index
    %c0_76 = arith.constant 0 : index
    %c0_77 = arith.constant 0 : index
    %167 = vector.load %arg10[%c0_75, %c0_76, %c0_77] : memref<2x32x32xf32, #tpu.memory_space<vmem>>, vector<1x32x32xf32>
    %168 = vector.shape_cast %167 : vector<1x32x32xf32> to vector<32x32xf32>
    %cst_78 = arith.constant dense<0.000000e+00> : vector<16x32xf32>
    %169 = tpu.matmul %166, %168, %cst_78 {dimension_numbers = #tpu.dot_dimension_numbers<[1], [0], [0], [1], [0, 0, 1, 1], [], []>} : vector<16x32xf32>, vector<32x32xf32>, vector<16x32xf32> -> vector<16x32xf32>
    %170 = arith.addf %43, %169 : vector<16x32xf32>
    %c0_79 = arith.constant 0 : index
    %c0_80 = arith.constant 0 : index
    %c0_81 = arith.constant 0 : index
    %171 = vector.load %arg11[%c0_79, %c0_80, %c0_81] : memref<2x1x32xf32, #tpu.memory_space<vmem>>, vector<1x1x32xf32>
    %172 = vector.shape_cast %171 : vector<1x1x32xf32> to vector<1x32xf32>
    %173 = vector.broadcast %172 : vector<1x32xf32> to vector<16x32xf32>
    %174 = arith.addf %170, %173 : vector<16x32xf32>
    %c0_82 = arith.constant 0 : index
    %c0_83 = arith.constant 0 : index
    %c0_84 = arith.constant 0 : index
    %175 = vector.load %arg12[%c0_82, %c0_83, %c0_84] : memref<2x1x32xf32, #tpu.memory_space<vmem>>, vector<1x1x32xf32>
    %176 = vector.shape_cast %175 : vector<1x1x32xf32> to vector<1x32xf32>
    %c0_85 = arith.constant 0 : index
    %c0_86 = arith.constant 0 : index
    %c0_87 = arith.constant 0 : index
    %177 = vector.load %arg13[%c0_85, %c0_86, %c0_87] : memref<2x1x32xf32, #tpu.memory_space<vmem>>, vector<1x1x32xf32>
    %178 = vector.shape_cast %177 : vector<1x1x32xf32> to vector<1x32xf32>
    %cst_88 = arith.constant dense<0.000000e+00> : vector<16xf32>
    %179 = vector.multi_reduction <add>, %174, %cst_88 [1] : vector<16x32xf32> to vector<16xf32>
    %180 = vector.shape_cast %179 : vector<16xf32> to vector<16x1xf32>
    %cst_89 = arith.constant 3.200000e+01 : f32
    %181 = vector.broadcast %cst_89 : f32 to vector<16x1xf32>
    %182 = arith.divf %180, %181 : vector<16x1xf32>
    %183 = vector.broadcast %182 : vector<16x1xf32> to vector<16x32xf32>
    %184 = arith.subf %174, %183 : vector<16x32xf32>
    %185 = arith.mulf %184, %184 : vector<16x32xf32>
    %cst_90 = arith.constant dense<0.000000e+00> : vector<16xf32>
    %186 = vector.multi_reduction <add>, %185, %cst_90 [1] : vector<16x32xf32> to vector<16xf32>
    %187 = vector.shape_cast %186 : vector<16xf32> to vector<16x1xf32>
    %cst_91 = arith.constant 3.200000e+01 : f32
    %188 = vector.broadcast %cst_91 : f32 to vector<16x1xf32>
    %189 = arith.divf %187, %188 : vector<16x1xf32>
    %cst_92 = arith.constant 9.99999974E-6 : f32
    %190 = vector.broadcast %cst_92 : f32 to vector<16x1xf32>
    %191 = arith.addf %189, %190 : vector<16x1xf32>
    %192 = math.rsqrt %191 : vector<16x1xf32>
    %193 = vector.broadcast %192 : vector<16x1xf32> to vector<16x32xf32>
    %194 = arith.mulf %184, %193 : vector<16x32xf32>
    %195 = vector.broadcast %176 : vector<1x32xf32> to vector<16x32xf32>
    %196 = arith.mulf %194, %195 : vector<16x32xf32>
    %197 = vector.broadcast %178 : vector<1x32xf32> to vector<16x32xf32>
    %198 = arith.addf %196, %197 : vector<16x32xf32>
    %c0_93 = arith.constant 0 : index
    %c0_94 = arith.constant 0 : index
    %c0_95 = arith.constant 0 : index
    %199 = vector.load %arg14[%c0_93, %c0_94, %c0_95] : memref<2x32x64xf32, #tpu.memory_space<vmem>>, vector<1x32x64xf32>
    %200 = vector.shape_cast %199 : vector<1x32x64xf32> to vector<32x64xf32>
    %cst_96 = arith.constant dense<0.000000e+00> : vector<16x64xf32>
    %201 = tpu.matmul %198, %200, %cst_96 {dimension_numbers = #tpu.dot_dimension_numbers<[1], [0], [0], [1], [0, 0, 1, 1], [], []>} : vector<16x32xf32>, vector<32x64xf32>, vector<16x64xf32> -> vector<16x64xf32>
    %c0_97 = arith.constant 0 : index
    %c0_98 = arith.constant 0 : index
    %c0_99 = arith.constant 0 : index
    %202 = vector.load %arg15[%c0_97, %c0_98, %c0_99] : memref<2x1x64xf32, #tpu.memory_space<vmem>>, vector<1x1x64xf32>
    %203 = vector.shape_cast %202 : vector<1x1x64xf32> to vector<1x64xf32>
    %204 = vector.broadcast %203 : vector<1x64xf32> to vector<16x64xf32>
    %205 = arith.addf %201, %204 : vector<16x64xf32>
    %cst_100 = arith.constant 1.702000e+00 : f32
    %206 = vector.broadcast %cst_100 : f32 to vector<16x64xf32>
    %207 = arith.mulf %206, %205 : vector<16x64xf32>
    %208 = arith.negf %207 : vector<16x64xf32>
    %209 = math.exp %208 : vector<16x64xf32>
    %cst_101 = arith.constant 1.000000e+00 : f32
    %210 = vector.broadcast %cst_101 : f32 to vector<16x64xf32>
    %211 = arith.addf %210, %209 : vector<16x64xf32>
    %212 = arith.divf %210, %211 : vector<16x64xf32>
    %213 = arith.mulf %205, %212 : vector<16x64xf32>
    %c0_102 = arith.constant 0 : index
    %c0_103 = arith.constant 0 : index
    %c0_104 = arith.constant 0 : index
    %214 = vector.load %arg16[%c0_102, %c0_103, %c0_104] : memref<2x64x32xf32, #tpu.memory_space<vmem>>, vector<1x64x32xf32>
    %215 = vector.shape_cast %214 : vector<1x64x32xf32> to vector<64x32xf32>
    %cst_105 = arith.constant dense<0.000000e+00> : vector<16x32xf32>
    %216 = tpu.matmul %213, %215, %cst_105 {dimension_numbers = #tpu.dot_dimension_numbers<[1], [0], [0], [1], [0, 0, 1, 1], [], []>} : vector<16x64xf32>, vector<64x32xf32>, vector<16x32xf32> -> vector<16x32xf32>
    %217 = arith.addf %174, %216 : vector<16x32xf32>
    %c0_106 = arith.constant 0 : index
    %c0_107 = arith.constant 0 : index
    %c0_108 = arith.constant 0 : index
    %218 = vector.load %arg17[%c0_106, %c0_107, %c0_108] : memref<2x1x32xf32, #tpu.memory_space<vmem>>, vector<1x1x32xf32>
    %219 = vector.shape_cast %218 : vector<1x1x32xf32> to vector<1x32xf32>
    %220 = vector.broadcast %219 : vector<1x32xf32> to vector<16x32xf32>
    %221 = arith.addf %217, %220 : vector<16x32xf32>
    %c1_109 = arith.constant 1 : index
    %c0_110 = arith.constant 0 : index
    %c0_111 = arith.constant 0 : index
    %222 = vector.load %arg6[%c1_109, %c0_110, %c0_111] : memref<2x1x32xf32, #tpu.memory_space<vmem>>, vector<1x1x32xf32>
    %223 = vector.shape_cast %222 : vector<1x1x32xf32> to vector<1x32xf32>
    %c1_112 = arith.constant 1 : index
    %c0_113 = arith.constant 0 : index
    %c0_114 = arith.constant 0 : index
    %224 = vector.load %arg7[%c1_112, %c0_113, %c0_114] : memref<2x1x32xf32, #tpu.memory_space<vmem>>, vector<1x1x32xf32>
    %225 = vector.shape_cast %224 : vector<1x1x32xf32> to vector<1x32xf32>
    %cst_115 = arith.constant dense<0.000000e+00> : vector<16xf32>
    %226 = vector.multi_reduction <add>, %221, %cst_115 [1] : vector<16x32xf32> to vector<16xf32>
    %227 = vector.shape_cast %226 : vector<16xf32> to vector<16x1xf32>
    %cst_116 = arith.constant 3.200000e+01 : f32
    %228 = vector.broadcast %cst_116 : f32 to vector<16x1xf32>
    %229 = arith.divf %227, %228 : vector<16x1xf32>
    %230 = vector.broadcast %229 : vector<16x1xf32> to vector<16x32xf32>
    %231 = arith.subf %221, %230 : vector<16x32xf32>
    %232 = arith.mulf %231, %231 : vector<16x32xf32>
    %cst_117 = arith.constant dense<0.000000e+00> : vector<16xf32>
    %233 = vector.multi_reduction <add>, %232, %cst_117 [1] : vector<16x32xf32> to vector<16xf32>
    %234 = vector.shape_cast %233 : vector<16xf32> to vector<16x1xf32>
    %cst_118 = arith.constant 3.200000e+01 : f32
    %235 = vector.broadcast %cst_118 : f32 to vector<16x1xf32>
    %236 = arith.divf %234, %235 : vector<16x1xf32>
    %cst_119 = arith.constant 9.99999974E-6 : f32
    %237 = vector.broadcast %cst_119 : f32 to vector<16x1xf32>
    %238 = arith.addf %236, %237 : vector<16x1xf32>
    %239 = math.rsqrt %238 : vector<16x1xf32>
    %240 = vector.broadcast %239 : vector<16x1xf32> to vector<16x32xf32>
    %241 = arith.mulf %231, %240 : vector<16x32xf32>
    %242 = vector.broadcast %223 : vector<1x32xf32> to vector<16x32xf32>
    %243 = arith.mulf %241, %242 : vector<16x32xf32>
    %244 = vector.broadcast %225 : vector<1x32xf32> to vector<16x32xf32>
    %245 = arith.addf %243, %244 : vector<16x32xf32>
    %c1_120 = arith.constant 1 : index
    %c0_121 = arith.constant 0 : index
    %c0_122 = arith.constant 0 : index
    %246 = vector.load %arg8[%c1_120, %c0_121, %c0_122] : memref<2x32x96xf32, #tpu.memory_space<vmem>>, vector<1x32x96xf32>
    %247 = vector.shape_cast %246 : vector<1x32x96xf32> to vector<32x96xf32>
    %cst_123 = arith.constant dense<0.000000e+00> : vector<16x96xf32>
    %248 = tpu.matmul %245, %247, %cst_123 {dimension_numbers = #tpu.dot_dimension_numbers<[1], [0], [0], [1], [0, 0, 1, 1], [], []>} : vector<16x32xf32>, vector<32x96xf32>, vector<16x96xf32> -> vector<16x96xf32>
    %c1_124 = arith.constant 1 : index
    %c0_125 = arith.constant 0 : index
    %c0_126 = arith.constant 0 : index
    %249 = vector.load %arg9[%c1_124, %c0_125, %c0_126] : memref<2x1x96xf32, #tpu.memory_space<vmem>>, vector<1x1x96xf32>
    %250 = vector.shape_cast %249 : vector<1x1x96xf32> to vector<1x96xf32>
    %251 = vector.broadcast %250 : vector<1x96xf32> to vector<16x96xf32>
    %252 = arith.addf %248, %251 : vector<16x96xf32>
    %253 = vector.extract_strided_slice %252 {offsets = [0, 0], sizes = [16, 8], strides = [1, 1]} : vector<16x96xf32> to vector<16x8xf32>
    %254 = vector.extract_strided_slice %252 {offsets = [0, 32], sizes = [16, 8], strides = [1, 1]} : vector<16x96xf32> to vector<16x8xf32>
    %255 = vector.extract_strided_slice %252 {offsets = [0, 64], sizes = [16, 8], strides = [1, 1]} : vector<16x96xf32> to vector<16x8xf32>
    %256 = tpu.transpose %254, [1, 0] : vector<16x8xf32> -> vector<8x16xf32>
    %cst_127 = arith.constant dense<0.000000e+00> : vector<16x16xf32>
    %257 = tpu.matmul %253, %256, %cst_127 {dimension_numbers = #tpu.dot_dimension_numbers<[1], [0], [0], [1], [0, 0, 1, 1], [], []>} : vector<16x8xf32>, vector<8x16xf32>, vector<16x16xf32> -> vector<16x16xf32>
    %cst_128 = arith.constant 0.353553385 : f32
    %258 = vector.broadcast %cst_128 : f32 to vector<16x16xf32>
    %259 = arith.mulf %257, %258 : vector<16x16xf32>
    %260 = arith.addf %259, %58 : vector<16x16xf32>
    %cst_129 = arith.constant dense<0xFF800000> : vector<16xf32>
    %261 = vector.multi_reduction <maximumf>, %260, %cst_129 [1] : vector<16x16xf32> to vector<16xf32>
    %262 = vector.shape_cast %261 : vector<16xf32> to vector<16x1xf32>
    %263 = vector.broadcast %262 : vector<16x1xf32> to vector<16x16xf32>
    %264 = arith.subf %260, %263 : vector<16x16xf32>
    %265 = math.exp %264 : vector<16x16xf32>
    %cst_130 = arith.constant dense<0.000000e+00> : vector<16xf32>
    %266 = vector.multi_reduction <add>, %265, %cst_130 [1] : vector<16x16xf32> to vector<16xf32>
    %267 = vector.shape_cast %266 : vector<16xf32> to vector<16x1xf32>
    %268 = tpu.reciprocal %267 {approx = true} : vector<16x1xf32> -> vector<16x1xf32>
    %269 = vector.broadcast %268 : vector<16x1xf32> to vector<16x16xf32>
    %270 = arith.mulf %265, %269 : vector<16x16xf32>
    %cst_131 = arith.constant dense<0.000000e+00> : vector<16x8xf32>
    %271 = tpu.matmul %270, %255, %cst_131 {dimension_numbers = #tpu.dot_dimension_numbers<[1], [0], [0], [1], [0, 0, 1, 1], [], []>} : vector<16x16xf32>, vector<16x8xf32>, vector<16x8xf32> -> vector<16x8xf32>
    %272 = vector.extract_strided_slice %252 {offsets = [0, 8], sizes = [16, 8], strides = [1, 1]} : vector<16x96xf32> to vector<16x8xf32>
    %273 = vector.extract_strided_slice %252 {offsets = [0, 40], sizes = [16, 8], strides = [1, 1]} : vector<16x96xf32> to vector<16x8xf32>
    %274 = vector.extract_strided_slice %252 {offsets = [0, 72], sizes = [16, 8], strides = [1, 1]} : vector<16x96xf32> to vector<16x8xf32>
    %275 = tpu.transpose %273, [1, 0] : vector<16x8xf32> -> vector<8x16xf32>
    %cst_132 = arith.constant dense<0.000000e+00> : vector<16x16xf32>
    %276 = tpu.matmul %272, %275, %cst_132 {dimension_numbers = #tpu.dot_dimension_numbers<[1], [0], [0], [1], [0, 0, 1, 1], [], []>} : vector<16x8xf32>, vector<8x16xf32>, vector<16x16xf32> -> vector<16x16xf32>
    %cst_133 = arith.constant 0.353553385 : f32
    %277 = vector.broadcast %cst_133 : f32 to vector<16x16xf32>
    %278 = arith.mulf %276, %277 : vector<16x16xf32>
    %279 = arith.addf %278, %58 : vector<16x16xf32>
    %cst_134 = arith.constant dense<0xFF800000> : vector<16xf32>
    %280 = vector.multi_reduction <maximumf>, %279, %cst_134 [1] : vector<16x16xf32> to vector<16xf32>
    %281 = vector.shape_cast %280 : vector<16xf32> to vector<16x1xf32>
    %282 = vector.broadcast %281 : vector<16x1xf32> to vector<16x16xf32>
    %283 = arith.subf %279, %282 : vector<16x16xf32>
    %284 = math.exp %283 : vector<16x16xf32>
    %cst_135 = arith.constant dense<0.000000e+00> : vector<16xf32>
    %285 = vector.multi_reduction <add>, %284, %cst_135 [1] : vector<16x16xf32> to vector<16xf32>
    %286 = vector.shape_cast %285 : vector<16xf32> to vector<16x1xf32>
    %287 = tpu.reciprocal %286 {approx = true} : vector<16x1xf32> -> vector<16x1xf32>
    %288 = vector.broadcast %287 : vector<16x1xf32> to vector<16x16xf32>
    %289 = arith.mulf %284, %288 : vector<16x16xf32>
    %cst_136 = arith.constant dense<0.000000e+00> : vector<16x8xf32>
    %290 = tpu.matmul %289, %274, %cst_136 {dimension_numbers = #tpu.dot_dimension_numbers<[1], [0], [0], [1], [0, 0, 1, 1], [], []>} : vector<16x16xf32>, vector<16x8xf32>, vector<16x8xf32> -> vector<16x8xf32>
    %291 = vector.extract_strided_slice %252 {offsets = [0, 16], sizes = [16, 8], strides = [1, 1]} : vector<16x96xf32> to vector<16x8xf32>
    %292 = vector.extract_strided_slice %252 {offsets = [0, 48], sizes = [16, 8], strides = [1, 1]} : vector<16x96xf32> to vector<16x8xf32>
    %293 = vector.extract_strided_slice %252 {offsets = [0, 80], sizes = [16, 8], strides = [1, 1]} : vector<16x96xf32> to vector<16x8xf32>
    %294 = tpu.transpose %292, [1, 0] : vector<16x8xf32> -> vector<8x16xf32>
    %cst_137 = arith.constant dense<0.000000e+00> : vector<16x16xf32>
    %295 = tpu.matmul %291, %294, %cst_137 {dimension_numbers = #tpu.dot_dimension_numbers<[1], [0], [0], [1], [0, 0, 1, 1], [], []>} : vector<16x8xf32>, vector<8x16xf32>, vector<16x16xf32> -> vector<16x16xf32>
    %cst_138 = arith.constant 0.353553385 : f32
    %296 = vector.broadcast %cst_138 : f32 to vector<16x16xf32>
    %297 = arith.mulf %295, %296 : vector<16x16xf32>
    %298 = arith.addf %297, %58 : vector<16x16xf32>
    %cst_139 = arith.constant dense<0xFF800000> : vector<16xf32>
    %299 = vector.multi_reduction <maximumf>, %298, %cst_139 [1] : vector<16x16xf32> to vector<16xf32>
    %300 = vector.shape_cast %299 : vector<16xf32> to vector<16x1xf32>
    %301 = vector.broadcast %300 : vector<16x1xf32> to vector<16x16xf32>
    %302 = arith.subf %298, %301 : vector<16x16xf32>
    %303 = math.exp %302 : vector<16x16xf32>
    %cst_140 = arith.constant dense<0.000000e+00> : vector<16xf32>
    %304 = vector.multi_reduction <add>, %303, %cst_140 [1] : vector<16x16xf32> to vector<16xf32>
    %305 = vector.shape_cast %304 : vector<16xf32> to vector<16x1xf32>
    %306 = tpu.reciprocal %305 {approx = true} : vector<16x1xf32> -> vector<16x1xf32>
    %307 = vector.broadcast %306 : vector<16x1xf32> to vector<16x16xf32>
    %308 = arith.mulf %303, %307 : vector<16x16xf32>
    %cst_141 = arith.constant dense<0.000000e+00> : vector<16x8xf32>
    %309 = tpu.matmul %308, %293, %cst_141 {dimension_numbers = #tpu.dot_dimension_numbers<[1], [0], [0], [1], [0, 0, 1, 1], [], []>} : vector<16x16xf32>, vector<16x8xf32>, vector<16x8xf32> -> vector<16x8xf32>
    %310 = vector.extract_strided_slice %252 {offsets = [0, 24], sizes = [16, 8], strides = [1, 1]} : vector<16x96xf32> to vector<16x8xf32>
    %311 = vector.extract_strided_slice %252 {offsets = [0, 56], sizes = [16, 8], strides = [1, 1]} : vector<16x96xf32> to vector<16x8xf32>
    %312 = vector.extract_strided_slice %252 {offsets = [0, 88], sizes = [16, 8], strides = [1, 1]} : vector<16x96xf32> to vector<16x8xf32>
    %313 = tpu.transpose %311, [1, 0] : vector<16x8xf32> -> vector<8x16xf32>
    %cst_142 = arith.constant dense<0.000000e+00> : vector<16x16xf32>
    %314 = tpu.matmul %310, %313, %cst_142 {dimension_numbers = #tpu.dot_dimension_numbers<[1], [0], [0], [1], [0, 0, 1, 1], [], []>} : vector<16x8xf32>, vector<8x16xf32>, vector<16x16xf32> -> vector<16x16xf32>
    %cst_143 = arith.constant 0.353553385 : f32
    %315 = vector.broadcast %cst_143 : f32 to vector<16x16xf32>
    %316 = arith.mulf %314, %315 : vector<16x16xf32>
    %317 = arith.addf %316, %58 : vector<16x16xf32>
    %cst_144 = arith.constant dense<0xFF800000> : vector<16xf32>
    %318 = vector.multi_reduction <maximumf>, %317, %cst_144 [1] : vector<16x16xf32> to vector<16xf32>
    %319 = vector.shape_cast %318 : vector<16xf32> to vector<16x1xf32>
    %320 = vector.broadcast %319 : vector<16x1xf32> to vector<16x16xf32>
    %321 = arith.subf %317, %320 : vector<16x16xf32>
    %322 = math.exp %321 : vector<16x16xf32>
    %cst_145 = arith.constant dense<0.000000e+00> : vector<16xf32>
    %323 = vector.multi_reduction <add>, %322, %cst_145 [1] : vector<16x16xf32> to vector<16xf32>
    %324 = vector.shape_cast %323 : vector<16xf32> to vector<16x1xf32>
    %325 = tpu.reciprocal %324 {approx = true} : vector<16x1xf32> -> vector<16x1xf32>
    %326 = vector.broadcast %325 : vector<16x1xf32> to vector<16x16xf32>
    %327 = arith.mulf %322, %326 : vector<16x16xf32>
    %cst_146 = arith.constant dense<0.000000e+00> : vector<16x8xf32>
    %328 = tpu.matmul %327, %312, %cst_146 {dimension_numbers = #tpu.dot_dimension_numbers<[1], [0], [0], [1], [0, 0, 1, 1], [], []>} : vector<16x16xf32>, vector<16x8xf32>, vector<16x8xf32> -> vector<16x8xf32>
    %329 = tpu.concatenate %271, %290, %309, %328 in 1 : vector<16x8xf32>, vector<16x8xf32>, vector<16x8xf32>, vector<16x8xf32> -> vector<16x32xf32>
    %c1_147 = arith.constant 1 : index
    %c0_148 = arith.constant 0 : index
    %c0_149 = arith.constant 0 : index
    %330 = vector.load %arg10[%c1_147, %c0_148, %c0_149] : memref<2x32x32xf32, #tpu.memory_space<vmem>>, vector<1x32x32xf32>
    %331 = vector.shape_cast %330 : vector<1x32x32xf32> to vector<32x32xf32>
    %cst_150 = arith.constant dense<0.000000e+00> : vector<16x32xf32>
    %332 = tpu.matmul %329, %331, %cst_150 {dimension_numbers = #tpu.dot_dimension_numbers<[1], [0], [0], [1], [0, 0, 1, 1], [], []>} : vector<16x32xf32>, vector<32x32xf32>, vector<16x32xf32> -> vector<16x32xf32>
    %333 = arith.addf %221, %332 : vector<16x32xf32>
    %c1_151 = arith.constant 1 : index
    %c0_152 = arith.constant 0 : index
    %c0_153 = arith.constant 0 : index
    %334 = vector.load %arg11[%c1_151, %c0_152, %c0_153] : memref<2x1x32xf32, #tpu.memory_space<vmem>>, vector<1x1x32xf32>
    %335 = vector.shape_cast %334 : vector<1x1x32xf32> to vector<1x32xf32>
    %336 = vector.broadcast %335 : vector<1x32xf32> to vector<16x32xf32>
    %337 = arith.addf %333, %336 : vector<16x32xf32>
    %c1_154 = arith.constant 1 : index
    %c0_155 = arith.constant 0 : index
    %c0_156 = arith.constant 0 : index
    %338 = vector.load %arg12[%c1_154, %c0_155, %c0_156] : memref<2x1x32xf32, #tpu.memory_space<vmem>>, vector<1x1x32xf32>
    %339 = vector.shape_cast %338 : vector<1x1x32xf32> to vector<1x32xf32>
    %c1_157 = arith.constant 1 : index
    %c0_158 = arith.constant 0 : index
    %c0_159 = arith.constant 0 : index
    %340 = vector.load %arg13[%c1_157, %c0_158, %c0_159] : memref<2x1x32xf32, #tpu.memory_space<vmem>>, vector<1x1x32xf32>
    %341 = vector.shape_cast %340 : vector<1x1x32xf32> to vector<1x32xf32>
    %cst_160 = arith.constant dense<0.000000e+00> : vector<16xf32>
    %342 = vector.multi_reduction <add>, %337, %cst_160 [1] : vector<16x32xf32> to vector<16xf32>
    %343 = vector.shape_cast %342 : vector<16xf32> to vector<16x1xf32>
    %cst_161 = arith.constant 3.200000e+01 : f32
    %344 = vector.broadcast %cst_161 : f32 to vector<16x1xf32>
    %345 = arith.divf %343, %344 : vector<16x1xf32>
    %346 = vector.broadcast %345 : vector<16x1xf32> to vector<16x32xf32>
    %347 = arith.subf %337, %346 : vector<16x32xf32>
    %348 = arith.mulf %347, %347 : vector<16x32xf32>
    %cst_162 = arith.constant dense<0.000000e+00> : vector<16xf32>
    %349 = vector.multi_reduction <add>, %348, %cst_162 [1] : vector<16x32xf32> to vector<16xf32>
    %350 = vector.shape_cast %349 : vector<16xf32> to vector<16x1xf32>
    %cst_163 = arith.constant 3.200000e+01 : f32
    %351 = vector.broadcast %cst_163 : f32 to vector<16x1xf32>
    %352 = arith.divf %350, %351 : vector<16x1xf32>
    %cst_164 = arith.constant 9.99999974E-6 : f32
    %353 = vector.broadcast %cst_164 : f32 to vector<16x1xf32>
    %354 = arith.addf %352, %353 : vector<16x1xf32>
    %355 = math.rsqrt %354 : vector<16x1xf32>
    %356 = vector.broadcast %355 : vector<16x1xf32> to vector<16x32xf32>
    %357 = arith.mulf %347, %356 : vector<16x32xf32>
    %358 = vector.broadcast %339 : vector<1x32xf32> to vector<16x32xf32>
    %359 = arith.mulf %357, %358 : vector<16x32xf32>
    %360 = vector.broadcast %341 : vector<1x32xf32> to vector<16x32xf32>
    %361 = arith.addf %359, %360 : vector<16x32xf32>
    %c1_165 = arith.constant 1 : index
    %c0_166 = arith.constant 0 : index
    %c0_167 = arith.constant 0 : index
    %362 = vector.load %arg14[%c1_165, %c0_166, %c0_167] : memref<2x32x64xf32, #tpu.memory_space<vmem>>, vector<1x32x64xf32>
    %363 = vector.shape_cast %362 : vector<1x32x64xf32> to vector<32x64xf32>
    %cst_168 = arith.constant dense<0.000000e+00> : vector<16x64xf32>
    %364 = tpu.matmul %361, %363, %cst_168 {dimension_numbers = #tpu.dot_dimension_numbers<[1], [0], [0], [1], [0, 0, 1, 1], [], []>} : vector<16x32xf32>, vector<32x64xf32>, vector<16x64xf32> -> vector<16x64xf32>
    %c1_169 = arith.constant 1 : index
    %c0_170 = arith.constant 0 : index
    %c0_171 = arith.constant 0 : index
    %365 = vector.load %arg15[%c1_169, %c0_170, %c0_171] : memref<2x1x64xf32, #tpu.memory_space<vmem>>, vector<1x1x64xf32>
    %366 = vector.shape_cast %365 : vector<1x1x64xf32> to vector<1x64xf32>
    %367 = vector.broadcast %366 : vector<1x64xf32> to vector<16x64xf32>
    %368 = arith.addf %364, %367 : vector<16x64xf32>
    %cst_172 = arith.constant 1.702000e+00 : f32
    %369 = vector.broadcast %cst_172 : f32 to vector<16x64xf32>
    %370 = arith.mulf %369, %368 : vector<16x64xf32>
    %371 = arith.negf %370 : vector<16x64xf32>
    %372 = math.exp %371 : vector<16x64xf32>
    %cst_173 = arith.constant 1.000000e+00 : f32
    %373 = vector.broadcast %cst_173 : f32 to vector<16x64xf32>
    %374 = arith.addf %373, %372 : vector<16x64xf32>
    %375 = arith.divf %373, %374 : vector<16x64xf32>
    %376 = arith.mulf %368, %375 : vector<16x64xf32>
    %c1_174 = arith.constant 1 : index
    %c0_175 = arith.constant 0 : index
    %c0_176 = arith.constant 0 : index
    %377 = vector.load %arg16[%c1_174, %c0_175, %c0_176] : memref<2x64x32xf32, #tpu.memory_space<vmem>>, vector<1x64x32xf32>
    %378 = vector.shape_cast %377 : vector<1x64x32xf32> to vector<64x32xf32>
    %cst_177 = arith.constant dense<0.000000e+00> : vector<16x32xf32>
    %379 = tpu.matmul %376, %378, %cst_177 {dimension_numbers = #tpu.dot_dimension_numbers<[1], [0], [0], [1], [0, 0, 1, 1], [], []>} : vector<16x64xf32>, vector<64x32xf32>, vector<16x32xf32> -> vector<16x32xf32>
    %380 = arith.addf %337, %379 : vector<16x32xf32>
    %c1_178 = arith.constant 1 : index
    %c0_179 = arith.constant 0 : index
    %c0_180 = arith.constant 0 : index
    %381 = vector.load %arg17[%c1_178, %c0_179, %c0_180] : memref<2x1x32xf32, #tpu.memory_space<vmem>>, vector<1x1x32xf32>
    %382 = vector.shape_cast %381 : vector<1x1x32xf32> to vector<1x32xf32>
    %383 = vector.broadcast %382 : vector<1x32xf32> to vector<16x32xf32>
    %384 = arith.addf %380, %383 : vector<16x32xf32>
    %385 = vector.extract_strided_slice %384 {offsets = [0, 0], sizes = [1, 32], strides = [1, 1]} : vector<16x32xf32> to vector<1x32xf32>
    %386 = vector.extract_strided_slice %384 {offsets = [8, 0], sizes = [1, 32], strides = [1, 1]} : vector<16x32xf32> to vector<1x32xf32>
    %387 = tpu.concatenate %385, %386 in 0 : vector<1x32xf32>, vector<1x32xf32> -> vector<2x32xf32>
    %c0_181 = arith.constant 0 : index
    %c0_182 = arith.constant 0 : index
    %388 = vector.load %arg18[%c0_181, %c0_182] : memref<1x32xf32, #tpu.memory_space<vmem>>, vector<1x32xf32>
    %c0_183 = arith.constant 0 : index
    %c0_184 = arith.constant 0 : index
    %389 = vector.load %arg19[%c0_183, %c0_184] : memref<1x32xf32, #tpu.memory_space<vmem>>, vector<1x32xf32>
    %cst_185 = arith.constant dense<0.000000e+00> : vector<2xf32>
    %390 = vector.multi_reduction <add>, %387, %cst_185 [1] : vector<2x32xf32> to vector<2xf32>
    %391 = vector.shape_cast %390 : vector<2xf32> to vector<2x1xf32>
    %cst_186 = arith.constant 3.200000e+01 : f32
    %392 = vector.broadcast %cst_186 : f32 to vector<2x1xf32>
    %393 = arith.divf %391, %392 : vector<2x1xf32>
    %394 = vector.broadcast %393 : vector<2x1xf32> to vector<2x32xf32>
    %395 = arith.subf %387, %394 : vector<2x32xf32>
    %396 = arith.mulf %395, %395 : vector<2x32xf32>
    %cst_187 = arith.constant dense<0.000000e+00> : vector<2xf32>
    %397 = vector.multi_reduction <add>, %396, %cst_187 [1] : vector<2x32xf32> to vector<2xf32>
    %398 = vector.shape_cast %397 : vector<2xf32> to vector<2x1xf32>
    %cst_188 = arith.constant 3.200000e+01 : f32
    %399 = vector.broadcast %cst_188 : f32 to vector<2x1xf32>
    %400 = arith.divf %398, %399 : vector<2x1xf32>
    %cst_189 = arith.constant 9.99999974E-6 : f32
    %401 = vector.broadcast %cst_189 : f32 to vector<2x1xf32>
    %402 = arith.addf %400, %401 : vector<2x1xf32>
    %403 = math.rsqrt %402 : vector<2x1xf32>
    %404 = vector.broadcast %403 : vector<2x1xf32> to vector<2x32xf32>
    %405 = arith.mulf %395, %404 : vector<2x32xf32>
    %406 = vector.broadcast %388 : vector<1x32xf32> to vector<2x32xf32>
    %407 = arith.mulf %405, %406 : vector<2x32xf32>
    %408 = vector.broadcast %389 : vector<1x32xf32> to vector<2x32xf32>
    %409 = arith.addf %407, %408 : vector<2x32xf32>
    %c0_190 = arith.constant 0 : index
    %c0_191 = arith.constant 0 : index
    %410 = vector.load %arg20[%c0_190, %c0_191] : memref<32x32xf32, #tpu.memory_space<vmem>>, vector<32x32xf32>
    %cst_192 = arith.constant dense<0.000000e+00> : vector<2x32xf32>
    %411 = tpu.matmul %409, %410, %cst_192 {dimension_numbers = #tpu.dot_dimension_numbers<[1], [0], [0], [1], [0, 0, 1, 1], [], []>} : vector<2x32xf32>, vector<32x32xf32>, vector<2x32xf32> -> vector<2x32xf32>
    %c0_193 = arith.constant 0 : index
    %c0_194 = arith.constant 0 : index
    %412 = vector.load %arg21[%c0_193, %c0_194] : memref<24x32xf32, #tpu.memory_space<vmem>>, vector<24x32xf32>
    %413 = tpu.iota {dimensions = array<i32: 0>} : vector<24x24xi32>
    %414 = tpu.iota {dimensions = array<i32: 1>} : vector<24x24xi32>
    %c3_i32_195 = arith.constant 3 : i32
    %415 = vector.broadcast %c3_i32_195 : i32 to vector<24x24xi32>
    %416 = arith.shrsi %413, %415 : vector<24x24xi32>
    %c3_i32_196 = arith.constant 3 : i32
    %417 = vector.broadcast %c3_i32_196 : i32 to vector<24x24xi32>
    %418 = arith.shrsi %414, %417 : vector<24x24xi32>
    %419 = arith.cmpi eq, %416, %418 : vector<24x24xi32>
    %c7_i32_197 = arith.constant 7 : i32
    %420 = vector.broadcast %c7_i32_197 : i32 to vector<24x24xi32>
    %421 = arith.andi %413, %420 : vector<24x24xi32>
    %c7_i32_198 = arith.constant 7 : i32
    %422 = vector.broadcast %c7_i32_198 : i32 to vector<24x24xi32>
    %423 = arith.andi %414, %422 : vector<24x24xi32>
    %424 = arith.cmpi sge, %421, %423 : vector<24x24xi32>
    %c0_199 = arith.constant 0 : index
    %c0_200 = arith.constant 0 : index
    %425 = vector.load %arg22[%c0_199, %c0_200] : memref<1x24xf32, #tpu.memory_space<vmem>>, vector<1x24xf32>
    %cst_201 = arith.constant 5.000000e-01 : f32
    %426 = vector.broadcast %cst_201 : f32 to vector<1x24xf32>
    %427 = arith.cmpf ogt, %425, %426 : vector<1x24xf32>
    %428 = arith.andi %419, %424 : vector<24x24xi1>
    %429 = vector.broadcast %427 : vector<1x24xi1> to vector<24x24xi1>
    %430 = arith.andi %428, %429 : vector<24x24xi1>
    %cst_202 = arith.constant 0.000000e+00 : f32
    %cst_203 = arith.constant -1.000000e+09 : f32
    %431 = vector.broadcast %cst_202 : f32 to vector<24x24xf32>
    %432 = vector.broadcast %cst_203 : f32 to vector<24x24xf32>
    %433 = arith.select %430, %431, %432 : vector<24x24xi1>, vector<24x24xf32>
    %c0_204 = arith.constant 0 : index
    %c0_205 = arith.constant 0 : index
    %c0_206 = arith.constant 0 : index
    %434 = vector.load %arg23[%c0_204, %c0_205, %c0_206] : memref<2x1x32xf32, #tpu.memory_space<vmem>>, vector<1x1x32xf32>
    %435 = vector.shape_cast %434 : vector<1x1x32xf32> to vector<1x32xf32>
    %c0_207 = arith.constant 0 : index
    %c0_208 = arith.constant 0 : index
    %c0_209 = arith.constant 0 : index
    %436 = vector.load %arg24[%c0_207, %c0_208, %c0_209] : memref<2x1x32xf32, #tpu.memory_space<vmem>>, vector<1x1x32xf32>
    %437 = vector.shape_cast %436 : vector<1x1x32xf32> to vector<1x32xf32>
    %cst_210 = arith.constant dense<0.000000e+00> : vector<24xf32>
    %438 = vector.multi_reduction <add>, %412, %cst_210 [1] : vector<24x32xf32> to vector<24xf32>
    %439 = vector.shape_cast %438 : vector<24xf32> to vector<24x1xf32>
    %cst_211 = arith.constant 3.200000e+01 : f32
    %440 = vector.broadcast %cst_211 : f32 to vector<24x1xf32>
    %441 = arith.divf %439, %440 : vector<24x1xf32>
    %442 = vector.broadcast %441 : vector<24x1xf32> to vector<24x32xf32>
    %443 = arith.subf %412, %442 : vector<24x32xf32>
    %444 = arith.mulf %443, %443 : vector<24x32xf32>
    %cst_212 = arith.constant dense<0.000000e+00> : vector<24xf32>
    %445 = vector.multi_reduction <add>, %444, %cst_212 [1] : vector<24x32xf32> to vector<24xf32>
    %446 = vector.shape_cast %445 : vector<24xf32> to vector<24x1xf32>
    %cst_213 = arith.constant 3.200000e+01 : f32
    %447 = vector.broadcast %cst_213 : f32 to vector<24x1xf32>
    %448 = arith.divf %446, %447 : vector<24x1xf32>
    %cst_214 = arith.constant 9.99999974E-6 : f32
    %449 = vector.broadcast %cst_214 : f32 to vector<24x1xf32>
    %450 = arith.addf %448, %449 : vector<24x1xf32>
    %451 = math.rsqrt %450 : vector<24x1xf32>
    %452 = vector.broadcast %451 : vector<24x1xf32> to vector<24x32xf32>
    %453 = arith.mulf %443, %452 : vector<24x32xf32>
    %454 = vector.broadcast %435 : vector<1x32xf32> to vector<24x32xf32>
    %455 = arith.mulf %453, %454 : vector<24x32xf32>
    %456 = vector.broadcast %437 : vector<1x32xf32> to vector<24x32xf32>
    %457 = arith.addf %455, %456 : vector<24x32xf32>
    %c0_215 = arith.constant 0 : index
    %c0_216 = arith.constant 0 : index
    %c0_217 = arith.constant 0 : index
    %458 = vector.load %arg25[%c0_215, %c0_216, %c0_217] : memref<2x32x96xf32, #tpu.memory_space<vmem>>, vector<1x32x96xf32>
    %459 = vector.shape_cast %458 : vector<1x32x96xf32> to vector<32x96xf32>
    %cst_218 = arith.constant dense<0.000000e+00> : vector<24x96xf32>
    %460 = tpu.matmul %457, %459, %cst_218 {dimension_numbers = #tpu.dot_dimension_numbers<[1], [0], [0], [1], [0, 0, 1, 1], [], []>} : vector<24x32xf32>, vector<32x96xf32>, vector<24x96xf32> -> vector<24x96xf32>
    %c0_219 = arith.constant 0 : index
    %c0_220 = arith.constant 0 : index
    %c0_221 = arith.constant 0 : index
    %461 = vector.load %arg26[%c0_219, %c0_220, %c0_221] : memref<2x1x96xf32, #tpu.memory_space<vmem>>, vector<1x1x96xf32>
    %462 = vector.shape_cast %461 : vector<1x1x96xf32> to vector<1x96xf32>
    %463 = vector.broadcast %462 : vector<1x96xf32> to vector<24x96xf32>
    %464 = arith.addf %460, %463 : vector<24x96xf32>
    %465 = vector.extract_strided_slice %464 {offsets = [0, 0], sizes = [24, 8], strides = [1, 1]} : vector<24x96xf32> to vector<24x8xf32>
    %466 = vector.extract_strided_slice %464 {offsets = [0, 32], sizes = [24, 8], strides = [1, 1]} : vector<24x96xf32> to vector<24x8xf32>
    %467 = vector.extract_strided_slice %464 {offsets = [0, 64], sizes = [24, 8], strides = [1, 1]} : vector<24x96xf32> to vector<24x8xf32>
    %468 = tpu.transpose %466, [1, 0] : vector<24x8xf32> -> vector<8x24xf32>
    %cst_222 = arith.constant dense<0.000000e+00> : vector<24x24xf32>
    %469 = tpu.matmul %465, %468, %cst_222 {dimension_numbers = #tpu.dot_dimension_numbers<[1], [0], [0], [1], [0, 0, 1, 1], [], []>} : vector<24x8xf32>, vector<8x24xf32>, vector<24x24xf32> -> vector<24x24xf32>
    %cst_223 = arith.constant 0.353553385 : f32
    %470 = vector.broadcast %cst_223 : f32 to vector<24x24xf32>
    %471 = arith.mulf %469, %470 : vector<24x24xf32>
    %472 = arith.addf %471, %433 : vector<24x24xf32>
    %cst_224 = arith.constant dense<0xFF800000> : vector<24xf32>
    %473 = vector.multi_reduction <maximumf>, %472, %cst_224 [1] : vector<24x24xf32> to vector<24xf32>
    %474 = vector.shape_cast %473 : vector<24xf32> to vector<24x1xf32>
    %475 = vector.broadcast %474 : vector<24x1xf32> to vector<24x24xf32>
    %476 = arith.subf %472, %475 : vector<24x24xf32>
    %477 = math.exp %476 : vector<24x24xf32>
    %cst_225 = arith.constant dense<0.000000e+00> : vector<24xf32>
    %478 = vector.multi_reduction <add>, %477, %cst_225 [1] : vector<24x24xf32> to vector<24xf32>
    %479 = vector.shape_cast %478 : vector<24xf32> to vector<24x1xf32>
    %480 = tpu.reciprocal %479 {approx = true} : vector<24x1xf32> -> vector<24x1xf32>
    %481 = vector.broadcast %480 : vector<24x1xf32> to vector<24x24xf32>
    %482 = arith.mulf %477, %481 : vector<24x24xf32>
    %cst_226 = arith.constant dense<0.000000e+00> : vector<24x8xf32>
    %483 = tpu.matmul %482, %467, %cst_226 {dimension_numbers = #tpu.dot_dimension_numbers<[1], [0], [0], [1], [0, 0, 1, 1], [], []>} : vector<24x24xf32>, vector<24x8xf32>, vector<24x8xf32> -> vector<24x8xf32>
    %484 = vector.extract_strided_slice %464 {offsets = [0, 8], sizes = [24, 8], strides = [1, 1]} : vector<24x96xf32> to vector<24x8xf32>
    %485 = vector.extract_strided_slice %464 {offsets = [0, 40], sizes = [24, 8], strides = [1, 1]} : vector<24x96xf32> to vector<24x8xf32>
    %486 = vector.extract_strided_slice %464 {offsets = [0, 72], sizes = [24, 8], strides = [1, 1]} : vector<24x96xf32> to vector<24x8xf32>
    %487 = tpu.transpose %485, [1, 0] : vector<24x8xf32> -> vector<8x24xf32>
    %cst_227 = arith.constant dense<0.000000e+00> : vector<24x24xf32>
    %488 = tpu.matmul %484, %487, %cst_227 {dimension_numbers = #tpu.dot_dimension_numbers<[1], [0], [0], [1], [0, 0, 1, 1], [], []>} : vector<24x8xf32>, vector<8x24xf32>, vector<24x24xf32> -> vector<24x24xf32>
    %cst_228 = arith.constant 0.353553385 : f32
    %489 = vector.broadcast %cst_228 : f32 to vector<24x24xf32>
    %490 = arith.mulf %488, %489 : vector<24x24xf32>
    %491 = arith.addf %490, %433 : vector<24x24xf32>
    %cst_229 = arith.constant dense<0xFF800000> : vector<24xf32>
    %492 = vector.multi_reduction <maximumf>, %491, %cst_229 [1] : vector<24x24xf32> to vector<24xf32>
    %493 = vector.shape_cast %492 : vector<24xf32> to vector<24x1xf32>
    %494 = vector.broadcast %493 : vector<24x1xf32> to vector<24x24xf32>
    %495 = arith.subf %491, %494 : vector<24x24xf32>
    %496 = math.exp %495 : vector<24x24xf32>
    %cst_230 = arith.constant dense<0.000000e+00> : vector<24xf32>
    %497 = vector.multi_reduction <add>, %496, %cst_230 [1] : vector<24x24xf32> to vector<24xf32>
    %498 = vector.shape_cast %497 : vector<24xf32> to vector<24x1xf32>
    %499 = tpu.reciprocal %498 {approx = true} : vector<24x1xf32> -> vector<24x1xf32>
    %500 = vector.broadcast %499 : vector<24x1xf32> to vector<24x24xf32>
    %501 = arith.mulf %496, %500 : vector<24x24xf32>
    %cst_231 = arith.constant dense<0.000000e+00> : vector<24x8xf32>
    %502 = tpu.matmul %501, %486, %cst_231 {dimension_numbers = #tpu.dot_dimension_numbers<[1], [0], [0], [1], [0, 0, 1, 1], [], []>} : vector<24x24xf32>, vector<24x8xf32>, vector<24x8xf32> -> vector<24x8xf32>
    %503 = vector.extract_strided_slice %464 {offsets = [0, 16], sizes = [24, 8], strides = [1, 1]} : vector<24x96xf32> to vector<24x8xf32>
    %504 = vector.extract_strided_slice %464 {offsets = [0, 48], sizes = [24, 8], strides = [1, 1]} : vector<24x96xf32> to vector<24x8xf32>
    %505 = vector.extract_strided_slice %464 {offsets = [0, 80], sizes = [24, 8], strides = [1, 1]} : vector<24x96xf32> to vector<24x8xf32>
    %506 = tpu.transpose %504, [1, 0] : vector<24x8xf32> -> vector<8x24xf32>
    %cst_232 = arith.constant dense<0.000000e+00> : vector<24x24xf32>
    %507 = tpu.matmul %503, %506, %cst_232 {dimension_numbers = #tpu.dot_dimension_numbers<[1], [0], [0], [1], [0, 0, 1, 1], [], []>} : vector<24x8xf32>, vector<8x24xf32>, vector<24x24xf32> -> vector<24x24xf32>
    %cst_233 = arith.constant 0.353553385 : f32
    %508 = vector.broadcast %cst_233 : f32 to vector<24x24xf32>
    %509 = arith.mulf %507, %508 : vector<24x24xf32>
    %510 = arith.addf %509, %433 : vector<24x24xf32>
    %cst_234 = arith.constant dense<0xFF800000> : vector<24xf32>
    %511 = vector.multi_reduction <maximumf>, %510, %cst_234 [1] : vector<24x24xf32> to vector<24xf32>
    %512 = vector.shape_cast %511 : vector<24xf32> to vector<24x1xf32>
    %513 = vector.broadcast %512 : vector<24x1xf32> to vector<24x24xf32>
    %514 = arith.subf %510, %513 : vector<24x24xf32>
    %515 = math.exp %514 : vector<24x24xf32>
    %cst_235 = arith.constant dense<0.000000e+00> : vector<24xf32>
    %516 = vector.multi_reduction <add>, %515, %cst_235 [1] : vector<24x24xf32> to vector<24xf32>
    %517 = vector.shape_cast %516 : vector<24xf32> to vector<24x1xf32>
    %518 = tpu.reciprocal %517 {approx = true} : vector<24x1xf32> -> vector<24x1xf32>
    %519 = vector.broadcast %518 : vector<24x1xf32> to vector<24x24xf32>
    %520 = arith.mulf %515, %519 : vector<24x24xf32>
    %cst_236 = arith.constant dense<0.000000e+00> : vector<24x8xf32>
    %521 = tpu.matmul %520, %505, %cst_236 {dimension_numbers = #tpu.dot_dimension_numbers<[1], [0], [0], [1], [0, 0, 1, 1], [], []>} : vector<24x24xf32>, vector<24x8xf32>, vector<24x8xf32> -> vector<24x8xf32>
    %522 = vector.extract_strided_slice %464 {offsets = [0, 24], sizes = [24, 8], strides = [1, 1]} : vector<24x96xf32> to vector<24x8xf32>
    %523 = vector.extract_strided_slice %464 {offsets = [0, 56], sizes = [24, 8], strides = [1, 1]} : vector<24x96xf32> to vector<24x8xf32>
    %524 = vector.extract_strided_slice %464 {offsets = [0, 88], sizes = [24, 8], strides = [1, 1]} : vector<24x96xf32> to vector<24x8xf32>
    %525 = tpu.transpose %523, [1, 0] : vector<24x8xf32> -> vector<8x24xf32>
    %cst_237 = arith.constant dense<0.000000e+00> : vector<24x24xf32>
    %526 = tpu.matmul %522, %525, %cst_237 {dimension_numbers = #tpu.dot_dimension_numbers<[1], [0], [0], [1], [0, 0, 1, 1], [], []>} : vector<24x8xf32>, vector<8x24xf32>, vector<24x24xf32> -> vector<24x24xf32>
    %cst_238 = arith.constant 0.353553385 : f32
    %527 = vector.broadcast %cst_238 : f32 to vector<24x24xf32>
    %528 = arith.mulf %526, %527 : vector<24x24xf32>
    %529 = arith.addf %528, %433 : vector<24x24xf32>
    %cst_239 = arith.constant dense<0xFF800000> : vector<24xf32>
    %530 = vector.multi_reduction <maximumf>, %529, %cst_239 [1] : vector<24x24xf32> to vector<24xf32>
    %531 = vector.shape_cast %530 : vector<24xf32> to vector<24x1xf32>
    %532 = vector.broadcast %531 : vector<24x1xf32> to vector<24x24xf32>
    %533 = arith.subf %529, %532 : vector<24x24xf32>
    %534 = math.exp %533 : vector<24x24xf32>
    %cst_240 = arith.constant dense<0.000000e+00> : vector<24xf32>
    %535 = vector.multi_reduction <add>, %534, %cst_240 [1] : vector<24x24xf32> to vector<24xf32>
    %536 = vector.shape_cast %535 : vector<24xf32> to vector<24x1xf32>
    %537 = tpu.reciprocal %536 {approx = true} : vector<24x1xf32> -> vector<24x1xf32>
    %538 = vector.broadcast %537 : vector<24x1xf32> to vector<24x24xf32>
    %539 = arith.mulf %534, %538 : vector<24x24xf32>
    %cst_241 = arith.constant dense<0.000000e+00> : vector<24x8xf32>
    %540 = tpu.matmul %539, %524, %cst_241 {dimension_numbers = #tpu.dot_dimension_numbers<[1], [0], [0], [1], [0, 0, 1, 1], [], []>} : vector<24x24xf32>, vector<24x8xf32>, vector<24x8xf32> -> vector<24x8xf32>
    %541 = tpu.concatenate %483, %502, %521, %540 in 1 : vector<24x8xf32>, vector<24x8xf32>, vector<24x8xf32>, vector<24x8xf32> -> vector<24x32xf32>
    %c0_242 = arith.constant 0 : index
    %c0_243 = arith.constant 0 : index
    %c0_244 = arith.constant 0 : index
    %542 = vector.load %arg27[%c0_242, %c0_243, %c0_244] : memref<2x32x32xf32, #tpu.memory_space<vmem>>, vector<1x32x32xf32>
    %543 = vector.shape_cast %542 : vector<1x32x32xf32> to vector<32x32xf32>
    %cst_245 = arith.constant dense<0.000000e+00> : vector<24x32xf32>
    %544 = tpu.matmul %541, %543, %cst_245 {dimension_numbers = #tpu.dot_dimension_numbers<[1], [0], [0], [1], [0, 0, 1, 1], [], []>} : vector<24x32xf32>, vector<32x32xf32>, vector<24x32xf32> -> vector<24x32xf32>
    %545 = arith.addf %412, %544 : vector<24x32xf32>
    %c0_246 = arith.constant 0 : index
    %c0_247 = arith.constant 0 : index
    %c0_248 = arith.constant 0 : index
    %546 = vector.load %arg28[%c0_246, %c0_247, %c0_248] : memref<2x1x32xf32, #tpu.memory_space<vmem>>, vector<1x1x32xf32>
    %547 = vector.shape_cast %546 : vector<1x1x32xf32> to vector<1x32xf32>
    %548 = vector.broadcast %547 : vector<1x32xf32> to vector<24x32xf32>
    %549 = arith.addf %545, %548 : vector<24x32xf32>
    %c0_249 = arith.constant 0 : index
    %c0_250 = arith.constant 0 : index
    %c0_251 = arith.constant 0 : index
    %550 = vector.load %arg29[%c0_249, %c0_250, %c0_251] : memref<2x1x32xf32, #tpu.memory_space<vmem>>, vector<1x1x32xf32>
    %551 = vector.shape_cast %550 : vector<1x1x32xf32> to vector<1x32xf32>
    %c0_252 = arith.constant 0 : index
    %c0_253 = arith.constant 0 : index
    %c0_254 = arith.constant 0 : index
    %552 = vector.load %arg30[%c0_252, %c0_253, %c0_254] : memref<2x1x32xf32, #tpu.memory_space<vmem>>, vector<1x1x32xf32>
    %553 = vector.shape_cast %552 : vector<1x1x32xf32> to vector<1x32xf32>
    %cst_255 = arith.constant dense<0.000000e+00> : vector<24xf32>
    %554 = vector.multi_reduction <add>, %549, %cst_255 [1] : vector<24x32xf32> to vector<24xf32>
    %555 = vector.shape_cast %554 : vector<24xf32> to vector<24x1xf32>
    %cst_256 = arith.constant 3.200000e+01 : f32
    %556 = vector.broadcast %cst_256 : f32 to vector<24x1xf32>
    %557 = arith.divf %555, %556 : vector<24x1xf32>
    %558 = vector.broadcast %557 : vector<24x1xf32> to vector<24x32xf32>
    %559 = arith.subf %549, %558 : vector<24x32xf32>
    %560 = arith.mulf %559, %559 : vector<24x32xf32>
    %cst_257 = arith.constant dense<0.000000e+00> : vector<24xf32>
    %561 = vector.multi_reduction <add>, %560, %cst_257 [1] : vector<24x32xf32> to vector<24xf32>
    %562 = vector.shape_cast %561 : vector<24xf32> to vector<24x1xf32>
    %cst_258 = arith.constant 3.200000e+01 : f32
    %563 = vector.broadcast %cst_258 : f32 to vector<24x1xf32>
    %564 = arith.divf %562, %563 : vector<24x1xf32>
    %cst_259 = arith.constant 9.99999974E-6 : f32
    %565 = vector.broadcast %cst_259 : f32 to vector<24x1xf32>
    %566 = arith.addf %564, %565 : vector<24x1xf32>
    %567 = math.rsqrt %566 : vector<24x1xf32>
    %568 = vector.broadcast %567 : vector<24x1xf32> to vector<24x32xf32>
    %569 = arith.mulf %559, %568 : vector<24x32xf32>
    %570 = vector.broadcast %551 : vector<1x32xf32> to vector<24x32xf32>
    %571 = arith.mulf %569, %570 : vector<24x32xf32>
    %572 = vector.broadcast %553 : vector<1x32xf32> to vector<24x32xf32>
    %573 = arith.addf %571, %572 : vector<24x32xf32>
    %c0_260 = arith.constant 0 : index
    %c0_261 = arith.constant 0 : index
    %c0_262 = arith.constant 0 : index
    %574 = vector.load %arg31[%c0_260, %c0_261, %c0_262] : memref<2x32x64xf32, #tpu.memory_space<vmem>>, vector<1x32x64xf32>
    %575 = vector.shape_cast %574 : vector<1x32x64xf32> to vector<32x64xf32>
    %cst_263 = arith.constant dense<0.000000e+00> : vector<24x64xf32>
    %576 = tpu.matmul %573, %575, %cst_263 {dimension_numbers = #tpu.dot_dimension_numbers<[1], [0], [0], [1], [0, 0, 1, 1], [], []>} : vector<24x32xf32>, vector<32x64xf32>, vector<24x64xf32> -> vector<24x64xf32>
    %c0_264 = arith.constant 0 : index
    %c0_265 = arith.constant 0 : index
    %c0_266 = arith.constant 0 : index
    %577 = vector.load %arg32[%c0_264, %c0_265, %c0_266] : memref<2x1x64xf32, #tpu.memory_space<vmem>>, vector<1x1x64xf32>
    %578 = vector.shape_cast %577 : vector<1x1x64xf32> to vector<1x64xf32>
    %579 = vector.broadcast %578 : vector<1x64xf32> to vector<24x64xf32>
    %580 = arith.addf %576, %579 : vector<24x64xf32>
    %cst_267 = arith.constant 1.702000e+00 : f32
    %581 = vector.broadcast %cst_267 : f32 to vector<24x64xf32>
    %582 = arith.mulf %581, %580 : vector<24x64xf32>
    %583 = arith.negf %582 : vector<24x64xf32>
    %584 = math.exp %583 : vector<24x64xf32>
    %cst_268 = arith.constant 1.000000e+00 : f32
    %585 = vector.broadcast %cst_268 : f32 to vector<24x64xf32>
    %586 = arith.addf %585, %584 : vector<24x64xf32>
    %587 = arith.divf %585, %586 : vector<24x64xf32>
    %588 = arith.mulf %580, %587 : vector<24x64xf32>
    %c0_269 = arith.constant 0 : index
    %c0_270 = arith.constant 0 : index
    %c0_271 = arith.constant 0 : index
    %589 = vector.load %arg33[%c0_269, %c0_270, %c0_271] : memref<2x64x32xf32, #tpu.memory_space<vmem>>, vector<1x64x32xf32>
    %590 = vector.shape_cast %589 : vector<1x64x32xf32> to vector<64x32xf32>
    %cst_272 = arith.constant dense<0.000000e+00> : vector<24x32xf32>
    %591 = tpu.matmul %588, %590, %cst_272 {dimension_numbers = #tpu.dot_dimension_numbers<[1], [0], [0], [1], [0, 0, 1, 1], [], []>} : vector<24x64xf32>, vector<64x32xf32>, vector<24x32xf32> -> vector<24x32xf32>
    %592 = arith.addf %549, %591 : vector<24x32xf32>
    %c0_273 = arith.constant 0 : index
    %c0_274 = arith.constant 0 : index
    %c0_275 = arith.constant 0 : index
    %593 = vector.load %arg34[%c0_273, %c0_274, %c0_275] : memref<2x1x32xf32, #tpu.memory_space<vmem>>, vector<1x1x32xf32>
    %594 = vector.shape_cast %593 : vector<1x1x32xf32> to vector<1x32xf32>
    %595 = vector.broadcast %594 : vector<1x32xf32> to vector<24x32xf32>
    %596 = arith.addf %592, %595 : vector<24x32xf32>
    %c1_276 = arith.constant 1 : index
    %c0_277 = arith.constant 0 : index
    %c0_278 = arith.constant 0 : index
    %597 = vector.load %arg23[%c1_276, %c0_277, %c0_278] : memref<2x1x32xf32, #tpu.memory_space<vmem>>, vector<1x1x32xf32>
    %598 = vector.shape_cast %597 : vector<1x1x32xf32> to vector<1x32xf32>
    %c1_279 = arith.constant 1 : index
    %c0_280 = arith.constant 0 : index
    %c0_281 = arith.constant 0 : index
    %599 = vector.load %arg24[%c1_279, %c0_280, %c0_281] : memref<2x1x32xf32, #tpu.memory_space<vmem>>, vector<1x1x32xf32>
    %600 = vector.shape_cast %599 : vector<1x1x32xf32> to vector<1x32xf32>
    %cst_282 = arith.constant dense<0.000000e+00> : vector<24xf32>
    %601 = vector.multi_reduction <add>, %596, %cst_282 [1] : vector<24x32xf32> to vector<24xf32>
    %602 = vector.shape_cast %601 : vector<24xf32> to vector<24x1xf32>
    %cst_283 = arith.constant 3.200000e+01 : f32
    %603 = vector.broadcast %cst_283 : f32 to vector<24x1xf32>
    %604 = arith.divf %602, %603 : vector<24x1xf32>
    %605 = vector.broadcast %604 : vector<24x1xf32> to vector<24x32xf32>
    %606 = arith.subf %596, %605 : vector<24x32xf32>
    %607 = arith.mulf %606, %606 : vector<24x32xf32>
    %cst_284 = arith.constant dense<0.000000e+00> : vector<24xf32>
    %608 = vector.multi_reduction <add>, %607, %cst_284 [1] : vector<24x32xf32> to vector<24xf32>
    %609 = vector.shape_cast %608 : vector<24xf32> to vector<24x1xf32>
    %cst_285 = arith.constant 3.200000e+01 : f32
    %610 = vector.broadcast %cst_285 : f32 to vector<24x1xf32>
    %611 = arith.divf %609, %610 : vector<24x1xf32>
    %cst_286 = arith.constant 9.99999974E-6 : f32
    %612 = vector.broadcast %cst_286 : f32 to vector<24x1xf32>
    %613 = arith.addf %611, %612 : vector<24x1xf32>
    %614 = math.rsqrt %613 : vector<24x1xf32>
    %615 = vector.broadcast %614 : vector<24x1xf32> to vector<24x32xf32>
    %616 = arith.mulf %606, %615 : vector<24x32xf32>
    %617 = vector.broadcast %598 : vector<1x32xf32> to vector<24x32xf32>
    %618 = arith.mulf %616, %617 : vector<24x32xf32>
    %619 = vector.broadcast %600 : vector<1x32xf32> to vector<24x32xf32>
    %620 = arith.addf %618, %619 : vector<24x32xf32>
    %c1_287 = arith.constant 1 : index
    %c0_288 = arith.constant 0 : index
    %c0_289 = arith.constant 0 : index
    %621 = vector.load %arg25[%c1_287, %c0_288, %c0_289] : memref<2x32x96xf32, #tpu.memory_space<vmem>>, vector<1x32x96xf32>
    %622 = vector.shape_cast %621 : vector<1x32x96xf32> to vector<32x96xf32>
    %cst_290 = arith.constant dense<0.000000e+00> : vector<24x96xf32>
    %623 = tpu.matmul %620, %622, %cst_290 {dimension_numbers = #tpu.dot_dimension_numbers<[1], [0], [0], [1], [0, 0, 1, 1], [], []>} : vector<24x32xf32>, vector<32x96xf32>, vector<24x96xf32> -> vector<24x96xf32>
    %c1_291 = arith.constant 1 : index
    %c0_292 = arith.constant 0 : index
    %c0_293 = arith.constant 0 : index
    %624 = vector.load %arg26[%c1_291, %c0_292, %c0_293] : memref<2x1x96xf32, #tpu.memory_space<vmem>>, vector<1x1x96xf32>
    %625 = vector.shape_cast %624 : vector<1x1x96xf32> to vector<1x96xf32>
    %626 = vector.broadcast %625 : vector<1x96xf32> to vector<24x96xf32>
    %627 = arith.addf %623, %626 : vector<24x96xf32>
    %628 = vector.extract_strided_slice %627 {offsets = [0, 0], sizes = [24, 8], strides = [1, 1]} : vector<24x96xf32> to vector<24x8xf32>
    %629 = vector.extract_strided_slice %627 {offsets = [0, 32], sizes = [24, 8], strides = [1, 1]} : vector<24x96xf32> to vector<24x8xf32>
    %630 = vector.extract_strided_slice %627 {offsets = [0, 64], sizes = [24, 8], strides = [1, 1]} : vector<24x96xf32> to vector<24x8xf32>
    %631 = tpu.transpose %629, [1, 0] : vector<24x8xf32> -> vector<8x24xf32>
    %cst_294 = arith.constant dense<0.000000e+00> : vector<24x24xf32>
    %632 = tpu.matmul %628, %631, %cst_294 {dimension_numbers = #tpu.dot_dimension_numbers<[1], [0], [0], [1], [0, 0, 1, 1], [], []>} : vector<24x8xf32>, vector<8x24xf32>, vector<24x24xf32> -> vector<24x24xf32>
    %cst_295 = arith.constant 0.353553385 : f32
    %633 = vector.broadcast %cst_295 : f32 to vector<24x24xf32>
    %634 = arith.mulf %632, %633 : vector<24x24xf32>
    %635 = arith.addf %634, %433 : vector<24x24xf32>
    %cst_296 = arith.constant dense<0xFF800000> : vector<24xf32>
    %636 = vector.multi_reduction <maximumf>, %635, %cst_296 [1] : vector<24x24xf32> to vector<24xf32>
    %637 = vector.shape_cast %636 : vector<24xf32> to vector<24x1xf32>
    %638 = vector.broadcast %637 : vector<24x1xf32> to vector<24x24xf32>
    %639 = arith.subf %635, %638 : vector<24x24xf32>
    %640 = math.exp %639 : vector<24x24xf32>
    %cst_297 = arith.constant dense<0.000000e+00> : vector<24xf32>
    %641 = vector.multi_reduction <add>, %640, %cst_297 [1] : vector<24x24xf32> to vector<24xf32>
    %642 = vector.shape_cast %641 : vector<24xf32> to vector<24x1xf32>
    %643 = tpu.reciprocal %642 {approx = true} : vector<24x1xf32> -> vector<24x1xf32>
    %644 = vector.broadcast %643 : vector<24x1xf32> to vector<24x24xf32>
    %645 = arith.mulf %640, %644 : vector<24x24xf32>
    %cst_298 = arith.constant dense<0.000000e+00> : vector<24x8xf32>
    %646 = tpu.matmul %645, %630, %cst_298 {dimension_numbers = #tpu.dot_dimension_numbers<[1], [0], [0], [1], [0, 0, 1, 1], [], []>} : vector<24x24xf32>, vector<24x8xf32>, vector<24x8xf32> -> vector<24x8xf32>
    %647 = vector.extract_strided_slice %627 {offsets = [0, 8], sizes = [24, 8], strides = [1, 1]} : vector<24x96xf32> to vector<24x8xf32>
    %648 = vector.extract_strided_slice %627 {offsets = [0, 40], sizes = [24, 8], strides = [1, 1]} : vector<24x96xf32> to vector<24x8xf32>
    %649 = vector.extract_strided_slice %627 {offsets = [0, 72], sizes = [24, 8], strides = [1, 1]} : vector<24x96xf32> to vector<24x8xf32>
    %650 = tpu.transpose %648, [1, 0] : vector<24x8xf32> -> vector<8x24xf32>
    %cst_299 = arith.constant dense<0.000000e+00> : vector<24x24xf32>
    %651 = tpu.matmul %647, %650, %cst_299 {dimension_numbers = #tpu.dot_dimension_numbers<[1], [0], [0], [1], [0, 0, 1, 1], [], []>} : vector<24x8xf32>, vector<8x24xf32>, vector<24x24xf32> -> vector<24x24xf32>
    %cst_300 = arith.constant 0.353553385 : f32
    %652 = vector.broadcast %cst_300 : f32 to vector<24x24xf32>
    %653 = arith.mulf %651, %652 : vector<24x24xf32>
    %654 = arith.addf %653, %433 : vector<24x24xf32>
    %cst_301 = arith.constant dense<0xFF800000> : vector<24xf32>
    %655 = vector.multi_reduction <maximumf>, %654, %cst_301 [1] : vector<24x24xf32> to vector<24xf32>
    %656 = vector.shape_cast %655 : vector<24xf32> to vector<24x1xf32>
    %657 = vector.broadcast %656 : vector<24x1xf32> to vector<24x24xf32>
    %658 = arith.subf %654, %657 : vector<24x24xf32>
    %659 = math.exp %658 : vector<24x24xf32>
    %cst_302 = arith.constant dense<0.000000e+00> : vector<24xf32>
    %660 = vector.multi_reduction <add>, %659, %cst_302 [1] : vector<24x24xf32> to vector<24xf32>
    %661 = vector.shape_cast %660 : vector<24xf32> to vector<24x1xf32>
    %662 = tpu.reciprocal %661 {approx = true} : vector<24x1xf32> -> vector<24x1xf32>
    %663 = vector.broadcast %662 : vector<24x1xf32> to vector<24x24xf32>
    %664 = arith.mulf %659, %663 : vector<24x24xf32>
    %cst_303 = arith.constant dense<0.000000e+00> : vector<24x8xf32>
    %665 = tpu.matmul %664, %649, %cst_303 {dimension_numbers = #tpu.dot_dimension_numbers<[1], [0], [0], [1], [0, 0, 1, 1], [], []>} : vector<24x24xf32>, vector<24x8xf32>, vector<24x8xf32> -> vector<24x8xf32>
    %666 = vector.extract_strided_slice %627 {offsets = [0, 16], sizes = [24, 8], strides = [1, 1]} : vector<24x96xf32> to vector<24x8xf32>
    %667 = vector.extract_strided_slice %627 {offsets = [0, 48], sizes = [24, 8], strides = [1, 1]} : vector<24x96xf32> to vector<24x8xf32>
    %668 = vector.extract_strided_slice %627 {offsets = [0, 80], sizes = [24, 8], strides = [1, 1]} : vector<24x96xf32> to vector<24x8xf32>
    %669 = tpu.transpose %667, [1, 0] : vector<24x8xf32> -> vector<8x24xf32>
    %cst_304 = arith.constant dense<0.000000e+00> : vector<24x24xf32>
    %670 = tpu.matmul %666, %669, %cst_304 {dimension_numbers = #tpu.dot_dimension_numbers<[1], [0], [0], [1], [0, 0, 1, 1], [], []>} : vector<24x8xf32>, vector<8x24xf32>, vector<24x24xf32> -> vector<24x24xf32>
    %cst_305 = arith.constant 0.353553385 : f32
    %671 = vector.broadcast %cst_305 : f32 to vector<24x24xf32>
    %672 = arith.mulf %670, %671 : vector<24x24xf32>
    %673 = arith.addf %672, %433 : vector<24x24xf32>
    %cst_306 = arith.constant dense<0xFF800000> : vector<24xf32>
    %674 = vector.multi_reduction <maximumf>, %673, %cst_306 [1] : vector<24x24xf32> to vector<24xf32>
    %675 = vector.shape_cast %674 : vector<24xf32> to vector<24x1xf32>
    %676 = vector.broadcast %675 : vector<24x1xf32> to vector<24x24xf32>
    %677 = arith.subf %673, %676 : vector<24x24xf32>
    %678 = math.exp %677 : vector<24x24xf32>
    %cst_307 = arith.constant dense<0.000000e+00> : vector<24xf32>
    %679 = vector.multi_reduction <add>, %678, %cst_307 [1] : vector<24x24xf32> to vector<24xf32>
    %680 = vector.shape_cast %679 : vector<24xf32> to vector<24x1xf32>
    %681 = tpu.reciprocal %680 {approx = true} : vector<24x1xf32> -> vector<24x1xf32>
    %682 = vector.broadcast %681 : vector<24x1xf32> to vector<24x24xf32>
    %683 = arith.mulf %678, %682 : vector<24x24xf32>
    %cst_308 = arith.constant dense<0.000000e+00> : vector<24x8xf32>
    %684 = tpu.matmul %683, %668, %cst_308 {dimension_numbers = #tpu.dot_dimension_numbers<[1], [0], [0], [1], [0, 0, 1, 1], [], []>} : vector<24x24xf32>, vector<24x8xf32>, vector<24x8xf32> -> vector<24x8xf32>
    %685 = vector.extract_strided_slice %627 {offsets = [0, 24], sizes = [24, 8], strides = [1, 1]} : vector<24x96xf32> to vector<24x8xf32>
    %686 = vector.extract_strided_slice %627 {offsets = [0, 56], sizes = [24, 8], strides = [1, 1]} : vector<24x96xf32> to vector<24x8xf32>
    %687 = vector.extract_strided_slice %627 {offsets = [0, 88], sizes = [24, 8], strides = [1, 1]} : vector<24x96xf32> to vector<24x8xf32>
    %688 = tpu.transpose %686, [1, 0] : vector<24x8xf32> -> vector<8x24xf32>
    %cst_309 = arith.constant dense<0.000000e+00> : vector<24x24xf32>
    %689 = tpu.matmul %685, %688, %cst_309 {dimension_numbers = #tpu.dot_dimension_numbers<[1], [0], [0], [1], [0, 0, 1, 1], [], []>} : vector<24x8xf32>, vector<8x24xf32>, vector<24x24xf32> -> vector<24x24xf32>
    %cst_310 = arith.constant 0.353553385 : f32
    %690 = vector.broadcast %cst_310 : f32 to vector<24x24xf32>
    %691 = arith.mulf %689, %690 : vector<24x24xf32>
    %692 = arith.addf %691, %433 : vector<24x24xf32>
    %cst_311 = arith.constant dense<0xFF800000> : vector<24xf32>
    %693 = vector.multi_reduction <maximumf>, %692, %cst_311 [1] : vector<24x24xf32> to vector<24xf32>
    %694 = vector.shape_cast %693 : vector<24xf32> to vector<24x1xf32>
    %695 = vector.broadcast %694 : vector<24x1xf32> to vector<24x24xf32>
    %696 = arith.subf %692, %695 : vector<24x24xf32>
    %697 = math.exp %696 : vector<24x24xf32>
    %cst_312 = arith.constant dense<0.000000e+00> : vector<24xf32>
    %698 = vector.multi_reduction <add>, %697, %cst_312 [1] : vector<24x24xf32> to vector<24xf32>
    %699 = vector.shape_cast %698 : vector<24xf32> to vector<24x1xf32>
    %700 = tpu.reciprocal %699 {approx = true} : vector<24x1xf32> -> vector<24x1xf32>
    %701 = vector.broadcast %700 : vector<24x1xf32> to vector<24x24xf32>
    %702 = arith.mulf %697, %701 : vector<24x24xf32>
    %cst_313 = arith.constant dense<0.000000e+00> : vector<24x8xf32>
    %703 = tpu.matmul %702, %687, %cst_313 {dimension_numbers = #tpu.dot_dimension_numbers<[1], [0], [0], [1], [0, 0, 1, 1], [], []>} : vector<24x24xf32>, vector<24x8xf32>, vector<24x8xf32> -> vector<24x8xf32>
    %704 = tpu.concatenate %646, %665, %684, %703 in 1 : vector<24x8xf32>, vector<24x8xf32>, vector<24x8xf32>, vector<24x8xf32> -> vector<24x32xf32>
    %c1_314 = arith.constant 1 : index
    %c0_315 = arith.constant 0 : index
    %c0_316 = arith.constant 0 : index
    %705 = vector.load %arg27[%c1_314, %c0_315, %c0_316] : memref<2x32x32xf32, #tpu.memory_space<vmem>>, vector<1x32x32xf32>
    %706 = vector.shape_cast %705 : vector<1x32x32xf32> to vector<32x32xf32>
    %cst_317 = arith.constant dense<0.000000e+00> : vector<24x32xf32>
    %707 = tpu.matmul %704, %706, %cst_317 {dimension_numbers = #tpu.dot_dimension_numbers<[1], [0], [0], [1], [0, 0, 1, 1], [], []>} : vector<24x32xf32>, vector<32x32xf32>, vector<24x32xf32> -> vector<24x32xf32>
    %708 = arith.addf %596, %707 : vector<24x32xf32>
    %c1_318 = arith.constant 1 : index
    %c0_319 = arith.constant 0 : index
    %c0_320 = arith.constant 0 : index
    %709 = vector.load %arg28[%c1_318, %c0_319, %c0_320] : memref<2x1x32xf32, #tpu.memory_space<vmem>>, vector<1x1x32xf32>
    %710 = vector.shape_cast %709 : vector<1x1x32xf32> to vector<1x32xf32>
    %711 = vector.broadcast %710 : vector<1x32xf32> to vector<24x32xf32>
    %712 = arith.addf %708, %711 : vector<24x32xf32>
    %c1_321 = arith.constant 1 : index
    %c0_322 = arith.constant 0 : index
    %c0_323 = arith.constant 0 : index
    %713 = vector.load %arg29[%c1_321, %c0_322, %c0_323] : memref<2x1x32xf32, #tpu.memory_space<vmem>>, vector<1x1x32xf32>
    %714 = vector.shape_cast %713 : vector<1x1x32xf32> to vector<1x32xf32>
    %c1_324 = arith.constant 1 : index
    %c0_325 = arith.constant 0 : index
    %c0_326 = arith.constant 0 : index
    %715 = vector.load %arg30[%c1_324, %c0_325, %c0_326] : memref<2x1x32xf32, #tpu.memory_space<vmem>>, vector<1x1x32xf32>
    %716 = vector.shape_cast %715 : vector<1x1x32xf32> to vector<1x32xf32>
    %cst_327 = arith.constant dense<0.000000e+00> : vector<24xf32>
    %717 = vector.multi_reduction <add>, %712, %cst_327 [1] : vector<24x32xf32> to vector<24xf32>
    %718 = vector.shape_cast %717 : vector<24xf32> to vector<24x1xf32>
    %cst_328 = arith.constant 3.200000e+01 : f32
    %719 = vector.broadcast %cst_328 : f32 to vector<24x1xf32>
    %720 = arith.divf %718, %719 : vector<24x1xf32>
    %721 = vector.broadcast %720 : vector<24x1xf32> to vector<24x32xf32>
    %722 = arith.subf %712, %721 : vector<24x32xf32>
    %723 = arith.mulf %722, %722 : vector<24x32xf32>
    %cst_329 = arith.constant dense<0.000000e+00> : vector<24xf32>
    %724 = vector.multi_reduction <add>, %723, %cst_329 [1] : vector<24x32xf32> to vector<24xf32>
    %725 = vector.shape_cast %724 : vector<24xf32> to vector<24x1xf32>
    %cst_330 = arith.constant 3.200000e+01 : f32
    %726 = vector.broadcast %cst_330 : f32 to vector<24x1xf32>
    %727 = arith.divf %725, %726 : vector<24x1xf32>
    %cst_331 = arith.constant 9.99999974E-6 : f32
    %728 = vector.broadcast %cst_331 : f32 to vector<24x1xf32>
    %729 = arith.addf %727, %728 : vector<24x1xf32>
    %730 = math.rsqrt %729 : vector<24x1xf32>
    %731 = vector.broadcast %730 : vector<24x1xf32> to vector<24x32xf32>
    %732 = arith.mulf %722, %731 : vector<24x32xf32>
    %733 = vector.broadcast %714 : vector<1x32xf32> to vector<24x32xf32>
    %734 = arith.mulf %732, %733 : vector<24x32xf32>
    %735 = vector.broadcast %716 : vector<1x32xf32> to vector<24x32xf32>
    %736 = arith.addf %734, %735 : vector<24x32xf32>
    %c1_332 = arith.constant 1 : index
    %c0_333 = arith.constant 0 : index
    %c0_334 = arith.constant 0 : index
    %737 = vector.load %arg31[%c1_332, %c0_333, %c0_334] : memref<2x32x64xf32, #tpu.memory_space<vmem>>, vector<1x32x64xf32>
    %738 = vector.shape_cast %737 : vector<1x32x64xf32> to vector<32x64xf32>
    %cst_335 = arith.constant dense<0.000000e+00> : vector<24x64xf32>
    %739 = tpu.matmul %736, %738, %cst_335 {dimension_numbers = #tpu.dot_dimension_numbers<[1], [0], [0], [1], [0, 0, 1, 1], [], []>} : vector<24x32xf32>, vector<32x64xf32>, vector<24x64xf32> -> vector<24x64xf32>
    %c1_336 = arith.constant 1 : index
    %c0_337 = arith.constant 0 : index
    %c0_338 = arith.constant 0 : index
    %740 = vector.load %arg32[%c1_336, %c0_337, %c0_338] : memref<2x1x64xf32, #tpu.memory_space<vmem>>, vector<1x1x64xf32>
    %741 = vector.shape_cast %740 : vector<1x1x64xf32> to vector<1x64xf32>
    %742 = vector.broadcast %741 : vector<1x64xf32> to vector<24x64xf32>
    %743 = arith.addf %739, %742 : vector<24x64xf32>
    %cst_339 = arith.constant 1.702000e+00 : f32
    %744 = vector.broadcast %cst_339 : f32 to vector<24x64xf32>
    %745 = arith.mulf %744, %743 : vector<24x64xf32>
    %746 = arith.negf %745 : vector<24x64xf32>
    %747 = math.exp %746 : vector<24x64xf32>
    %cst_340 = arith.constant 1.000000e+00 : f32
    %748 = vector.broadcast %cst_340 : f32 to vector<24x64xf32>
    %749 = arith.addf %748, %747 : vector<24x64xf32>
    %750 = arith.divf %748, %749 : vector<24x64xf32>
    %751 = arith.mulf %743, %750 : vector<24x64xf32>
    %c1_341 = arith.constant 1 : index
    %c0_342 = arith.constant 0 : index
    %c0_343 = arith.constant 0 : index
    %752 = vector.load %arg33[%c1_341, %c0_342, %c0_343] : memref<2x64x32xf32, #tpu.memory_space<vmem>>, vector<1x64x32xf32>
    %753 = vector.shape_cast %752 : vector<1x64x32xf32> to vector<64x32xf32>
    %cst_344 = arith.constant dense<0.000000e+00> : vector<24x32xf32>
    %754 = tpu.matmul %751, %753, %cst_344 {dimension_numbers = #tpu.dot_dimension_numbers<[1], [0], [0], [1], [0, 0, 1, 1], [], []>} : vector<24x64xf32>, vector<64x32xf32>, vector<24x32xf32> -> vector<24x32xf32>
    %755 = arith.addf %712, %754 : vector<24x32xf32>
    %c1_345 = arith.constant 1 : index
    %c0_346 = arith.constant 0 : index
    %c0_347 = arith.constant 0 : index
    %756 = vector.load %arg34[%c1_345, %c0_346, %c0_347] : memref<2x1x32xf32, #tpu.memory_space<vmem>>, vector<1x1x32xf32>
    %757 = vector.shape_cast %756 : vector<1x1x32xf32> to vector<1x32xf32>
    %758 = vector.broadcast %757 : vector<1x32xf32> to vector<24x32xf32>
    %759 = arith.addf %755, %758 : vector<24x32xf32>
    %760 = tpu.iota {dimensions = array<i32: 0>} : vector<8x1xi32>
    %761 = vector.extract_strided_slice %759 {offsets = [0, 0], sizes = [8, 32], strides = [1, 1]} : vector<24x32xf32> to vector<8x32xf32>
    %c0_348 = arith.constant 0 : index
    %762 = memref.load %arg38[%c0_348] : memref<3xi32, #tpu.memory_space<smem>>
    %763 = vector.broadcast %762 : i32 to vector<8x1xi32>
    %764 = arith.cmpi eq, %760, %763 : vector<8x1xi32>
    %cst_349 = arith.constant 0.000000e+00 : f32
    %765 = vector.shape_cast %764 : vector<8x1xi1> to vector<8x1xi1>
    %766 = vector.broadcast %765 : vector<8x1xi1> to vector<8x32xi1>
    %767 = vector.broadcast %cst_349 : f32 to vector<8x32xf32>
    %768 = arith.select %766, %761, %767 : vector<8x32xi1>, vector<8x32xf32>
    %cst_350 = arith.constant dense<0.000000e+00> : vector<32xf32>
    %769 = vector.multi_reduction <add>, %768, %cst_350 [0] : vector<8x32xf32> to vector<32xf32>
    %770 = vector.shape_cast %769 : vector<32xf32> to vector<1x32xf32>
    %771 = vector.extract_strided_slice %759 {offsets = [8, 0], sizes = [8, 32], strides = [1, 1]} : vector<24x32xf32> to vector<8x32xf32>
    %c1_351 = arith.constant 1 : index
    %772 = memref.load %arg38[%c1_351] : memref<3xi32, #tpu.memory_space<smem>>
    %773 = vector.broadcast %772 : i32 to vector<8x1xi32>
    %774 = arith.cmpi eq, %760, %773 : vector<8x1xi32>
    %cst_352 = arith.constant 0.000000e+00 : f32
    %775 = vector.shape_cast %774 : vector<8x1xi1> to vector<8x1xi1>
    %776 = vector.broadcast %775 : vector<8x1xi1> to vector<8x32xi1>
    %777 = vector.broadcast %cst_352 : f32 to vector<8x32xf32>
    %778 = arith.select %776, %771, %777 : vector<8x32xi1>, vector<8x32xf32>
    %cst_353 = arith.constant dense<0.000000e+00> : vector<32xf32>
    %779 = vector.multi_reduction <add>, %778, %cst_353 [0] : vector<8x32xf32> to vector<32xf32>
    %780 = vector.shape_cast %779 : vector<32xf32> to vector<1x32xf32>
    %781 = vector.extract_strided_slice %759 {offsets = [16, 0], sizes = [8, 32], strides = [1, 1]} : vector<24x32xf32> to vector<8x32xf32>
    %c2 = arith.constant 2 : index
    %782 = memref.load %arg38[%c2] : memref<3xi32, #tpu.memory_space<smem>>
    %783 = vector.broadcast %782 : i32 to vector<8x1xi32>
    %784 = arith.cmpi eq, %760, %783 : vector<8x1xi32>
    %cst_354 = arith.constant 0.000000e+00 : f32
    %785 = vector.shape_cast %784 : vector<8x1xi1> to vector<8x1xi1>
    %786 = vector.broadcast %785 : vector<8x1xi1> to vector<8x32xi1>
    %787 = vector.broadcast %cst_354 : f32 to vector<8x32xf32>
    %788 = arith.select %786, %781, %787 : vector<8x32xi1>, vector<8x32xf32>
    %cst_355 = arith.constant dense<0.000000e+00> : vector<32xf32>
    %789 = vector.multi_reduction <add>, %788, %cst_355 [0] : vector<8x32xf32> to vector<32xf32>
    %790 = vector.shape_cast %789 : vector<32xf32> to vector<1x32xf32>
    %791 = tpu.concatenate %770, %780, %790 in 0 : vector<1x32xf32>, vector<1x32xf32>, vector<1x32xf32> -> vector<3x32xf32>
    %c0_356 = arith.constant 0 : index
    %c0_357 = arith.constant 0 : index
    %792 = vector.load %arg35[%c0_356, %c0_357] : memref<1x32xf32, #tpu.memory_space<vmem>>, vector<1x32xf32>
    %c0_358 = arith.constant 0 : index
    %c0_359 = arith.constant 0 : index
    %793 = vector.load %arg36[%c0_358, %c0_359] : memref<1x32xf32, #tpu.memory_space<vmem>>, vector<1x32xf32>
    %cst_360 = arith.constant dense<0.000000e+00> : vector<3xf32>
    %794 = vector.multi_reduction <add>, %791, %cst_360 [1] : vector<3x32xf32> to vector<3xf32>
    %795 = vector.shape_cast %794 : vector<3xf32> to vector<3x1xf32>
    %cst_361 = arith.constant 3.200000e+01 : f32
    %796 = vector.broadcast %cst_361 : f32 to vector<3x1xf32>
    %797 = arith.divf %795, %796 : vector<3x1xf32>
    %798 = vector.broadcast %797 : vector<3x1xf32> to vector<3x32xf32>
    %799 = arith.subf %791, %798 : vector<3x32xf32>
    %800 = arith.mulf %799, %799 : vector<3x32xf32>
    %cst_362 = arith.constant dense<0.000000e+00> : vector<3xf32>
    %801 = vector.multi_reduction <add>, %800, %cst_362 [1] : vector<3x32xf32> to vector<3xf32>
    %802 = vector.shape_cast %801 : vector<3xf32> to vector<3x1xf32>
    %cst_363 = arith.constant 3.200000e+01 : f32
    %803 = vector.broadcast %cst_363 : f32 to vector<3x1xf32>
    %804 = arith.divf %802, %803 : vector<3x1xf32>
    %cst_364 = arith.constant 9.99999974E-6 : f32
    %805 = vector.broadcast %cst_364 : f32 to vector<3x1xf32>
    %806 = arith.addf %804, %805 : vector<3x1xf32>
    %807 = math.rsqrt %806 : vector<3x1xf32>
    %808 = vector.broadcast %807 : vector<3x1xf32> to vector<3x32xf32>
    %809 = arith.mulf %799, %808 : vector<3x32xf32>
    %810 = vector.broadcast %792 : vector<1x32xf32> to vector<3x32xf32>
    %811 = arith.mulf %809, %810 : vector<3x32xf32>
    %812 = vector.broadcast %793 : vector<1x32xf32> to vector<3x32xf32>
    %813 = arith.addf %811, %812 : vector<3x32xf32>
    %c0_365 = arith.constant 0 : index
    %c0_366 = arith.constant 0 : index
    %814 = vector.load %arg37[%c0_365, %c0_366] : memref<32x32xf32, #tpu.memory_space<vmem>>, vector<32x32xf32>
    %cst_367 = arith.constant dense<0.000000e+00> : vector<3x32xf32>
    %815 = tpu.matmul %813, %814, %cst_367 {dimension_numbers = #tpu.dot_dimension_numbers<[1], [0], [0], [1], [0, 0, 1, 1], [], []>} : vector<3x32xf32>, vector<32x32xf32>, vector<3x32xf32> -> vector<3x32xf32>
    %816 = arith.mulf %411, %411 : vector<2x32xf32>
    %cst_368 = arith.constant dense<0.000000e+00> : vector<2xf32>
    %817 = vector.multi_reduction <add>, %816, %cst_368 [1] : vector<2x32xf32> to vector<2xf32>
    %818 = vector.shape_cast %817 : vector<2xf32> to vector<2x1xf32>
    %cst_369 = arith.constant 9.99999996E-13 : f32
    %819 = vector.broadcast %cst_369 : f32 to vector<2x1xf32>
    %820 = arith.addf %818, %819 : vector<2x1xf32>
    %821 = math.rsqrt %820 : vector<2x1xf32>
    %822 = vector.broadcast %821 : vector<2x1xf32> to vector<2x32xf32>
    %823 = arith.mulf %411, %822 : vector<2x32xf32>
    %824 = arith.mulf %815, %815 : vector<3x32xf32>
    %cst_370 = arith.constant dense<0.000000e+00> : vector<3xf32>
    %825 = vector.multi_reduction <add>, %824, %cst_370 [1] : vector<3x32xf32> to vector<3xf32>
    %826 = vector.shape_cast %825 : vector<3xf32> to vector<3x1xf32>
    %cst_371 = arith.constant 9.99999996E-13 : f32
    %827 = vector.broadcast %cst_371 : f32 to vector<3x1xf32>
    %828 = arith.addf %826, %827 : vector<3x1xf32>
    %829 = math.rsqrt %828 : vector<3x1xf32>
    %830 = vector.broadcast %829 : vector<3x1xf32> to vector<3x32xf32>
    %831 = arith.mulf %815, %830 : vector<3x32xf32>
    %832 = tpu.transpose %831, [1, 0] : vector<3x32xf32> -> vector<32x3xf32>
    %cst_372 = arith.constant dense<0.000000e+00> : vector<2x3xf32>
    %833 = tpu.matmul %823, %832, %cst_372 {dimension_numbers = #tpu.dot_dimension_numbers<[1], [0], [0], [1], [0, 0, 1, 1], [], []>} : vector<2x32xf32>, vector<32x3xf32>, vector<2x3xf32> -> vector<2x3xf32>
    %c0_373 = arith.constant 0 : index
    %c0_374 = arith.constant 0 : index
    %834 = vector.load %arg39[%c0_373, %c0_374] : memref<1x1xf32, #tpu.memory_space<vmem>>, vector<1x1xf32>
    %835 = math.exp %834 : vector<1x1xf32>
    %836 = vector.broadcast %835 : vector<1x1xf32> to vector<2x3xf32>
    %837 = arith.mulf %833, %836 : vector<2x3xf32>
    %cst_375 = arith.constant dense<0xFF800000> : vector<2xf32>
    %838 = vector.multi_reduction <maximumf>, %837, %cst_375 [1] : vector<2x3xf32> to vector<2xf32>
    %839 = vector.shape_cast %838 : vector<2xf32> to vector<2x1xf32>
    %840 = vector.broadcast %839 : vector<2x1xf32> to vector<2x3xf32>
    %841 = arith.subf %837, %840 : vector<2x3xf32>
    %842 = math.exp %841 : vector<2x3xf32>
    %cst_376 = arith.constant dense<0.000000e+00> : vector<2xf32>
    %843 = vector.multi_reduction <add>, %842, %cst_376 [1] : vector<2x3xf32> to vector<2xf32>
    %844 = vector.shape_cast %843 : vector<2xf32> to vector<2x1xf32>
    %845 = vector.broadcast %844 : vector<2x1xf32> to vector<2x3xf32>
    %846 = arith.divf %842, %845 : vector<2x3xf32>
    %c0_377 = arith.constant 0 : index
    %c0_378 = arith.constant 0 : index
    %847 = vector.load %arg40[%c0_377, %c0_378] : memref<2x3xf32, #tpu.memory_space<vmem>>, vector<2x3xf32>
    tpu.vector_store %arg40[%c0_377, %c0_378], %846 {strides = array<i32>} : memref<2x3xf32, #tpu.memory_space<vmem>>, vector<2x3xf32>,
    return
  }
}

</mosaic_0001>

<bundles_post_ra>
// kernel: image_classifier_forward.1
= control target key start
LH: loop header
LB: loop body
LE: loop exit
PB: predicated region body
PF: predicated region fallthrough
CT: control target
= control target key end

     0   :  { %s4896_s6 = smov 1   ;;  %s4897_s10 = smov 2   ;;  %s6375_s0 = inlined_call_operand.smem [shape: u32[41], index: -1, kind: input, shape index: {}] }
   0x1   :  { %s4964_s5 = sld [smem:[%s6375_s0]]   ;;  %s4898_s14 = smov 3  }
   0x2   :  { %s4969_s9 = sld [smem:[%s6375_s0 + %s4896_s6]]   ;;  %s4899_s18 = smov 4  }
   0x3   :  { %s4974_s13 = sld [smem:[%s6375_s0 + %s4897_s10]]   ;;  %s4900_s22 = smov 5  }
   0x4   :  { %s4979_s17 = sld [smem:[%s6375_s0 + %s4898_s14]]   ;;  %s4901_s26 = smov 6  }
   0x5   :  { %s4984_s21 = sld [smem:[%s6375_s0 + %s4899_s18]]   ;;  %s4902_s30 = smov 7  }
   0x6   :  { %s4989_s25 = sld [smem:[%s6375_s0 + %s4900_s22]]   ;;  %s4903_s4 = smov 8  }
   0x7   :  { %s4994_s29 = sld [smem:[%s6375_s0 + %s4901_s26]]   ;;  %s4904_s10 = smov 9  }
   0x8   :  { %s4999_s3 = sld [smem:[%s6375_s0 + %s4902_s30]]   ;;  %s4905_s15 = smov 10  }
   0x9   :  { %s5004_s8 = sld [smem:[%s6375_s0 + %s4903_s4]]   ;;  %s4906_s20 = smov 11  }
   0xa   :  { %s5009_s14 = sld [smem:[%s6375_s0 + %s4904_s10]]   ;;  %s4907_s26 = smov 12  }
   0xb   :  { %s5014_s19 = sld [smem:[%s6375_s0 + %s4905_s15]]   ;;  %s4908_s1 = smov 13  }
   0xc   :  { %s5019_s24 = sld [smem:[%s6375_s0 + %s4906_s20]]   ;;  %s4909_s7 = smov 14  }
   0xd   :  { %s5024_s30 = sld [smem:[%s6375_s0 + %s4907_s26]]   ;;  %s4910_s15 = smov 15  }
   0xe   :  { %s5029_s6 = sld [smem:[%s6375_s0 + %s4908_s1]]   ;;  %s4911_s22 = smov 16  }
   0xf   :  { %s5034_s12 = sld [smem:[%s6375_s0 + %s4909_s7]]   ;;  %s4912_s28 = smov 17  }
  0x10   :  { %s5039_s20 = sld [smem:[%s6375_s0 + %s4910_s15]]   ;;  %s4913_s7 = smov 18  }
  0x11   :  { %s5044_s27 = sld [smem:[%s6375_s0 + %s4911_s22]]   ;;  %s4914_s15 = smov 19  }
  0x12   :  { %s5049_s4 = sld [smem:[%s6375_s0 + %s4912_s28]]   ;;  %s4915_s22 = smov 20  }
  0x13   :  { %6395 = sst [smem:[#allocation10_spill]] %s5024_s30  ;;  %s4916_s28 = smov 21  }
  0x14   :  { %6396 = sst [smem:[#allocation11_spill]] %s5029_s6  ;;  %s4934_s16 = smov 39  }
  0x15   :  { %s5054_s6 = sld [smem:[%s6375_s0 + %s4913_s7]]   ;;  %s4917_s7 = smov 22  }
  0x16   :  { %6397 = sst [smem:[#allocation12_spill]] %s5039_s20  ;;  %s4935_s30 = smov 40  }
  0x17   :  { %6398 = sst [smem:[#allocation13_spill]] %s5044_s27 }
  0x18   :  { %6399 = sst [smem:[#allocation14_spill]] %s5049_s4 }
  0x19   :  { %s5059_s20 = sld [smem:[%s6375_s0 + %s4914_s15]]   ;;  %s4918_s15 = smov 23  }
  0x1a   :  { %s5064_s27 = sld [smem:[%s6375_s0 + %s4915_s22]]   ;;  %s4919_s22 = smov 24  }
  0x1b   :  { %6400 = sst [smem:[#allocation15_spill]] %s5054_s6 }
  0x1c   :  { %s5069_s4 = sld [smem:[%s6375_s0 + %s4916_s28]]   ;;  %s4920_s28 = smov 25  }
  0x1d   :  { %s5074_s6 = sld [smem:[%s6375_s0 + %s4917_s7]]   ;;  %s4921_s7 = smov 26  }
  0x1e   :  { %s5160_s26 = sld [smem:[%s6375_s0 + %s4935_s30]]  }
  0x1f   :  { %6401 = sst [smem:[#allocation16_spill]] %s5059_s20 }
  0x20   :  { %6402 = sst [smem:[#allocation17_spill]] %s5064_s27 }
  0x21   :  { %s5079_s20 = sld [smem:[%s6375_s0 + %s4918_s15]]   ;;  %s4922_s15 = smov 27  }
  0x22   :  { %6403 = sst [smem:[#allocation18_spill]] %s5069_s4 }
  0x23   :  { %6404 = sst [smem:[#allocation19_spill]] %s5074_s6 }
  0x24   :  { %s5084_s27 = sld [smem:[%s6375_s0 + %s4919_s22]]   ;;  %s4923_s22 = smov 28  }
  0x25   :  { %s5089_s4 = sld [smem:[%s6375_s0 + %s4920_s28]]   ;;  %s4924_s28 = smov 29  }
  0x26   :  { %s5094_s6 = sld [smem:[%s6375_s0 + %s4921_s7]]   ;;  %s4925_s7 = smov 30  }
  0x27   :  { %6405 = sst [smem:[#allocation20_spill]] %s5079_s20 }
  0x28   :  { %s5099_s20 = sld [smem:[%s6375_s0 + %s4922_s15]]   ;;  %s4926_s15 = smov 31  }
  0x2a   :  { %6406 = sst [smem:[#allocation21_spill]] %s5084_s27 }
  0x2b   :  { %6407 = sst [smem:[#allocation22_spill]] %s5089_s4 }
  0x2c   :  { %6408 = sst [smem:[#allocation23_spill]] %s5094_s6 }
  0x2d   :  { %s5104_s27 = sld [smem:[%s6375_s0 + %s4923_s22]]   ;;  %s4927_s22 = smov 32  }
  0x2e   :  { %6409 = sst [smem:[#allocation24_spill]] %s5099_s20 }
  0x2f   :  { %s5109_s4 = sld [smem:[%s6375_s0 + %s4924_s28]]   ;;  %s4928_s28 = smov 33  }
  0x30   :  { %s5114_s6 = sld [smem:[%s6375_s0 + %s4925_s7]]   ;;  %s4929_s7 = smov 34  }
  0x31   :  { %s5119_s20 = sld [smem:[%s6375_s0 + %s4926_s15]]   ;;  %s4930_s15 = smov 35  }
  0x33   :  { %6410 = sst [smem:[#allocation25_spill]] %s5104_s27 }
  0x34   :  { %s5124_s27 = sld [smem:[%s6375_s0 + %s4927_s22]]   ;;  %s4931_s22 = smov 36  }
  0x35   :  { %6411 = sst [smem:[#allocation26_spill]] %s5109_s4 }
  0x36   :  { %6412 = sst [smem:[#allocation27_spill]] %s5114_s6 }
  0x37   :  { %6413 = sst [smem:[#allocation28_spill]] %s5119_s20 }
  0x38   :  { %s5129_s4 = sld [smem:[%s6375_s0 + %s4928_s28]]   ;;  %s4932_s28 = smov 37  }
  0x39   :  { %s5134_s6 = sld [smem:[%s6375_s0 + %s4929_s7]]   ;;  %s4933_s7 = smov 38  }
  0x3a   :  { %6414 = sst [smem:[#allocation29_spill]] %s5124_s27 }
  0x3b   :  { %s5139_s20 = sld [smem:[%s6375_s0 + %s4930_s15]]  }
  0x3c   :  { %s5144_s27 = sld [smem:[%s6375_s0 + %s4931_s22]]  }
  0x3e   :  { %6415 = sst [smem:[#allocation30_spill]] %s5129_s4 }
  0x3f   :  { %6416 = sst [smem:[#allocation31_spill]] %s5134_s6 }
  0x40   :  { %s5149_s4 = sld [smem:[%s6375_s0 + %s4932_s28]]  }
  0x41   :  { %6417 = sst [smem:[#allocation32_spill]] %s5139_s20 }
  0x42   :  { %s4178_s6 = sld [smem:[%s6375_s0 + %s4933_s7]]  }
  0x43   :  { %s4179_s20 = sld [smem:[%s6375_s0 + %s4934_s16]]  }
  0x49   :  { %v86_v0 = vstv %s4179_s20 }
  0x4a   :  { %87 = vst [vmem:[#allocation3] sm:$0x1] %v86_v0 }
  0x4b   :  { %88 = vsyncpa [#allocation6], 0 }
  0x4c   :  { %89 = vsyncpa [#allocation5], 0  ;;  %s171_s28 = sshll.u32 %s4178_s6, 4  ;;  %s4860_s7 = scalar_lea.vmem %s4178_s6, 1  ;;  %s172_s28 = int_to_ptr.vmem [resolvable:$true] %s171_s28 }
  0x4d   :  { %s4856_s1 = sshra.s32 %s172_s28, 4  ;;  %s4857_s1 = int_to_ptr.vmem [resolvable:$true] %s4856_s1 }
  0x4e   :  { %s4858_s2 = scalar_lea.vmem %s4857_s1, 1  ;;  %p4861_p1 = scmp.lt.s32.totalorder %s4857_s1, %s4178_s6 }
  0x4f   :  { %p4859_p0 = scmp.ne.s32.totalorder %s4857_s1, %s4858_s2  ;;  %p4862_p2 = scmp.lt.s32.totalorder %s4860_s7, %s4858_s2 }
  0x51   :  { %p4863_p3 = por %p4862_p2, %p4861_p1 }
  0x53   :  { %p4864_p4 = pnand %p4863_p3, %p4859_p0 }
  0x55   :  { %4867 = shalt.err (!%p4864_p4)
}
  0x56   :  { %s4936_s10 = smov [#allocation4]  }
  0x57   :  { %174 = dma.vmem_to_smem %s172_s28, 16, %s4936_s10, [#allocation6]  }
  0x58   :  { %4892 = dma.done.wait [#allocation6], 16  }
  0x59   :  { %4893 = vsyncadd [#allocation6], 4294967280 }
  0x5a   :  { %181 = sfence }
  0x5b   :  { %v199_v1 = vld [vmem:[%s4969_s9 + $0x78] sm:$0xff]  ;;  %v198_v2 = vld [vmem:[%s4969_s9 + $0x70] sm:$0xff]  ;;  %v197_v3 = vld [vmem:[%s4969_s9 + $0x68] sm:$0xff]  ;;  %vm208_vm0 = vcmask 523264   ;;  %vm252_vm1 = vcmask 261120   ;;  %v4937_v29 = vmov 0.0  }
  0x5c   :  { %212 = vmatpush.msra.mxu0 %v199_v1  ;;  %v207_v4 = vld [vmem:[%s4969_s9 + $0xb8] sm:$0xff]  ;;  %v206_v5 = vld [vmem:[%s4969_s9 + $0xb0] sm:$0xff]  ;;  %v196_v6 = vld [vmem:[%s4969_s9 + $0x60] sm:$0xff]  ;;  %253 = vst.msk [vmem:[#allocation2] sm:$0xff] %vm252_vm1, %v4937_v29  ;;  %vm258_vm2 = vcmask 253952   ;;  %vm262_vm3 = vcmask 257024  }
  0x5d   :  { %240 = vmatpush.msra.mxu1 %v207_v4  ;;  %v205_v7 = vld [vmem:[%s4969_s9 + $0xa8] sm:$0xff]  ;;  %v195_v8 = vld [vmem:[%s4969_s9 + $0x58] sm:$0xff]  ;;  %v194_v9 = vld [vmem:[%s4969_s9 + $0x50] sm:$0xff]  ;;  %254 = vst.msk [vmem:[#allocation2 + $0x8] sm:$0xff] %vm252_vm1, %v4937_v29  ;;  %vm273_vm4 = vcmask 261124   ;;  %v4938_v46 = vmov 32.0  }
  0x5e   :  { %213 = vmatpush.msra.mxu0 %v198_v2  ;;  %v204_v10 = vld [vmem:[%s4969_s9 + $0xa0] sm:$0xff]  ;;  %v193_v11 = vld [vmem:[%s4969_s9 + $0x48] sm:$0xff]  ;;  %v203_v12 = vld [vmem:[%s4969_s9 + $0x98] sm:$0xff]  ;;  %4593 = vrcp.f32 %v4938_v46  ;;  %s4939_s0 = smov 88   ;;  %s4947_s30 = smov 56  }
  0x5f   :  { %241 = vmatpush.msra.mxu1 %v206_v5  ;;  %v202_v13 = vld [vmem:[%s4969_s9 + $0x90] sm:$0xff]  ;;  %v192_v14 = vld [vmem:[%s4969_s9 + $0x40] sm:$0xff]  ;;  %v201_v15 = vld [vmem:[%s4969_s9 + $0x88] sm:$0xff]  ;;  %s4948_s6 = smov 40   ;;  %s4949_s20 = smov 64  }
  0x60   :  { %214 = vmatpush.msra.mxu0 %v197_v3  ;;  %v191_v16 = vld [vmem:[%s4969_s9 + $0x38] sm:$0xff]  ;;  %v200_v17 = vld [vmem:[%s4969_s9 + $0x80] sm:$0xff]  ;;  %v190_v18 = vld [vmem:[%s4969_s9 + $0x30] sm:$0xff]  ;;  %s4950_s11 = smov 48   ;;  %s4951_s16 = smov 8  }
  0x61   :  { %242 = vmatpush.msra.mxu1 %v205_v7  ;;  %v183_v19 = vld [vmem:[%s4964_s5 + $0x8] sm:$0xff]  ;;  %v188_v21 = vld [vmem:[%s4969_s9 + $0x20] sm:$0xff]  ;;  %v187_v22 = vld [vmem:[%s4969_s9 + $0x18] sm:$0xff]  ;;  %s4952_s15 = smov 24   ;;  %s4953_s18 = smov 16  }
  0x62   :  { %215 = vmatpush.msra.mxu0 %v196_v6  ;;  %v189_v20 = vld [vmem:[%s4969_s9 + $0x28] sm:$0xff]  ;;  %v186_v23 = vld [vmem:[%s4969_s9 + $0x10] sm:$0xff]  ;;  %v184_v25 = vld [vmem:[%s4969_s9] sm:$0xff]  ;;  %s6422_s23 = sld [smem:[#allocation10_spill]] }
  0x63   :  { %243 = vmatpush.msra.mxu1 %v204_v10  ;;  %v185_v24 = vld [vmem:[%s4969_s9 + $0x8] sm:$0xff]  ;;  %v182_v26 = vld [vmem:[%s4964_s5] sm:$0xff]  ;;  %s4940_s5 = smov 96   ;;  %s4941_s9 = smov 72  }
  0x64   :  { %216 = vmatpush.msra.mxu0 %v195_v8  ;;  %v255_v27 = vld [vmem:[%s4974_s13] sm:$0x1]  ;;  %v268_v34 = vld [vmem:[%s4979_s17 + $0x1] sm:$0xf]  ;;  %v4594_v47 = vpop.eup %4593  ;;  %s6423_s22 = sld [smem:[#allocation11_spill]] }
  0x65   :  { %244 = vmatpush.msra.mxu1 %v203_v12  ;;  %v256_v28 = vld [vmem:[%s4979_s17] sm:$0x1]  ;;  %v270_v36 = vrot.slane %v268_v34, 4  ;;  %v260_v38 = vld [vmem:[%s4979_s17 + $0x1] sm:$0xf]  ;;  %v286_v48 = vmul.f32 32.0, %v4594_v47  ;;  %vm290_vm5 = vweird.f32 %v4594_v47 }
  0x66   :  { %217 = vmatpush.msra.mxu0 %v194_v9  ;;  %v257_v30 = vadd.f32 %v256_v28, %v255_v27  ;;  %v264_v31 = vld [vmem:[%s4974_s13] sm:$0x1]  ;;  %s4942_s13 = smov 120   ;;  %s6424_s28 = sld [smem:[#allocation13_spill]] }
  0x67   :  { %245 = vmatpush.msra.mxu1 %v202_v13  ;;  %v265_v32 = vld [vmem:[%s4979_s17] sm:$0x1]  ;;  %v287_v49 = vsub.f32 1.0, %v286_v48  ;;  %s4943_s17 = smov 80   ;;  %s6425_s1 = sld [smem:[#allocation12_spill]] }
  0x68   :  { %218 = vmatpush.msra.mxu0 %v193_v11  ;;  %259 = vst.msk [vmem:[#allocation2] sm:$0x1] %vm258_vm2, %v257_v30  ;;  %v266_v33 = vadd.f32 %v265_v32, %v264_v31  ;;  %v4555_v13 = vld [vmem:[%s4984_s21] ss:$0 sm:$0xff]  ;;  %s4944_s21 = smov 112   ;;  %s6426_s2 = sld [smem:[#allocation14_spill]] }
  0x69   :  { %246 = vmatpush.msra.mxu1 %v201_v15  ;;  %v288_v50 = vmul.f32 %v4594_v47, %v287_v49  ;;  %s6436_s7 = sld [smem:[#allocation23_spill]] }
  0x6a   :  { %219 = vmatpush.msra.mxu0 %v192_v14  ;;  %267 = vst.msk [vmem:[#allocation2 + $0x8] sm:$0x1] %vm258_vm2, %v266_v33  ;;  %s6437_s10 = sld [smem:[#allocation19_spill]] }
  0x6b   :  { %247 = vmatpush.msra.mxu1 %v200_v17  ;;  %v289_v51 = vadd.f32 %v4594_v47, %v288_v50  ;;  %v4556_v17 = vld [vmem:[%s4989_s25] ss:$0 sm:$0xff]  ;;  %s4945_s25 = smov 104  }
  0x6c   :  { %220 = vmatpush.msra.mxu0 %v191_v16  ;;  %4181 = vmatmul.msk.f32.vlgmr.msra.gmra.mxu1 %vm208_vm0, %v183_v19 }
  0x6d   :  { %v5199_v52 = vsel %vm290_vm5, %v4594_v47, %v289_v51 }
  0x6e   :  { %221 = vmatpush.msra.mxu0 %v190_v18 }
  0x70   :  { %222 = vmatpush.msra.mxu0 %v189_v20 }
  0x72   :  { %223 = vmatpush.msra.mxu0 %v188_v21 }
  0x74   :  { %224 = vmatpush.msra.mxu0 %v187_v22 }
  0x76   :  { %225 = vmatpush.msra.mxu0 %v186_v23 }
  0x78   :  { %226 = vmatpush.msra.mxu0 %v185_v24 }
  0x7a   :  { %227 = vmatpush.msra.mxu0 %v184_v25 }
  0x7b   :  { %228 = vmatmul.f32.vlgmr.msra.gmra.mxu0 %v182_v26 }
  0xe9   :  { %v249_v35 = vpop.f32.mrf.mxu1 }
  0xf8   :  { %v229_v37 = vpop.f32.mrf.mxu0 }
  0xf9   :  { %v250_v39 = vadd.f32 %v249_v35, %v229_v37 }
  0xfb   :  { %v261_v40 = vadd.f32 %v260_v38, %v250_v39  ;;  %v272_v41 = vadd.f32 %v270_v36, %v250_v39  ;;  %v415_v39 = vld [vmem:[%s5004_s8 + $0x18] sm:$0xff] }
  0xfc   :  { %438 = vmatpush.msra.mxu2 %v415_v39 }
  0xfd   :  { %263 = vst.msk [vmem:[#allocation2 + $0x1] sm:$0xf] %vm262_vm3, %v261_v40  ;;  %v414_v40 = vld [vmem:[%s5004_s8 + $0x10] sm:$0xff] }
  0xfe   :  { %274 = vst.msk [vmem:[#allocation2 + $0x5] sm:$0xf0] %vm273_vm4, %v272_v41  ;;  %439 = vmatpush.msra.mxu2 %v414_v40  ;;  %v413_v41 = vld [vmem:[%s5004_s8 + $0x8] sm:$0xff]  ;;  %vm455_vm4 = vcmask 64512  }
 0x100   :  { %440 = vmatpush.msra.mxu2 %v413_v41 }
 0x104   :  { %v275_v42 = vld [vmem:[#allocation2] sm:$0xff] }
 0x105   :  { %v279_v43 = vsel %vm252_vm1, %v275_v42, 0.0  ;;  %v276_v44 = vld [vmem:[#allocation2 + $0x8] sm:$0xff] }
 0x106   :  { %280 = vadd.xlane.f32.xlu0 %v279_v43  ;;  %v282_v45 = vsel %vm252_vm1, %v276_v44, 0.0 }
 0x10e   :  { %283 = vadd.xlane.f32.xlu0 %v282_v45 }
 0x179   :  { %v281_v53 = vpop.xlane.xlu0 %280 }
 0x17a   :  { %v292_v54 = vmul.f32 %v5199_v52, %v281_v53 }
 0x17c   :  { %v294_v55 = vsub.f32 %v275_v42, %v292_v54  ;;  %v412_v42 = vld [vmem:[%s5004_s8] sm:$0xff] }
 0x17d   :  { %441 = vmatpush.msra.mxu2 %v412_v42 }
 0x17e   :  { %v296_v56 = vmul.f32 %v294_v55, %v294_v55 }
 0x180   :  { %v298_v57 = vsel %vm252_vm1, %v296_v56, 0.0 }
 0x181   :  { %299 = vadd.xlane.f32.xlu1 %v298_v57  ;;  %v284_v58 = vpop.xlane.xlu0 %283 }
 0x182   :  { %v293_v59 = vmul.f32 %v5199_v52, %v284_v58  ;;  %v4557_v58 = vld [vmem:[%s4994_s29] ss:$0 sm:$0xff] }
 0x184   :  { %v295_v60 = vsub.f32 %v276_v44, %v293_v59 }
 0x186   :  { %v297_v61 = vmul.f32 %v295_v60, %v295_v60 }
 0x188   :  { %v301_v62 = vsel %vm252_vm1, %v297_v61, 0.0 }
 0x189   :  { %302 = vadd.xlane.f32.xlu1 %v301_v62  ;;  %v4558_v62 = vld [vmem:[%s4999_s3] ss:$0 sm:$0xff] }
 0x1f4   :  { %v300_v63 = vpop.xlane.xlu1 %299 }
 0x1f5   :  { %v304_v0 = vmul.f32 %v300_v63, %v5199_v52 }
 0x1f7   :  { %v306_v1 = vadd.f32 1e-05, %v304_v0 }
 0x1f9   :  { %4595 = vrsqrt.f32 %v306_v1  ;;  %vm314_vm7 = vweird.f32 %v306_v1 }
 0x1fc   :  { %v303_v2 = vpop.xlane.xlu1 %302 }
 0x1fd   :  { %v305_v3 = vmul.f32 %v303_v2, %v5199_v52 }
 0x1ff   :  { %v4596_v4 = vpop.eup %4595  ;;  %v307_v5 = vadd.f32 1e-05, %v305_v3 }
 0x200   :  { %v309_v6 = vmul.f32 %v4596_v4, %v306_v1  ;;  %vm315_vm6 = vweird.f32 %v4596_v4 }
 0x201   :  { %4597 = vrsqrt.f32 %v307_v5  ;;  %vm316_vm8 = vmor %vm314_vm7, %vm315_vm6  ;;  %vm324_vm10 = vweird.f32 %v307_v5 }
 0x202   :  { %v310_v7 = vmul.f32 %v4596_v4, %v309_v6 }
 0x204   :  { %v311_v8 = vmul.f32 0.5, %v310_v7 }
 0x206   :  { %v312_v9 = vsub.f32 1.5, %v311_v8  ;;  %v4559_v8 = vld [vmem:[%s5009_s14] ss:$0 sm:$0xff] }
 0x207   :  { %v4598_v10 = vpop.eup %4597 }
 0x208   :  { %v313_v11 = vmul.f32 %v4596_v4, %v312_v9  ;;  %v319_v12 = vmul.f32 %v4598_v10, %v307_v5  ;;  %vm325_vm9 = vweird.f32 %v4598_v10 }
 0x209   :  { %vm326_vm11 = vmor %vm324_vm10, %vm325_vm9 }
 0x20a   :  { %v320_v14 = vmul.f32 %v4598_v10, %v319_v12  ;;  %v317_v15 = vsel %vm316_vm8, %v4596_v4, %v313_v11  ;;  %vm491_vm8 = vcmask 130048  }
 0x20b   :  { %v328_v16 = vmul.f32 %v317_v15, %v294_v55 }
 0x20c   :  { %v321_v18 = vmul.f32 0.5, %v320_v14 }
 0x20d   :  { %v333_v19 = vmul.f32 %v4555_v13, %v328_v16 }
 0x20e   :  { %v322_v20 = vsub.f32 1.5, %v321_v18 }
 0x20f   :  { %v5209_v21 = vadd.f32 %v4556_v17, %v333_v19 }
 0x210   :  { %v323_v22 = vmul.f32 %v4598_v10, %v322_v20 }
 0x211   :  { %v358_v23 = vsel %vm252_vm1, %v5209_v21, 0.0 }
 0x212   :  { %359 = vadd.xlane.f32.xlu2 %v358_v23  ;;  %v327_v24 = vsel %vm326_vm11, %v4598_v10, %v323_v22  ;;  %vm877_vm11 = vcmask 195584  }
 0x213   :  { %v329_v25 = vmul.f32 %v327_v24, %v295_v60 }
 0x215   :  { %v334_v26 = vmul.f32 %v4555_v13, %v329_v25 }
 0x217   :  { %v5213_v27 = vadd.f32 %v4556_v17, %v334_v26 }
 0x219   :  { %v361_v28 = vsel %vm252_vm1, %v5213_v27, 0.0 }
 0x21a   :  { %362 = vadd.xlane.f32.xlu2 %v361_v28 }
 0x285   :  { %v360_v29 = vpop.xlane.xlu2 %359 }
 0x286   :  { %v364_v30 = vmul.f32 %v360_v29, %v5199_v52  ;;  %v340_v29 = vlaneseq }
 0x288   :  { %v366_v31 = vsub.f32 %v5209_v21, %v364_v30  ;;  %v5284_v30 = vshrl.u32 %v340_v29, 7 }
 0x28a   :  { %v368_v32 = vmul.f32 %v366_v31, %v366_v31  ;;  %v5307_v42 = vadd.s32 8, %v5284_v30 }
 0x28c   :  { %v370_v33 = vsel %vm252_vm1, %v368_v32, 0.0  ;;  %v345_v32 = vshra.s32 %v5284_v30, 3 }
 0x28d   :  { %371 = vadd.xlane.f32.xlu0 %v370_v33  ;;  %v363_v34 = vpop.xlane.xlu2 %362 }
 0x28e   :  { %v365_v35 = vmul.f32 %v363_v34, %v5199_v52 }
 0x290   :  { %v367_v36 = vsub.f32 %v5213_v27, %v365_v35 }
 0x292   :  { %v369_v37 = vmul.f32 %v367_v36, %v367_v36 }
 0x294   :  { %v373_v38 = vsel %vm252_vm1, %v369_v37, 0.0  ;;  %v4946_v37 = vmov -1e+09  }
 0x295   :  { %374 = vadd.xlane.f32.xlu1 %v373_v38 }
 0x300   :  { %v372_v43 = vpop.xlane.xlu0 %371 }
 0x301   :  { %v376_v44 = vmul.f32 %v372_v43, %v5199_v52 }
 0x303   :  { %v378_v45 = vadd.f32 1e-05, %v376_v44 }
 0x305   :  { %4599 = vrsqrt.f32 %v378_v45  ;;  %vm386_vm13 = vweird.f32 %v378_v45 }
 0x308   :  { %v375_v46 = vpop.xlane.xlu1 %374 }
 0x309   :  { %v377_v47 = vmul.f32 %v375_v46, %v5199_v52 }
 0x30b   :  { %v4600_v48 = vpop.eup %4599  ;;  %v379_v49 = vadd.f32 1e-05, %v377_v47 }
 0x30c   :  { %v381_v50 = vmul.f32 %v4600_v48, %v378_v45  ;;  %vm387_vm12 = vweird.f32 %v4600_v48  ;;  %v346_v45 = vshra.s32 %v5307_v42, 3 }
 0x30d   :  { %4601 = vrsqrt.f32 %v379_v49  ;;  %vm388_vm14 = vmor %vm386_vm13, %vm387_vm12  ;;  %vm396_vm2 = vweird.f32 %v379_v49 }
 0x30e   :  { %v382_v51 = vmul.f32 %v4600_v48, %v381_v50 }
 0x310   :  { %v383_v53 = vmul.f32 0.5, %v382_v51 }
 0x312   :  { %v384_v54 = vsub.f32 1.5, %v383_v53 }
 0x313   :  { %v4602_v55 = vpop.eup %4601 }
 0x314   :  { %v385_v56 = vmul.f32 %v4600_v48, %v384_v54  ;;  %v391_v57 = vmul.f32 %v4602_v55, %v379_v49  ;;  %vm397_vm15 = vweird.f32 %v4602_v55 }
 0x315   :  { %vm398_vm3 = vmor %vm396_vm2, %vm397_vm15 }
 0x316   :  { %v392_v59 = vmul.f32 %v4602_v55, %v391_v57  ;;  %v389_v60 = vsel %vm388_vm14, %v4600_v48, %v385_v56 }
 0x317   :  { %v400_v61 = vmul.f32 %v389_v60, %v366_v31  ;;  %v344_v31 = vand.u32 127, %v340_v29 }
 0x318   :  { %v393_v63 = vmul.f32 0.5, %v392_v59 }
 0x319   :  { %v405_v0 = vmul.f32 %v4557_v58, %v400_v61  ;;  %v5287_v33 = vshra.s32 %v344_v31, 3  ;;  %v5289_v34 = vand.u32 7, %v344_v31 }
 0x31a   :  { %v394_v1 = vsub.f32 1.5, %v393_v63 }
 0x31b   :  { %v410_v2 = vadd.f32 %v4558_v62, %v405_v0  ;;  %vm5292_vm5 = vcmp.eq.s32.totalorder %v345_v32, %v5287_v33  ;;  %vm351_vm6 = vcmp.lt.s32.totalorder %v5289_v34, 5  ;;  %vm5312_vm9 = vcmp.eq.s32.totalorder %v346_v45, %v5287_v33 }
 0x31c   :  { %v395_v3 = vmul.f32 %v4602_v55, %v394_v1  ;;  %vm352_vm7 = vmand %vm5292_vm5, %vm351_vm6 }
 0x31d   :  { %4182 = vmatmul.msk.f32.vlgmr.msra.gmra.mxu2 %vm252_vm1, %v410_v2  ;;  %v5302_v38 = vsel %vm352_vm7, 0.0, %v4946_v37  ;;  %vm353_vm10 = vmand %vm5312_vm9, %vm351_vm6 }
 0x31e   :  { %v399_v4 = vsel %vm398_vm3, %v4602_v55, %v395_v3  ;;  %v5322_v54 = vsel %vm353_vm10, 0.0, %v4946_v37 }
 0x31f   :  { %v401_v5 = vmul.f32 %v399_v4, %v367_v36 }
 0x321   :  { %v406_v6 = vmul.f32 %v4557_v58, %v401_v5 }
 0x323   :  { %v411_v7 = vadd.f32 %v4558_v62, %v406_v6 }
 0x325   :  { %4183 = vmatmul.msk.f32.gmra.mxu2 %vm252_vm1, %v411_v7 }
 0x3a0   :  { %v443_v9 = vpop.f32.mrf.mxu2 }
 0x3a1   :  { %v5234_v10 = vadd.f32 %v4559_v8, %v443_v9 }
 0x3a3   :  { %553 = vrot.lane.b32.xlu0 %v5234_v10, %s4939_s0 }
 0x3a8   :  { %v446_v11 = vpop.f32.mrf.mxu2 }
 0x3a9   :  { %v5238_v12 = vadd.f32 %v4559_v8, %v446_v11 }
 0x3ab   :  { %453 = vrot.lane.b32.xlu1 %v5238_v12, %s4940_s5  ;;  %555 = vrot.lane.b32.xlu2 %v5238_v12, %s4939_s0 }
 0x3ac   :  { %451 = vrot.lane.b32.xlu0 %v5234_v10, %s4940_s5 }
 0x3b3   :  { %755 = vrot.lane.b32.xlu1 %v5238_v12, %s4941_s9  ;;  %549 = vrot.lane.b32.xlu2 %v5234_v10, %s4942_s13 }
 0x3b4   :  { %753 = vrot.lane.b32.xlu0 %v5234_v10, %s4941_s9 }
 0x3bb   :  { %655 = vrot.lane.b32.xlu1 %v5238_v12, %s4943_s17  ;;  %551 = vrot.lane.b32.xlu2 %v5238_v12, %s4942_s13 }
 0x3bc   :  { %653 = vrot.lane.b32.xlu0 %v5234_v10, %s4943_s17 }
 0x3c3   :  { %649 = vrot.lane.b32.xlu1 %v5234_v10, %s4944_s21  ;;  %749 = vrot.lane.b32.xlu2 %v5234_v10, %s4945_s25 }
 0x3c4   :  { %651 = vrot.lane.b32.xlu0 %v5238_v12, %s4944_s21 }
 0x3cb   :  { %751 = vrot.lane.b32.xlu2 %v5238_v12, %s4945_s25 }
 0x405   :  { %v556_v13 = vpop.permute.xlu2 %555 }
 0x406   :  { %4190 = vmatpush.xpose.msk.msrb.mxu2 %vm455_vm4, %v556_v13  ;;  %v4474_v13 = vpack.i.bf16 %v5234_v10, %v5238_v12 }
 0x40d   :  { %v550_v15 = vpop.permute.xlu2 %549 }
 0x415   :  { %v554_v14 = vpop.permute.xlu0 %553  ;;  %v552_v18 = vpop.permute.xlu2 %551 }
 0x416   :  { %4191 = vmatpush.xpose.msk.msrb.mxu2 %vm455_vm4, %v554_v14 }
 0x419   :  { %4192 = vmatmul.msk.f32.vlgmr.msrb.gmra.mxu2 %vm455_vm4, %v550_v15 }
 0x41d   :  { %v454_v16 = vpop.permute.xlu1 %453  ;;  %v750_v22 = vpop.permute.xlu2 %749 }
 0x41e   :  { %v452_v17 = vpop.permute.xlu0 %451  ;;  %4184 = vmatpush.xpose.msk.msra.mxu3 %vm455_vm4, %v454_v16 }
 0x421   :  { %4193 = vmatmul.msk.f32.gmra.mxu2 %vm455_vm4, %v552_v18 }
 0x422   :  { %4185 = vmatpush.xpose.msk.msra.mxu3 %vm455_vm4, %v452_v17 }
 0x425   :  { %v756_v19 = vpop.permute.xlu1 %755  ;;  %4186 = vmatmul.msk.f32.vlgmr.msra.gmra.mxu3 %vm455_vm4, %v5234_v10  ;;  %v752_v25 = vpop.permute.xlu2 %751 }
 0x426   :  { %4202 = vmatpush.xpose.msk.msra.mxu2 %vm455_vm4, %v756_v19  ;;  %v754_v20 = vpop.permute.xlu0 %753 }
 0x42a   :  { %4203 = vmatpush.xpose.msk.msra.mxu2 %vm455_vm4, %v754_v20 }
 0x42d   :  { %v656_v23 = vpop.permute.xlu1 %655  ;;  %4187 = vmatmul.msk.f32.gmra.mxu3 %vm455_vm4, %v5238_v12  ;;  %4204 = vmatmul.msk.f32.vlgmr.msra.gmra.mxu2 %vm455_vm4, %v750_v22 }
 0x42e   :  { %4196 = vmatpush.xpose.msk.msrb.mxu0 %vm455_vm4, %v656_v23  ;;  %v654_v24 = vpop.permute.xlu0 %653 }
 0x432   :  { %4197 = vmatpush.xpose.msk.msrb.mxu0 %vm455_vm4, %v654_v24 }
 0x435   :  { %v650_v26 = vpop.permute.xlu1 %649  ;;  %4205 = vmatmul.msk.f32.gmra.mxu2 %vm455_vm4, %v752_v25 }
 0x436   :  { %4198 = vmatmul.msk.f32.vlgmr.msrb.gmra.mxu0 %vm455_vm4, %v650_v26  ;;  %v652_v28 = vpop.permute.xlu0 %651 }
 0x43e   :  { %4199 = vmatmul.msk.f32.gmra.mxu0 %vm455_vm4, %v652_v28 }
 0x49c   :  { %v582_v36 = vpop.f32.mrf.mxu2 }
 0x49d   :  { %v588_v39 = vmul.f32 0.35355338, %v582_v36 }
 0x49f   :  { %v590_v40 = vadd.f32 %v588_v39, %v5302_v38 }
 0x4a1   :  { %v592_v41 = vsel %vm491_vm8, %v590_v40, -inf }
 0x4a2   :  { %593 = vmax.xlane.f32.xlu2 %v592_v41 }
 0x4a4   :  { %v585_v43 = vpop.f32.mrf.mxu2 }
 0x4a5   :  { %v589_v60 = vmul.f32 0.35355338, %v585_v43 }
 0x4a7   :  { %v591_v3 = vadd.f32 %v589_v60, %v5322_v54 }
 0x4a8   :  { %v481_v44 = vpop.f32.mrf.mxu3 }
 0x4a9   :  { %v487_v46 = vmul.f32 0.35355338, %v481_v44  ;;  %v595_v7 = vsel %vm491_vm8, %v591_v3, -inf }
 0x4ab   :  { %v489_v47 = vadd.f32 %v487_v46, %v5302_v38 }
 0x4ad   :  { %v492_v49 = vsel %vm491_vm8, %v489_v47, -inf }
 0x4ae   :  { %493 = vmax.xlane.f32.xlu1 %v492_v49 }
 0x4b0   :  { %v484_v50 = vpop.f32.mrf.mxu3  ;;  %v782_v51 = vpop.f32.mrf.mxu2 }
 0x4b1   :  { %v488_v53 = vmul.f32 0.35355338, %v484_v50  ;;  %v788_v6 = vmul.f32 0.35355338, %v782_v51 }
 0x4b3   :  { %v682_v55 = vpop.f32.mrf.mxu0  ;;  %v5325_v56 = vadd.f32 %v488_v53, %v5322_v54  ;;  %v790_v9 = vadd.f32 %v788_v6, %v5302_v38 }
 0x4b4   :  { %v688_v57 = vmul.f32 0.35355338, %v682_v55 }
 0x4b5   :  { %v495_v58 = vsel %vm491_vm8, %v5325_v56, -inf  ;;  %v792_v11 = vsel %vm491_vm8, %v790_v9, -inf }
 0x4b6   :  { %496 = vmax.xlane.f32.xlu2 %v495_v58  ;;  %v690_v59 = vadd.f32 %v688_v57, %v5302_v38 }
 0x4b8   :  { %v785_v61 = vpop.f32.mrf.mxu2  ;;  %v692_v62 = vsel %vm491_vm8, %v690_v59, -inf }
 0x4b9   :  { %v789_v63 = vmul.f32 0.35355338, %v785_v61  ;;  %693 = vmax.xlane.f32.xlu0 %v692_v62 }
 0x4bb   :  { %v685_v0 = vpop.f32.mrf.mxu0  ;;  %v5332_v1 = vadd.f32 %v789_v63, %v5322_v54 }
 0x4bc   :  { %v689_v2 = vmul.f32 0.35355338, %v685_v0 }
 0x4bd   :  { %v795_v4 = vsel %vm491_vm8, %v5332_v1, -inf }
 0x4be   :  { %796 = vmax.xlane.f32.xlu2 %v795_v4  ;;  %v5338_v5 = vadd.f32 %v689_v2, %v5322_v54 }
 0x4c0   :  { %v695_v8 = vsel %vm491_vm8, %v5338_v5, -inf }
 0x4c1   :  { %596 = vmax.xlane.f32.xlu0 %v595_v7  ;;  %696 = vmax.xlane.f32.xlu1 %v695_v8 }
 0x4c9   :  { %793 = vmax.xlane.f32.xlu1 %v792_v11 }
 0x4e2   :  { %4475 = vrot.lane.b32.xlu1 %v4474_v13, %s4947_s30 }
 0x515   :  { %v594_v14 = vpop.xlane.xlu2 %593 }
 0x516   :  { %v598_v15 = vsub.f32 %v590_v40, %v594_v14 }
 0x518   :  { %v600_v16 = vmul.f32 1.442695, %v598_v15 }
 0x51a   :  { %4603 = vpow2.f32 %v600_v16 }
 0x520   :  { %v4604_v17 = vpop.eup %4603 }
 0x521   :  { %v494_v18 = vpop.xlane.xlu1 %493  ;;  %v604_v19 = vsel %vm491_vm8, %v4604_v17, 0.0 }
 0x522   :  { %v498_v20 = vsub.f32 %v489_v47, %v494_v18  ;;  %605 = vadd.xlane.f32.xlu0 %v604_v19 }
 0x524   :  { %v500_v22 = vmul.f32 1.442695, %v498_v20 }
 0x526   :  { %4605 = vpow2.f32 %v500_v22 }
 0x529   :  { %v497_v39 = vpop.xlane.xlu2 %496 }
 0x52a   :  { %v499_v44 = vsub.f32 %v5325_v56, %v497_v39 }
 0x52c   :  { %v5349_v23 = vpop.eup %4605  ;;  %v694_v24 = vpop.xlane.xlu0 %693  ;;  %v502_v46 = vmul.f32 1.442695, %v499_v44 }
 0x52d   :  { %v698_v25 = vsub.f32 %v690_v59, %v694_v24  ;;  %v504_v10 = vsel %vm491_vm8, %v5349_v23, 0.0 }
 0x52e   :  { %505 = vadd.xlane.f32.xlu2 %v504_v10 }
 0x52f   :  { %v700_v12 = vmul.f32 1.442695, %v698_v25 }
 0x531   :  { %4607 = vpow2.f32 %v700_v12  ;;  %v797_v47 = vpop.xlane.xlu2 %796 }
 0x532   :  { %v799_v50 = vsub.f32 %v5332_v1, %v797_v47 }
 0x534   :  { %v697_v29 = vpop.xlane.xlu1 %696  ;;  %v597_v31 = vpop.xlane.xlu0 %596  ;;  %v802_v55 = vmul.f32 1.442695, %v799_v50 }
 0x535   :  { %v599_v36 = vsub.f32 %v591_v3, %v597_v31  ;;  %v699_v0 = vsub.f32 %v5338_v5, %v697_v29 }
 0x536   :  { %4485 = vrot.lane.b32.xlu0 %v4474_v13, %s4948_s6 }
 0x537   :  { %v5354_v26 = vpop.eup %4607  ;;  %v602_v40 = vmul.f32 1.442695, %v599_v36  ;;  %v702_v3 = vmul.f32 1.442695, %v699_v0 }
 0x538   :  { %v704_v28 = vsel %vm491_vm8, %v5354_v26, 0.0 }
 0x539   :  { %705 = vadd.xlane.f32.xlu1 %v704_v28  ;;  %4609 = vpow2.f32 %v602_v40 }
 0x53a   :  { %4611 = vpow2.f32 %v502_v46 }
 0x53b   :  { %4613 = vpow2.f32 %v802_v55 }
 0x53c   :  { %v794_v32 = vpop.xlane.xlu1 %793 }
 0x53d   :  { %v798_v51 = vsub.f32 %v790_v9, %v794_v32 }
 0x53f   :  { %v4610_v49 = vpop.eup %4609  ;;  %v800_v57 = vmul.f32 1.442695, %v798_v51 }
 0x540   :  { %v607_v53 = vsel %vm491_vm8, %v4610_v49, 0.0  ;;  %v4612_v58 = vpop.eup %4611 }
 0x541   :  { %4615 = vpow2.f32 %v800_v57  ;;  %v507_v56 = vsel %vm491_vm8, %v4612_v58, 0.0  ;;  %v4614_v59 = vpop.eup %4613  ;;  %v883_v57 = vld [vmem:[%s5014_s19 + $0x18] sm:$0xff] }
 0x542   :  { %v807_v61 = vsel %vm491_vm8, %v4614_v59, 0.0  ;;  %902 = vmatpush.msra.mxu0 %v883_v57 }
 0x546   :  { %4480 = vrot.lane.b32.xlu2 %v4474_v13, %s4949_s20 }
 0x547   :  { %v4616_v60 = vpop.eup %4615 }
 0x548   :  { %v804_v62 = vsel %vm491_vm8, %v4616_v60, 0.0 }
 0x554   :  { %v4476_v41 = vpop.permute.xlu1 %4475 }
 0x555   :  { %v4477_v43 = vunpack.i.l.bf16 %v4476_v41  ;;  %v4478_v45 = vunpack.i.h.bf16 %v4476_v41 }
 0x557   :  { %640 = vmatpush.msrb.mxu3 %v4477_v43 }
 0x559   :  { %641 = vmatpush.msrb.mxu3 %v4478_v45 }
 0x560   :  { %608 = vadd.xlane.f32.xlu0 %v607_v53 }
 0x568   :  { %508 = vadd.xlane.f32.xlu0 %v507_v56  ;;  %v881_v56 = vld [vmem:[%s5014_s19 + $0x8] sm:$0xff] }
 0x56f   :  { %808 = vadd.xlane.f32.xlu2 %v807_v61 }
 0x570   :  { %805 = vadd.xlane.f32.xlu0 %v804_v62 }
 0x584   :  { %4490 = vrot.lane.b32.xlu0 %v4474_v13, %s4950_s11 }
 0x595   :  { %v606_v63 = vpop.xlane.xlu0 %605 }
 0x596   :  { %4617 = vrcp.f32 %v606_v63 }
 0x597   :  { %4619 = vpow2.f32 %v702_v3 }
 0x59c   :  { %v4618_v1 = vpop.eup %4617 }
 0x59d   :  { %v612_v2 = vmul.f32 %v4618_v1, %v4604_v17  ;;  %v4620_v7 = vpop.eup %4619 }
 0x59e   :  { %v707_v5 = vsel %vm491_vm8, %v4620_v7, 0.0 }
 0x59f   :  { %4194 = vmatmul.msk.f32.vlgmr.msrb.gmra.mxu3 %vm491_vm8, %v612_v2 }
 0x5a1   :  { %v506_v4 = vpop.xlane.xlu2 %505 }
 0x5a2   :  { %4621 = vrcp.f32 %v506_v4 }
 0x5a8   :  { %v4486_v6 = vpop.permute.xlu0 %4485  ;;  %v4622_v11 = vpop.eup %4621 }
 0x5a9   :  { %v4487_v8 = vunpack.i.l.bf16 %v4486_v6  ;;  %v4481_v9 = vpop.permute.xlu2 %4480  ;;  %v4488_v15 = vunpack.i.h.bf16 %v4486_v6  ;;  %v512_v16 = vmul.f32 %v4622_v11, %v5349_v23 }
 0x5aa   :  { %v4482_v14 = vunpack.i.l.bf16 %v4481_v9  ;;  %v4483_v13 = vunpack.i.h.bf16 %v4481_v9  ;;  %v4560_v9 = vld [vmem:[%s5019_s24] ss:$0 sm:$0xff] }
 0x5ab   :  { %840 = vmatpush.msra.mxu3 %v4487_v8 }
 0x5ac   :  { %540 = vmatpush.msrb.mxu1 %v4482_v14  ;;  %v706_v28 = vpop.xlane.xlu1 %705 }
 0x5ad   :  { %841 = vmatpush.msra.mxu3 %v4488_v15 }
 0x5ae   :  { %541 = vmatpush.msrb.mxu1 %v4483_v13  ;;  %708 = vadd.xlane.f32.xlu0 %v707_v5 }
 0x5af   :  { %4188 = vmatmul.msk.f32.vlgmr.msrb.gmra.mxu1 %vm491_vm8, %v512_v16 }
 0x5d3   :  { %v609_v17 = vpop.xlane.xlu0 %608 }
 0x5d4   :  { %4623 = vrcp.f32 %v609_v17 }
 0x5da   :  { %v4624_v18 = vpop.eup %4623 }
 0x5db   :  { %v509_v19 = vpop.xlane.xlu0 %508  ;;  %v613_v20 = vmul.f32 %v4624_v18, %v4610_v49 }
 0x5dc   :  { %4625 = vrcp.f32 %v509_v19 }
 0x5dd   :  { %4195 = vmatmul.msk.f32.gmra.mxu3 %vm491_vm8, %v613_v20 }
 0x5e2   :  { %v4626_v22 = vpop.eup %4625  ;;  %v809_v10 = vpop.xlane.xlu2 %808 }
 0x5e3   :  { %v806_v24 = vpop.xlane.xlu0 %805  ;;  %v513_v25 = vmul.f32 %v4626_v22, %v4612_v58  ;;  %v882_v58 = vld [vmem:[%s5014_s19 + $0x10] sm:$0xff] }
 0x5e4   :  { %4627 = vrcp.f32 %v806_v24  ;;  %903 = vmatpush.msra.mxu0 %v882_v58 }
 0x5e5   :  { %4189 = vmatmul.msk.f32.gmra.mxu1 %vm491_vm8, %v513_v25  ;;  %4629 = vrcp.f32 %v809_v10 }
 0x5e6   :  { %4631 = vrcp.f32 %v706_v28  ;;  %904 = vmatpush.msra.mxu0 %v881_v56  ;;  %v980_v28 = vld [vmem:[%s5034_s12 + $0x18] sm:$0xff] }
 0x5ea   :  { %v4628_v23 = vpop.eup %4627 }
 0x5eb   :  { %v812_v12 = vmul.f32 %v4628_v23, %v4616_v60  ;;  %v4630_v29 = vpop.eup %4629 }
 0x5ec   :  { %v813_v31 = vmul.f32 %v4630_v29, %v4614_v59  ;;  %v4632_v36 = vpop.eup %4631  ;;  %v880_v59 = vld [vmem:[%s5014_s19] sm:$0xff]  ;;  %v979_v29 = vld [vmem:[%s5034_s12 + $0x10] sm:$0xff] }
 0x5ed   :  { %4206 = vmatmul.msk.f32.vlgmr.msra.gmra.mxu3 %vm491_vm8, %v812_v12  ;;  %v712_v41 = vmul.f32 %v4632_v36, %v5354_v26  ;;  %905 = vmatpush.msra.mxu0 %v880_v59 }
 0x5f5   :  { %4207 = vmatmul.msk.f32.gmra.mxu3 %vm491_vm8, %v813_v31  ;;  %v978_v31 = vld [vmem:[%s5034_s12 + $0x8] sm:$0xff] }
 0x5f6   :  { %v4491_v32 = vpop.permute.xlu0 %4490 }
 0x5f7   :  { %v4492_v39 = vunpack.i.l.bf16 %v4491_v32  ;;  %v4493_v40 = vunpack.i.h.bf16 %v4491_v32  ;;  %v977_v32 = vld [vmem:[%s5034_s12] sm:$0xff] }
 0x5f9   :  { %740 = vmatpush.msra.mxu1 %v4492_v39 }
 0x5fb   :  { %741 = vmatpush.msra.mxu1 %v4493_v40 }
 0x5fc   :  { %4200 = vmatmul.msk.f32.vlgmr.msra.gmra.mxu1 %vm491_vm8, %v712_v41 }
 0x5fd   :  { %1003 = vmatpush.msrb.mxu1 %v980_v28 }
 0x5ff   :  { %1004 = vmatpush.msrb.mxu1 %v979_v29 }
 0x601   :  { %1005 = vmatpush.msrb.mxu1 %v978_v31 }
 0x603   :  { %1006 = vmatpush.msrb.mxu1 %v977_v32 }
 0x621   :  { %v709_v43 = vpop.xlane.xlu0 %708 }
 0x622   :  { %4633 = vrcp.f32 %v709_v43  ;;  %v643_v44 = vpop.f32.mrf.mxu3 }
 0x623   :  { %851 = vrot.lane.b32.xlu1 %v643_v44, %s4951_s16 }
 0x628   :  { %v4634_v45 = vpop.eup %4633 }
 0x629   :  { %v713_v46 = vmul.f32 %v4634_v45, %v4620_v7 }
 0x62b   :  { %4201 = vmatmul.msk.f32.gmra.mxu1 %vm491_vm8, %v713_v46 }
 0x62c   :  { %v543_v49 = vpop.f32.mrf.mxu1 }
 0x660   :  { %v646_v47 = vpop.f32.mrf.mxu3 }
 0x662   :  { %v546_v26 = vpop.f32.mrf.mxu1 }
 0x670   :  { %v843_v50 = vpop.f32.mrf.mxu3 }
 0x671   :  { %867 = vrot.lane.b32.xlu1 %v843_v50, %s4952_s15 }
 0x678   :  { %v846_v51 = vpop.f32.mrf.mxu3 }
 0x679   :  { %v743_v53 = vpop.f32.mrf.mxu1  ;;  %869 = vrot.lane.b32.xlu1 %v846_v51, %s4952_s15  ;;  %v4562_v51 = vld [vmem:[%s6423_s22] ss:$0 sm:$0xff] }
 0x67a   :  { %859 = vrot.lane.b32.xlu2 %v743_v53, %s4953_s18 }
 0x682   :  { %853 = vrot.lane.b32.xlu2 %v646_v47, %s4951_s16 }
 0x695   :  { %v852_v60 = vpop.permute.xlu1 %851 }
 0x696   :  { %v873_v62 = vsel %vm455_vm4, %v543_v49, %v852_v60  ;;  %v4561_v49 = vld [vmem:[%s6422_s23] ss:$0 sm:$0xff] }
 0x6a8   :  { %v746_v55 = vpop.f32.mrf.mxu1 }
 0x6a9   :  { %861 = vrot.lane.b32.xlu0 %v746_v55, %s4953_s18 }
 0x6d4   :  { %v860_v61 = vpop.permute.xlu2 %859 }
 0x6d5   :  { %v875_v63 = vsel %vm491_vm8, %v873_v62, %v860_v61 }
 0x6dc   :  { %v854_v2 = vpop.permute.xlu2 %853 }
 0x6dd   :  { %v874_v3 = vsel %vm455_vm4, %v546_v26, %v854_v2 }
 0x6e3   :  { %v868_v0 = vpop.permute.xlu1 %867 }
 0x6e4   :  { %v878_v1 = vsel %vm877_vm11, %v875_v63, %v868_v0 }
 0x6e5   :  { %4208 = vmatmul.msk.f32.vlgmr.msra.gmra.mxu0 %vm252_vm1, %v878_v1 }
 0x6eb   :  { %v870_v6 = vpop.permute.xlu1 %869 }
 0x71b   :  { %v862_v4 = vpop.permute.xlu0 %861 }
 0x71c   :  { %v876_v7 = vsel %vm491_vm8, %v874_v3, %v862_v4 }
 0x71d   :  { %v879_v8 = vsel %vm877_vm11, %v876_v7, %v870_v6  ;;  %v1063_v6 = vld [vmem:[%s6424_s28 + $0x38] sm:$0xff]  ;;  %v1062_v7 = vld [vmem:[%s6424_s28 + $0x30] sm:$0xff] }
 0x71e   :  { %4209 = vmatmul.msk.f32.gmra.mxu0 %vm252_vm1, %v879_v8  ;;  %1078 = vmatpush.msrb.mxu2 %v1063_v6  ;;  %v1061_v8 = vld [vmem:[%s6424_s28 + $0x28] sm:$0xff] }
 0x720   :  { %1079 = vmatpush.msrb.mxu2 %v1062_v7 }
 0x722   :  { %1080 = vmatpush.msrb.mxu2 %v1061_v8 }
 0x762   :  { %v907_v11 = vpop.f32.mrf.mxu0 }
 0x763   :  { %v913_v14 = vadd.f32 %v907_v11, %v5209_v21  ;;  %v1059_v11 = vld [vmem:[%s6424_s28 + $0x18] sm:$0xff] }
 0x765   :  { %v5398_v15 = vadd.f32 %v4560_v9, %v913_v14  ;;  %v4563_v14 = vld [vmem:[%s6425_s1] ss:$0 sm:$0xff] }
 0x767   :  { %v923_v13 = vsel %vm252_vm1, %v5398_v15, 0.0 }
 0x768   :  { %924 = vadd.xlane.f32.xlu2 %v923_v13  ;;  %v1058_v13 = vld [vmem:[%s6424_s28 + $0x10] sm:$0xff] }
 0x79b   :  { %v910_v5 = vpop.f32.mrf.mxu0 }
 0x79c   :  { %v914_v16 = vadd.f32 %v910_v5, %v5213_v27 }
 0x79e   :  { %v5403_v17 = vadd.f32 %v4560_v9, %v914_v16  ;;  %v1060_v9 = vld [vmem:[%s6424_s28 + $0x20] sm:$0xff]  ;;  %v1057_v16 = vld [vmem:[%s6424_s28 + $0x8] sm:$0xff] }
 0x79f   :  { %1081 = vmatpush.msrb.mxu2 %v1060_v9 }
 0x7a0   :  { %v926_v18 = vsel %vm252_vm1, %v5403_v17, 0.0 }
 0x7a1   :  { %927 = vadd.xlane.f32.xlu1 %v926_v18  ;;  %1082 = vmatpush.msrb.mxu2 %v1059_v11 }
 0x7a3   :  { %1083 = vmatpush.msrb.mxu2 %v1058_v13 }
 0x7a5   :  { %1084 = vmatpush.msrb.mxu2 %v1057_v16  ;;  %v4221_v16 = vld [vmem:[%s5004_s8 + $0x38] sm:$0xff] }
 0x7a6   :  { %1187 = vmatpush.msrb.mxu3 %v4221_v16 }
 0x7db   :  { %v925_v19 = vpop.xlane.xlu2 %924 }
 0x7dc   :  { %v929_v21 = vmul.f32 %v925_v19, %v5199_v52  ;;  %v1056_v19 = vld [vmem:[%s6424_s28] sm:$0xff] }
 0x7dd   :  { %1085 = vmatpush.msrb.mxu2 %v1056_v19  ;;  %v4219_v19 = vld [vmem:[%s5004_s8 + $0x28] sm:$0xff] }
 0x7de   :  { %v931_v20 = vsub.f32 %v5398_v15, %v929_v21 }
 0x7e0   :  { %v933_v22 = vmul.f32 %v931_v20, %v931_v20 }
 0x7e2   :  { %v935_v24 = vsel %vm252_vm1, %v933_v22, 0.0 }
 0x7e3   :  { %936 = vadd.xlane.f32.xlu0 %v935_v24 }
 0x814   :  { %v928_v27 = vpop.xlane.xlu1 %927 }
 0x815   :  { %v930_v25 = vmul.f32 %v928_v27, %v5199_v52 }
 0x817   :  { %v932_v10 = vsub.f32 %v5403_v17, %v930_v25 }
 0x819   :  { %v934_v23 = vmul.f32 %v932_v10, %v932_v10 }
 0x81b   :  { %v938_v12 = vsel %vm252_vm1, %v934_v23, 0.0 }
 0x81c   :  { %939 = vadd.xlane.f32.xlu2 %v938_v12 }
 0x856   :  { %v937_v36 = vpop.xlane.xlu0 %936 }
 0x857   :  { %v941_v39 = vmul.f32 %v937_v36, %v5199_v52 }
 0x859   :  { %v943_v40 = vadd.f32 1e-05, %v941_v39 }
 0x85b   :  { %4635 = vrsqrt.f32 %v943_v40  ;;  %vm951_vm13 = vweird.f32 %v943_v40 }
 0x861   :  { %v4636_v41 = vpop.eup %4635 }
 0x862   :  { %v946_v43 = vmul.f32 %v4636_v41, %v943_v40  ;;  %vm952_vm12 = vweird.f32 %v4636_v41 }
 0x863   :  { %vm953_vm14 = vmor %vm951_vm13, %vm952_vm12 }
 0x864   :  { %v947_v44 = vmul.f32 %v4636_v41, %v946_v43 }
 0x866   :  { %v948_v45 = vmul.f32 0.5, %v947_v44 }
 0x868   :  { %v949_v46 = vsub.f32 1.5, %v948_v45 }
 0x86a   :  { %v950_v47 = vmul.f32 %v4636_v41, %v949_v46 }
 0x86c   :  { %v954_v50 = vsel %vm953_vm14, %v4636_v41, %v950_v47 }
 0x86d   :  { %v965_v26 = vmul.f32 %v954_v50, %v931_v20 }
 0x86f   :  { %v970_v53 = vmul.f32 %v4561_v49, %v965_v26 }
 0x871   :  { %v975_v55 = vadd.f32 %v4562_v51, %v970_v53 }
 0x873   :  { %4210 = vmatmul.msk.f32.vlgmr.msrb.gmra.mxu1 %vm252_vm1, %v975_v55 }
 0x88f   :  { %v940_v57 = vpop.xlane.xlu2 %939 }
 0x890   :  { %v942_v58 = vmul.f32 %v940_v57, %v5199_v52 }
 0x892   :  { %v944_v56 = vadd.f32 1e-05, %v942_v58 }
 0x894   :  { %4637 = vrsqrt.f32 %v944_v56  ;;  %vm961_vm2 = vweird.f32 %v944_v56 }
 0x89a   :  { %v4638_v59 = vpop.eup %4637 }
 0x89b   :  { %v956_v60 = vmul.f32 %v4638_v59, %v944_v56  ;;  %vm962_vm15 = vweird.f32 %v4638_v59 }
 0x89c   :  { %vm963_vm3 = vmor %vm961_vm2, %vm962_vm15 }
 0x89d   :  { %v957_v61 = vmul.f32 %v4638_v59, %v956_v60  ;;  %v4564_v60 = vld [vmem:[%s6426_s2] ss:$0 sm:$0xff] }
 0x89f   :  { %v958_v62 = vmul.f32 0.5, %v957_v61 }
 0x8a1   :  { %v959_v63 = vsub.f32 1.5, %v958_v62 }
 0x8a3   :  { %v960_v0 = vmul.f32 %v4638_v59, %v959_v63 }
 0x8a5   :  { %v964_v1 = vsel %vm963_vm3, %v4638_v59, %v960_v0 }
 0x8a6   :  { %v966_v2 = vmul.f32 %v964_v1, %v932_v10 }
 0x8a8   :  { %v971_v3 = vmul.f32 %v4561_v49, %v966_v2 }
 0x8aa   :  { %v976_v4 = vadd.f32 %v4562_v51, %v971_v3 }
 0x8ac   :  { %4211 = vmatmul.msk.f32.gmra.mxu1 %vm252_vm1, %v976_v4 }
 0x8f0   :  { %v1008_v5 = vpop.f32.mrf.mxu1 }
 0x8f1   :  { %v1009_v18 = vadd.f32 %v4563_v14, %v1008_v5 }
 0x8f3   :  { %v4212_v21 = vmul.f32 -1.702, %v1009_v18 }
 0x8f5   :  { %v1018_v20 = vmul.f32 1.442695, %v4212_v21  ;;  %v4218_v21 = vld [vmem:[%s5004_s8 + $0x20] sm:$0xff] }
 0x8f7   :  { %4639 = vpow2.f32 %v1018_v20 }
 0x8fd   :  { %v4640_v22 = vpop.eup %4639 }
 0x8fe   :  { %v1022_v24 = vadd.f32 1.0, %v4640_v22 }
 0x900   :  { %4641 = vrcp.f32 %v1022_v24  ;;  %v1035_v23 = vand.u32 2147483648, %v1022_v24  ;;  %v1033_v28 = vand.u32 2147483647, %v1022_v24  ;;  %vm1029_vm7 = vweird.f32 %v1022_v24 }
 0x902   :  { %v1036_v31 = vor.u32 1.1754944e-38, %v1035_v23  ;;  %vm1034_vm12 = vcmp.eq.f32.partialorder %v1033_v28, 8.507059e+37 }
 0x906   :  { %v4642_v27 = vpop.eup %4641 }
 0x907   :  { %v1025_v25 = vmul.f32 %v4642_v27, %v1022_v24  ;;  %vm1030_vm6 = vweird.f32 %v4642_v27 }
 0x908   :  { %vm1031_vm10 = vmor %vm1029_vm7, %vm1030_vm6 }
 0x909   :  { %v1026_v10 = vsub.f32 1.0, %v1025_v25 }
 0x90b   :  { %v1027_v12 = vmul.f32 %v4642_v27, %v1026_v10 }
 0x90d   :  { %v1028_v29 = vadd.f32 %v4642_v27, %v1027_v12 }
 0x90f   :  { %v1032_v32 = vsel %vm1031_vm10, %v4642_v27, %v1028_v29  ;;  %v4565_v29 = vld [vmem:[%s4994_s29 + $0x1] ss:$0 sm:$0xff]  ;;  %s6427_s29 = sld [smem:[#allocation18_spill]] }
 0x910   :  { %v1037_v36 = vsel %vm1034_vm12, %v1036_v31, %v1032_v32 }
 0x911   :  { %v1054_v39 = vmul.f32 %v1037_v36, %v1009_v18  ;;  %v4220_v18 = vld [vmem:[%s5004_s8 + $0x30] sm:$0xff]  ;;  %v4566_v36 = vld [vmem:[%s4999_s3 + $0x1] ss:$0 sm:$0xff]  ;;  %s6428_s3 = sld [smem:[#allocation17_spill]] }
 0x912   :  { %1188 = vmatpush.msrb.mxu3 %v4220_v18  ;;  %s6429_s8 = sld [smem:[#allocation22_spill]] }
 0x913   :  { %4214 = vmatmul.msk.f32.vlgmr.msrb.gmra.mxu2 %vm208_vm0, %v1054_v39 }
 0x914   :  { %1189 = vmatpush.msrb.mxu3 %v4219_v19 }
 0x916   :  { %1190 = vmatpush.msrb.mxu3 %v4218_v21 }
 0x929   :  { %v1011_v40 = vpop.f32.mrf.mxu1 }
 0x92a   :  { %v1012_v41 = vadd.f32 %v4563_v14, %v1011_v40 }
 0x92c   :  { %v4213_v43 = vmul.f32 -1.702, %v1012_v41 }
 0x92e   :  { %v1020_v44 = vmul.f32 1.442695, %v4213_v43 }
 0x930   :  { %4643 = vpow2.f32 %v1020_v44 }
 0x936   :  { %v4644_v45 = vpop.eup %4643 }
 0x937   :  { %v1023_v46 = vadd.f32 1.0, %v4644_v45 }
 0x939   :  { %4645 = vrcp.f32 %v1023_v46  ;;  %v1050_v26 = vand.u32 2147483648, %v1023_v46  ;;  %v1048_v53 = vand.u32 2147483647, %v1023_v46  ;;  %vm1044_vm14 = vweird.f32 %v1023_v46 }
 0x93b   :  { %v1051_v57 = vor.u32 1.1754944e-38, %v1050_v26  ;;  %vm1049_vm2 = vcmp.eq.f32.partialorder %v1048_v53, 8.507059e+37 }
 0x93f   :  { %v4646_v47 = vpop.eup %4645 }
 0x940   :  { %v1040_v49 = vmul.f32 %v4646_v47, %v1023_v46  ;;  %vm1045_vm13 = vweird.f32 %v4646_v47 }
 0x941   :  { %vm1046_vm15 = vmor %vm1044_vm14, %vm1045_vm13 }
 0x942   :  { %v1041_v50 = vsub.f32 1.0, %v1040_v49 }
 0x944   :  { %v1042_v51 = vmul.f32 %v4646_v47, %v1041_v50 }
 0x946   :  { %v1043_v55 = vadd.f32 %v4646_v47, %v1042_v51 }
 0x948   :  { %v1047_v58 = vsel %vm1046_vm15, %v4646_v47, %v1043_v55 }
 0x949   :  { %v1052_v56 = vsel %vm1049_vm2, %v1051_v57, %v1047_v58  ;;  %v4567_v58 = vld [vmem:[%s5009_s14 + $0x1] ss:$0 sm:$0xff]  ;;  %s6430_s14 = sld [smem:[#allocation15_spill]] }
 0x94a   :  { %v1055_v59 = vmul.f32 %v1052_v56, %v1012_v41 }
 0x94c   :  { %4215 = vmatmul.msk.f32.gmra.mxu2 %vm208_vm0, %v1055_v59 }
 0x996   :  { %v1087_v61 = vpop.f32.mrf.mxu2 }
 0x997   :  { %v1093_v62 = vadd.f32 %v1087_v61, %v5398_v15 }
 0x999   :  { %v5436_v63 = vadd.f32 %v4564_v60, %v1093_v62 }
 0x99b   :  { %v1105_v0 = vsel %vm252_vm1, %v5436_v63, 0.0 }
 0x99c   :  { %1106 = vadd.xlane.f32.xlu1 %v1105_v0 }
 0x9cf   :  { %v1090_v1 = vpop.f32.mrf.mxu2 }
 0x9d0   :  { %v1094_v2 = vadd.f32 %v1090_v1, %v5403_v17 }
 0x9d2   :  { %v5441_v3 = vadd.f32 %v4564_v60, %v1094_v2 }
 0x9d4   :  { %v1108_v4 = vsel %vm252_vm1, %v5441_v3, 0.0 }
 0x9d5   :  { %1109 = vadd.xlane.f32.xlu2 %v1108_v4 }
 0xa0f   :  { %v1107_v6 = vpop.xlane.xlu1 %1106 }
 0xa10   :  { %v1111_v15 = vmul.f32 %v1107_v6, %v5199_v52 }
 0xa12   :  { %v1113_v7 = vsub.f32 %v5436_v63, %v1111_v15 }
 0xa14   :  { %v1115_v8 = vmul.f32 %v1113_v7, %v1113_v7 }
 0xa16   :  { %v1117_v9 = vsel %vm252_vm1, %v1115_v8, 0.0 }
 0xa17   :  { %1118 = vadd.xlane.f32.xlu1 %v1117_v9 }
 0xa48   :  { %v1110_v17 = vpop.xlane.xlu2 %1109 }
 0xa49   :  { %v1112_v11 = vmul.f32 %v1110_v17, %v5199_v52 }
 0xa4b   :  { %v1114_v14 = vsub.f32 %v5441_v3, %v1112_v11 }
 0xa4d   :  { %v1116_v13 = vmul.f32 %v1114_v14, %v1114_v14 }
 0xa4f   :  { %v1120_v5 = vsel %vm252_vm1, %v1116_v13, 0.0 }
 0xa50   :  { %1121 = vadd.xlane.f32.xlu0 %v1120_v5 }
 0xa8a   :  { %v1119_v20 = vpop.xlane.xlu1 %1118 }
 0xa8b   :  { %v1123_v22 = vmul.f32 %v1119_v20, %v5199_v52 }
 0xa8d   :  { %v1125_v24 = vadd.f32 1e-05, %v1123_v22 }
 0xa8f   :  { %4647 = vrsqrt.f32 %v1125_v24  ;;  %vm1133_vm6 = vweird.f32 %v1125_v24 }
 0xa95   :  { %v4648_v27 = vpop.eup %4647 }
 0xa96   :  { %v1128_v25 = vmul.f32 %v4648_v27, %v1125_v24  ;;  %vm1134_vm3 = vweird.f32 %v4648_v27 }
 0xa97   :  { %vm1135_vm7 = vmor %vm1133_vm6, %vm1134_vm3 }
 0xa98   :  { %v1129_v10 = vmul.f32 %v4648_v27, %v1128_v25 }
 0xa9a   :  { %v1130_v23 = vmul.f32 0.5, %v1129_v10 }
 0xa9c   :  { %v1131_v12 = vsub.f32 1.5, %v1130_v23 }
 0xa9e   :  { %v1132_v28 = vmul.f32 %v4648_v27, %v1131_v12 }
 0xaa0   :  { %v1136_v31 = vsel %vm1135_vm7, %v4648_v27, %v1132_v28 }
 0xaa1   :  { %v1147_v32 = vmul.f32 %v1136_v31, %v1113_v7 }
 0xaa3   :  { %v1152_v39 = vmul.f32 %v4565_v29, %v1147_v32 }
 0xaa5   :  { %v1157_v40 = vadd.f32 %v4566_v36, %v1152_v39 }
 0xaa7   :  { %4223 = vmatmul.msk.f32.vlgmr.msrb.gmra.mxu3 %vm252_vm1, %v1157_v40 }
 0xac3   :  { %v1122_v41 = vpop.xlane.xlu0 %1121 }
 0xac4   :  { %v1124_v43 = vmul.f32 %v1122_v41, %v5199_v52 }
 0xac6   :  { %v1126_v44 = vadd.f32 1e-05, %v1124_v43 }
 0xac8   :  { %4649 = vrsqrt.f32 %v1126_v44  ;;  %vm1143_vm12 = vweird.f32 %v1126_v44 }
 0xace   :  { %v4650_v45 = vpop.eup %4649 }
 0xacf   :  { %v1138_v46 = vmul.f32 %v4650_v45, %v1126_v44  ;;  %vm1144_vm10 = vweird.f32 %v4650_v45 }
 0xad0   :  { %vm1145_vm13 = vmor %vm1143_vm12, %vm1144_vm10 }
 0xad1   :  { %v1139_v47 = vmul.f32 %v4650_v45, %v1138_v46 }
 0xad3   :  { %v1140_v49 = vmul.f32 0.5, %v1139_v47 }
 0xad5   :  { %v1141_v50 = vsub.f32 1.5, %v1140_v49 }
 0xad7   :  { %v1142_v26 = vmul.f32 %v4650_v45, %v1141_v50 }
 0xad9   :  { %v1146_v51 = vsel %vm1145_vm13, %v4650_v45, %v1142_v26 }
 0xada   :  { %v1148_v53 = vmul.f32 %v1146_v51, %v1114_v14 }
 0xadc   :  { %v1153_v55 = vmul.f32 %v4565_v29, %v1148_v53 }
 0xade   :  { %v1158_v57 = vadd.f32 %v4566_v36, %v1153_v55 }
 0xae0   :  { %4224 = vmatmul.msk.f32.gmra.mxu3 %vm252_vm1, %v1158_v57 }
 0xb2a   :  { %v1192_v56 = vpop.f32.mrf.mxu3 }
 0xb2b   :  { %v5462_v59 = vadd.f32 %v4567_v58, %v1192_v56 }
 0xb2d   :  { %1296 = vrot.lane.b32.xlu0 %v5462_v59, %s4942_s13  ;;  %1300 = vrot.lane.b32.xlu1 %v5462_v59, %s4939_s0 }
 0xb35   :  { %1200 = vrot.lane.b32.xlu0 %v5462_v59, %s4940_s5 }
 0xb3d   :  { %1500 = vrot.lane.b32.xlu0 %v5462_v59, %s4941_s9 }
 0xb45   :  { %1400 = vrot.lane.b32.xlu0 %v5462_v59, %s4943_s17 }
 0xb63   :  { %v1195_v60 = vpop.f32.mrf.mxu3 }
 0xb64   :  { %v5474_v61 = vadd.f32 %v4567_v58, %v1195_v60 }
 0xb66   :  { %1302 = vrot.lane.b32.xlu2 %v5474_v61, %s4939_s0  ;;  %1398 = vrot.lane.b32.xlu0 %v5474_v61, %s4944_s21  ;;  %v4494_v55 = vpack.i.bf16 %v5462_v59, %v5474_v61 }
 0xb67   :  { %1298 = vrot.lane.b32.xlu1 %v5474_v61, %s4942_s13 }
 0xb6e   :  { %1202 = vrot.lane.b32.xlu2 %v5474_v61, %s4940_s5 }
 0xb6f   :  { %1496 = vrot.lane.b32.xlu1 %v5462_v59, %s4945_s25 }
 0xb76   :  { %1502 = vrot.lane.b32.xlu2 %v5474_v61, %s4941_s9 }
 0xb77   :  { %1498 = vrot.lane.b32.xlu1 %v5474_v61, %s4945_s25 }
 0xb7e   :  { %1402 = vrot.lane.b32.xlu2 %v5474_v61, %s4943_s17 }
 0xb86   :  { %1396 = vrot.lane.b32.xlu2 %v5462_v59, %s4944_s21 }
 0xb9f   :  { %v1297_v62 = vpop.permute.xlu0 %1296  ;;  %v1301_v1 = vpop.permute.xlu1 %1300 }
 0xba7   :  { %v1201_v2 = vpop.permute.xlu0 %1200 }
 0xbaf   :  { %v1501_v15 = vpop.permute.xlu0 %1500 }
 0xbb7   :  { %v1401_v9 = vpop.permute.xlu0 %1400 }
 0xbc0   :  { %v1303_v0 = vpop.permute.xlu2 %1302 }
 0xbc1   :  { %4231 = vmatpush.xpose.msk.msra.mxu2 %vm455_vm4, %v1303_v0 }
 0xbc5   :  { %4232 = vmatpush.xpose.msk.msra.mxu2 %vm455_vm4, %v1301_v1 }
 0xbc8   :  { %v1203_v4 = vpop.permute.xlu2 %1202  ;;  %4233 = vmatmul.msk.f32.vlgmr.msra.gmra.mxu2 %vm455_vm4, %v1297_v62 }
 0xbc9   :  { %4225 = vmatpush.xpose.msk.msrb.mxu0 %vm455_vm4, %v1203_v4 }
 0xbcd   :  { %4226 = vmatpush.xpose.msk.msrb.mxu0 %vm455_vm4, %v1201_v2 }
 0xbd0   :  { %v1503_v6 = vpop.permute.xlu2 %1502  ;;  %4227 = vmatmul.msk.f32.vlgmr.msrb.gmra.mxu0 %vm455_vm4, %v5462_v59 }
 0xbd1   :  { %4243 = vmatpush.xpose.msk.msrb.mxu2 %vm455_vm4, %v1503_v6 }
 0xbd5   :  { %4244 = vmatpush.xpose.msk.msrb.mxu2 %vm455_vm4, %v1501_v15 }
 0xbd8   :  { %v1403_v7 = vpop.permute.xlu2 %1402  ;;  %4228 = vmatmul.msk.f32.gmra.mxu0 %vm455_vm4, %v5474_v61  ;;  %v1399_v14 = vpop.permute.xlu0 %1398 }
 0xbd9   :  { %v1299_v8 = vpop.permute.xlu1 %1298  ;;  %4237 = vmatpush.xpose.msk.msra.mxu0 %vm455_vm4, %v1403_v7 }
 0xbda   :  { %4234 = vmatmul.msk.f32.gmra.mxu2 %vm455_vm4, %v1299_v8 }
 0xbdd   :  { %4238 = vmatpush.xpose.msk.msra.mxu0 %vm455_vm4, %v1401_v9 }
 0xbe0   :  { %v1397_v17 = vpop.permute.xlu2 %1396 }
 0xbe1   :  { %v1497_v11 = vpop.permute.xlu1 %1496  ;;  %4239 = vmatmul.msk.f32.vlgmr.msra.gmra.mxu0 %vm455_vm4, %v1397_v17 }
 0xbe2   :  { %4245 = vmatmul.msk.f32.vlgmr.msrb.gmra.mxu2 %vm455_vm4, %v1497_v11 }
 0xbe9   :  { %v1499_v13 = vpop.permute.xlu1 %1498  ;;  %4240 = vmatmul.msk.f32.gmra.mxu0 %vm455_vm4, %v1399_v14 }
 0xbea   :  { %4246 = vmatmul.msk.f32.gmra.mxu2 %vm455_vm4, %v1499_v13 }
 0xc4b   :  { %v1329_v5 = vpop.f32.mrf.mxu2 }
 0xc4c   :  { %v1335_v16 = vmul.f32 0.35355338, %v1329_v5 }
 0xc4d   :  { %v1229_v18 = vpop.f32.mrf.mxu0 }
 0xc4e   :  { %v1235_v19 = vmul.f32 0.35355338, %v1229_v18  ;;  %v1337_v21 = vadd.f32 %v1335_v16, %v5302_v38 }
 0xc50   :  { %v1339_v20 = vsel %vm491_vm8, %v1337_v21, -inf  ;;  %v1237_v22 = vadd.f32 %v1235_v19, %v5302_v38 }
 0xc51   :  { %1340 = vmax.xlane.f32.xlu1 %v1339_v20 }
 0xc52   :  { %v1239_v24 = vsel %vm491_vm8, %v1237_v22, -inf }
 0xc53   :  { %1240 = vmax.xlane.f32.xlu2 %v1239_v24 }
 0xc55   :  { %v1232_v27 = vpop.f32.mrf.mxu0 }
 0xc56   :  { %v1236_v25 = vmul.f32 0.35355338, %v1232_v27 }
 0xc58   :  { %v1238_v10 = vadd.f32 %v1236_v25, %v5322_v54 }
 0xc5a   :  { %v1242_v23 = vsel %vm491_vm8, %v1238_v10, -inf }
 0xc5b   :  { %1243 = vmax.xlane.f32.xlu1 %v1242_v23 }
 0xc5d   :  { %v1332_v12 = vpop.f32.mrf.mxu2 }
 0xc5e   :  { %v1336_v28 = vmul.f32 0.35355338, %v1332_v12  ;;  %v1429_v29 = vpop.f32.mrf.mxu0 }
 0xc5f   :  { %v1435_v32 = vmul.f32 0.35355338, %v1429_v29 }
 0xc60   :  { %v1338_v31 = vadd.f32 %v1336_v28, %v5322_v54 }
 0xc61   :  { %v1437_v41 = vadd.f32 %v1435_v32, %v5302_v38 }
 0xc62   :  { %v1342_v36 = vsel %vm491_vm8, %v1338_v31, -inf }
 0xc63   :  { %1343 = vmax.xlane.f32.xlu0 %v1342_v36  ;;  %v1439_v46 = vsel %vm491_vm8, %v1437_v41, -inf }
 0xc65   :  { %v1529_v39 = vpop.f32.mrf.mxu2 }
 0xc66   :  { %v1535_v40 = vmul.f32 0.35355338, %v1529_v39  ;;  %v1432_v43 = vpop.f32.mrf.mxu0 }
 0xc67   :  { %v1436_v45 = vmul.f32 0.35355338, %v1432_v43 }
 0xc68   :  { %v5522_v44 = vadd.f32 %v1535_v40, %v5302_v38 }
 0xc69   :  { %v5528_v26 = vadd.f32 %v1436_v45, %v5322_v54 }
 0xc6a   :  { %v1539_v47 = vsel %vm491_vm8, %v5522_v44, -inf }
 0xc6b   :  { %1440 = vmax.xlane.f32.xlu0 %v1439_v46  ;;  %1540 = vmax.xlane.f32.xlu2 %v1539_v47  ;;  %v1442_v53 = vsel %vm491_vm8, %v5528_v26, -inf }
 0xc6d   :  { %v1532_v49 = vpop.f32.mrf.mxu2 }
 0xc6e   :  { %v1536_v50 = vmul.f32 0.35355338, %v1532_v49 }
 0xc70   :  { %v1538_v51 = vadd.f32 %v1536_v50, %v5322_v54 }
 0xc72   :  { %v1542_v38 = vsel %vm491_vm8, %v1538_v51, -inf }
 0xc73   :  { %1443 = vmax.xlane.f32.xlu2 %v1442_v53  ;;  %1543 = vmax.xlane.f32.xlu1 %v1542_v38 }
 0xc8b   :  { %4495 = vrot.lane.b32.xlu2 %v4494_v55, %s4947_s30 }
 0xcc4   :  { %v1341_v57 = vpop.xlane.xlu1 %1340 }
 0xcc5   :  { %v1345_v58 = vsub.f32 %v1337_v21, %v1341_v57 }
 0xcc6   :  { %v1241_v56 = vpop.xlane.xlu2 %1240 }
 0xcc7   :  { %v1347_v60 = vmul.f32 1.442695, %v1345_v58  ;;  %v1245_v62 = vsub.f32 %v1237_v22, %v1241_v56 }
 0xcc9   :  { %4651 = vpow2.f32 %v1347_v60  ;;  %v1247_v0 = vmul.f32 1.442695, %v1245_v62 }
 0xccb   :  { %4653 = vpow2.f32 %v1247_v0 }
 0xcce   :  { %v1244_v54 = vpop.xlane.xlu1 %1243 }
 0xccf   :  { %v4652_v1 = vpop.eup %4651  ;;  %v1246_v2 = vsub.f32 %v1238_v10, %v1244_v54 }
 0xcd0   :  { %v1351_v4 = vsel %vm491_vm8, %v4652_v1, 0.0 }
 0xcd1   :  { %v5538_v6 = vpop.eup %4653  ;;  %v1249_v15 = vmul.f32 1.442695, %v1246_v2  ;;  %1352 = vadd.xlane.f32.xlu0 %v1351_v4 }
 0xcd2   :  { %v1251_v59 = vsel %vm491_vm8, %v5538_v6, 0.0 }
 0xcd3   :  { %4655 = vpow2.f32 %v1249_v15  ;;  %1252 = vadd.xlane.f32.xlu1 %v1251_v59 }
 0xcd6   :  { %v1344_v61 = vpop.xlane.xlu0 %1343 }
 0xcd7   :  { %v1346_v7 = vsub.f32 %v1338_v31, %v1344_v61 }
 0xcd9   :  { %v5542_v8 = vpop.eup %4655  ;;  %v1349_v9 = vmul.f32 1.442695, %v1346_v7 }
 0xcda   :  { %v1254_v17 = vsel %vm491_vm8, %v5542_v8, 0.0 }
 0xcdb   :  { %4657 = vpow2.f32 %v1349_v9  ;;  %1255 = vadd.xlane.f32.xlu0 %v1254_v17 }
 0xcde   :  { %v1441_v11 = vpop.xlane.xlu0 %1440  ;;  %v1541_v14 = vpop.xlane.xlu2 %1540 }
 0xcdf   :  { %v1445_v13 = vsub.f32 %v1437_v41, %v1441_v11  ;;  %v1545_v12 = vsub.f32 %v5522_v44, %v1541_v14 }
 0xce1   :  { %v4658_v5 = vpop.eup %4657  ;;  %v1447_v16 = vmul.f32 1.442695, %v1445_v13  ;;  %v1547_v29 = vmul.f32 1.442695, %v1545_v12  ;;  %v4249_v12 = vld [vmem:[%s5014_s19 + $0x20] sm:$0xff] }
 0xce2   :  { %v1354_v18 = vsel %vm491_vm8, %v4658_v5, 0.0 }
 0xce3   :  { %4659 = vpow2.f32 %v1447_v16  ;;  %1355 = vadd.xlane.f32.xlu0 %v1354_v18 }
 0xce6   :  { %v1444_v19 = vpop.xlane.xlu2 %1443  ;;  %v1544_v25 = vpop.xlane.xlu1 %1543 }
 0xce7   :  { %v1546_v10 = vsub.f32 %v1538_v51, %v1544_v25  ;;  %v1446_v43 = vsub.f32 %v5528_v26, %v1444_v19  ;;  %v4252_v25 = vld [vmem:[%s5014_s19 + $0x38] sm:$0xff] }
 0xce8   :  { %1649 = vmatpush.msrb.mxu0 %v4252_v25 }
 0xce9   :  { %v5547_v21 = vpop.eup %4659  ;;  %v1549_v23 = vmul.f32 1.442695, %v1546_v10  ;;  %v1449_v45 = vmul.f32 1.442695, %v1446_v43  ;;  %v4251_v10 = vld [vmem:[%s5014_s19 + $0x30] sm:$0xff] }
 0xcea   :  { %v1451_v20 = vsel %vm491_vm8, %v5547_v21, 0.0  ;;  %1650 = vmatpush.msrb.mxu0 %v4251_v10 }
 0xceb   :  { %1452 = vadd.xlane.f32.xlu2 %v1451_v20  ;;  %4661 = vpow2.f32 %v1549_v23  ;;  %v4250_v23 = vld [vmem:[%s5014_s19 + $0x28] sm:$0xff]  ;;  %s6431_s19 = sld [smem:[#allocation16_spill]] }
 0xcec   :  { %4500 = vrot.lane.b32.xlu1 %v4494_v55, %s4949_s20  ;;  %4663 = vpow2.f32 %v1547_v29  ;;  %1651 = vmatpush.msrb.mxu0 %v4250_v23 }
 0xcee   :  { %v4496_v22 = vpop.permute.xlu2 %4495  ;;  %1652 = vmatpush.msrb.mxu0 %v4249_v12 }
 0xcef   :  { %v4497_v24 = vunpack.i.l.bf16 %v4496_v22  ;;  %v4498_v27 = vunpack.i.h.bf16 %v4496_v22 }
 0xcf1   :  { %1387 = vmatpush.msra.mxu3 %v4497_v24  ;;  %v4662_v28 = vpop.eup %4661 }
 0xcf2   :  { %v1554_v31 = vsel %vm491_vm8, %v4662_v28, 0.0  ;;  %v4664_v32 = vpop.eup %4663 }
 0xcf3   :  { %1388 = vmatpush.msra.mxu3 %v4498_v27  ;;  %v1551_v36 = vsel %vm491_vm8, %v4664_v32, 0.0 }
 0xcf7   :  { %4505 = vrot.lane.b32.xlu0 %v4494_v55, %s4948_s6 }
 0xd16   :  { %1555 = vadd.xlane.f32.xlu1 %v1554_v31 }
 0xd21   :  { %1552 = vadd.xlane.f32.xlu0 %v1551_v36 }
 0xd35   :  { %4510 = vrot.lane.b32.xlu0 %v4494_v55, %s4950_s11 }
 0xd44   :  { %v1353_v39 = vpop.xlane.xlu0 %1352 }
 0xd45   :  { %4665 = vrcp.f32 %v1353_v39 }
 0xd46   :  { %4667 = vpow2.f32 %v1449_v45  ;;  %v1253_v46 = vpop.xlane.xlu1 %1252 }
 0xd4b   :  { %v4666_v40 = vpop.eup %4665 }
 0xd4c   :  { %v1359_v41 = vmul.f32 %v4666_v40, %v4652_v1  ;;  %v4668_v49 = vpop.eup %4667 }
 0xd4d   :  { %v1454_v53 = vsel %vm491_vm8, %v4668_v49, 0.0 }
 0xd4e   :  { %4235 = vmatmul.msk.f32.vlgmr.msra.gmra.mxu3 %vm491_vm8, %v1359_v41  ;;  %v1256_v44 = vpop.xlane.xlu0 %1255 }
 0xd56   :  { %v1356_v47 = vpop.xlane.xlu0 %1355 }
 0xd57   :  { %4669 = vrcp.f32 %v1356_v47  ;;  %v4568_v47 = vld [vmem:[%s5019_s24 + $0x1] ss:$0 sm:$0xff]  ;;  %s6432_s24 = sld [smem:[#allocation20_spill]] }
 0xd58   :  { %4671 = vrcp.f32 %v1253_v46 }
 0xd59   :  { %4673 = vrcp.f32 %v1256_v44 }
 0xd5d   :  { %v4670_v50 = vpop.eup %4669 }
 0xd5e   :  { %v4501_v51 = vpop.permute.xlu1 %4500  ;;  %v1360_v38 = vmul.f32 %v4670_v50, %v4658_v5  ;;  %v4672_v55 = vpop.eup %4671 }
 0xd5f   :  { %v4502_v57 = vunpack.i.l.bf16 %v4501_v51  ;;  %1455 = vadd.xlane.f32.xlu0 %v1454_v53  ;;  %v4503_v26 = vunpack.i.h.bf16 %v4501_v51  ;;  %v1259_v58 = vmul.f32 %v4672_v55, %v5538_v6  ;;  %v4674_v56 = vpop.eup %4673  ;;  %v1453_v6 = vpop.xlane.xlu2 %1452 }
 0xd60   :  { %4236 = vmatmul.msk.f32.gmra.mxu3 %vm491_vm8, %v1360_v38  ;;  %v1260_v0 = vmul.f32 %v4674_v56, %v5542_v8 }
 0xd61   :  { %1287 = vmatpush.msra.mxu1 %v4502_v57 }
 0xd63   :  { %1288 = vmatpush.msra.mxu1 %v4503_v26 }
 0xd64   :  { %4229 = vmatmul.msk.f32.vlgmr.msra.gmra.mxu1 %vm491_vm8, %v1259_v58 }
 0xd69   :  { %v4506_v60 = vpop.permute.xlu0 %4505 }
 0xd6a   :  { %v4507_v62 = vunpack.i.l.bf16 %v4506_v60  ;;  %v4508_v54 = vunpack.i.h.bf16 %v4506_v60 }
 0xd6c   :  { %4230 = vmatmul.msk.f32.gmra.mxu1 %vm491_vm8, %v1260_v0  ;;  %1587 = vmatpush.msrb.mxu3 %v4507_v62 }
 0xd6e   :  { %1588 = vmatpush.msrb.mxu3 %v4508_v54 }
 0xd89   :  { %v1556_v2 = vpop.xlane.xlu1 %1555 }
 0xd94   :  { %v1553_v1 = vpop.xlane.xlu0 %1552 }
 0xd95   :  { %4675 = vrcp.f32 %v1553_v1 }
 0xd96   :  { %4677 = vrcp.f32 %v1556_v2 }
 0xd97   :  { %4679 = vrcp.f32 %v1453_v6  ;;  %v4259_v6 = vld [vmem:[%s5034_s12 + $0x28] sm:$0xff] }
 0xd9b   :  { %v4676_v4 = vpop.eup %4675 }
 0xd9c   :  { %v1559_v15 = vmul.f32 %v4676_v4, %v4664_v32  ;;  %v4678_v59 = vpop.eup %4677  ;;  %v4261_v4 = vld [vmem:[%s5034_s12 + $0x38] sm:$0xff] }
 0xd9d   :  { %v1560_v61 = vmul.f32 %v4678_v59, %v4662_v28  ;;  %v4680_v8 = vpop.eup %4679  ;;  %v4258_v59 = vld [vmem:[%s5034_s12 + $0x20] sm:$0xff] }
 0xd9e   :  { %4247 = vmatmul.msk.f32.vlgmr.msrb.gmra.mxu3 %vm491_vm8, %v1559_v15  ;;  %v1459_v11 = vmul.f32 %v4680_v8, %v5547_v21  ;;  %v4260_v15 = vld [vmem:[%s5034_s12 + $0x30] sm:$0xff]  ;;  %s6435_s12 = sld [smem:[#allocation21_spill]] }
 0xda6   :  { %4248 = vmatmul.msk.f32.gmra.mxu3 %vm491_vm8, %v1560_v61 }
 0xda7   :  { %v4511_v7 = vpop.permute.xlu0 %4510 }
 0xda8   :  { %v4512_v9 = vunpack.i.l.bf16 %v4511_v7  ;;  %v4513_v17 = vunpack.i.h.bf16 %v4511_v7 }
 0xdaa   :  { %1487 = vmatpush.msrb.mxu1 %v4512_v9 }
 0xdac   :  { %1488 = vmatpush.msrb.mxu1 %v4513_v17 }
 0xdad   :  { %4241 = vmatmul.msk.f32.vlgmr.msrb.gmra.mxu1 %vm491_vm8, %v1459_v11 }
 0xdae   :  { %1755 = vmatpush.msra.mxu1 %v4261_v4 }
 0xdb0   :  { %1756 = vmatpush.msra.mxu1 %v4260_v15 }
 0xdb2   :  { %1757 = vmatpush.msra.mxu1 %v4259_v6 }
 0xdb4   :  { %1758 = vmatpush.msra.mxu1 %v4258_v59 }
 0xdd1   :  { %v1390_v14 = vpop.f32.mrf.mxu3 }
 0xdd2   :  { %1598 = vrot.lane.b32.xlu2 %v1390_v14, %s4951_s16  ;;  %v1456_v13 = vpop.xlane.xlu0 %1455 }
 0xdd3   :  { %4681 = vrcp.f32 %v1456_v13 }
 0xdd9   :  { %v4682_v5 = vpop.eup %4681 }
 0xdda   :  { %v1460_v16 = vmul.f32 %v4682_v5, %v4668_v49 }
 0xddc   :  { %4242 = vmatmul.msk.f32.gmra.mxu1 %vm491_vm8, %v1460_v16  ;;  %v4569_v16 = vld [vmem:[%s6422_s23 + $0x1] ss:$0 sm:$0xff]  ;;  %s6440_s23 = sld [smem:[#allocation24_spill]] }
 0xde1   :  { %v1290_v18 = vpop.f32.mrf.mxu1 }
 0xde3   :  { %v1393_v19 = vpop.f32.mrf.mxu3 }
 0xde9   :  { %v1293_v21 = vpop.f32.mrf.mxu1 }
 0xe21   :  { %v1590_v20 = vpop.f32.mrf.mxu3 }
 0xe22   :  { %1614 = vrot.lane.b32.xlu2 %v1590_v20, %s4952_s15  ;;  %v4570_v20 = vld [vmem:[%s6423_s22 + $0x1] ss:$0 sm:$0xff]  ;;  %s6441_s22 = sld [smem:[#allocation25_spill]] }
 0xe29   :  { %v1593_v24 = vpop.f32.mrf.mxu3 }
 0xe2a   :  { %1600 = vrot.lane.b32.xlu2 %v1393_v19, %s4951_s16  ;;  %v1490_v22 = vpop.f32.mrf.mxu1 }
 0xe2b   :  { %1606 = vrot.lane.b32.xlu1 %v1490_v22, %s4953_s18 }
 0xe2c   :  { %v1599_v28 = vpop.permute.xlu2 %1598 }
 0xe2d   :  { %v1620_v29 = vsel %vm455_vm4, %v1290_v18, %v1599_v28 }
 0xe33   :  { %1616 = vrot.lane.b32.xlu1 %v1593_v24, %s4952_s15 }
 0xe59   :  { %v1493_v27 = vpop.f32.mrf.mxu1 }
 0xe5a   :  { %1608 = vrot.lane.b32.xlu0 %v1493_v27, %s4953_s18 }
 0xe7c   :  { %v1615_v32 = vpop.permute.xlu2 %1614 }
 0xe84   :  { %v1601_v40 = vpop.permute.xlu2 %1600 }
 0xe85   :  { %v1621_v41 = vsel %vm455_vm4, %v1293_v21, %v1601_v40 }
 0xe9d   :  { %v1607_v31 = vpop.permute.xlu1 %1606 }
 0xe9e   :  { %v1622_v36 = vsel %vm491_vm8, %v1620_v29, %v1607_v31 }
 0xe9f   :  { %v1624_v39 = vsel %vm877_vm11, %v1622_v36, %v1615_v32 }
 0xea0   :  { %4253 = vmatmul.msk.f32.vlgmr.msrb.gmra.mxu0 %vm252_vm1, %v1624_v39 }
 0xea5   :  { %v1617_v44 = vpop.permute.xlu1 %1616 }
 0xecc   :  { %v1609_v43 = vpop.permute.xlu0 %1608 }
 0xecd   :  { %v1623_v45 = vsel %vm491_vm8, %v1621_v41, %v1609_v43  ;;  %v4274_v41 = vld [vmem:[%s6424_s28 + $0x78] sm:$0xff]  ;;  %v4273_v43 = vld [vmem:[%s6424_s28 + $0x70] sm:$0xff] }
 0xece   :  { %v1625_v46 = vsel %vm877_vm11, %v1623_v45, %v1617_v44  ;;  %1831 = vmatpush.msra.mxu2 %v4274_v41  ;;  %v4272_v44 = vld [vmem:[%s6424_s28 + $0x68] sm:$0xff]  ;;  %v4271_v45 = vld [vmem:[%s6424_s28 + $0x60] sm:$0xff] }
 0xecf   :  { %4254 = vmatmul.msk.f32.gmra.mxu0 %vm252_vm1, %v1625_v46  ;;  %v4571_v46 = vld [vmem:[%s6425_s1 + $0x1] ss:$0 sm:$0xff]  ;;  %s6443_s1 = sld [smem:[#allocation26_spill]] }
 0xed0   :  { %1832 = vmatpush.msra.mxu2 %v4273_v43 }
 0xed2   :  { %1833 = vmatpush.msra.mxu2 %v4272_v44 }
 0xed4   :  { %1834 = vmatpush.msra.mxu2 %v4271_v45 }
 0xf1d   :  { %v1654_v49 = vpop.f32.mrf.mxu0 }
 0xf1e   :  { %v1660_v50 = vadd.f32 %v1654_v49, %v5436_v63  ;;  %v4269_v49 = vld [vmem:[%s6424_s28 + $0x50] sm:$0xff] }
 0xf20   :  { %v5590_v51 = vadd.f32 %v4568_v47, %v1660_v50 }
 0xf22   :  { %v1673_v53 = vsel %vm252_vm1, %v5590_v51, 0.0 }
 0xf23   :  { %1674 = vadd.xlane.f32.xlu2 %v1673_v53 }
 0xf4c   :  { %v1657_v38 = vpop.f32.mrf.mxu0 }
 0xf4d   :  { %v1661_v55 = vadd.f32 %v1657_v38, %v5441_v3  ;;  %v4268_v38 = vld [vmem:[%s6424_s28 + $0x48] sm:$0xff] }
 0xf4f   :  { %v5595_v57 = vadd.f32 %v4568_v47, %v1661_v55  ;;  %v4270_v47 = vld [vmem:[%s6424_s28 + $0x58] sm:$0xff]  ;;  %v4267_v55 = vld [vmem:[%s6424_s28 + $0x40] sm:$0xff]  ;;  %s6442_s28 = sld [smem:[#allocation28_spill]] }
 0xf50   :  { %1835 = vmatpush.msra.mxu2 %v4270_v47  ;;  %v1921_v47 = vld [vmem:[%s6427_s29 + $0x8] sm:$0xff] }
 0xf51   :  { %v1676_v26 = vsel %vm252_vm1, %v5595_v57, 0.0 }
 0xf52   :  { %1677 = vadd.xlane.f32.xlu1 %v1676_v26  ;;  %1836 = vmatpush.msra.mxu2 %v4269_v49 }
 0xf54   :  { %1837 = vmatpush.msra.mxu2 %v4268_v38 }
 0xf56   :  { %1838 = vmatpush.msra.mxu2 %v4267_v55 }
 0xf96   :  { %v1675_v58 = vpop.xlane.xlu2 %1674 }
 0xf97   :  { %v1679_v63 = vmul.f32 %v1675_v58, %v5199_v52 }
 0xf99   :  { %v1681_v56 = vsub.f32 %v5590_v51, %v1679_v63 }
 0xf9b   :  { %v1683_v60 = vmul.f32 %v1681_v56, %v1681_v56 }
 0xf9d   :  { %v1685_v62 = vsel %vm252_vm1, %v1683_v60, 0.0 }
 0xf9e   :  { %1686 = vadd.xlane.f32.xlu0 %v1685_v62 }
 0xfc5   :  { %v1678_v3 = vpop.xlane.xlu1 %1677 }
 0xfc6   :  { %v1680_v0 = vmul.f32 %v1678_v3, %v5199_v52 }
 0xfc8   :  { %v1682_v54 = vsub.f32 %v5595_v57, %v1680_v0 }
 0xfca   :  { %v1684_v1 = vmul.f32 %v1682_v54, %v1682_v54 }
 0xfcc   :  { %v1688_v2 = vsel %vm252_vm1, %v1684_v1, 0.0 }
 0xfcd   :  { %1689 = vadd.xlane.f32.xlu2 %v1688_v2 }
0x1011   :  { %v1687_v61 = vpop.xlane.xlu0 %1686 }
0x1012   :  { %v1691_v7 = vmul.f32 %v1687_v61, %v5199_v52 }
0x1014   :  { %v1693_v8 = vadd.f32 1e-05, %v1691_v7 }
0x1016   :  { %4683 = vrsqrt.f32 %v1693_v8  ;;  %vm1701_vm15 = vweird.f32 %v1693_v8 }
0x101c   :  { %v4684_v9 = vpop.eup %4683 }
0x101d   :  { %v1696_v17 = vmul.f32 %v4684_v9, %v1693_v8  ;;  %vm1702_vm14 = vweird.f32 %v4684_v9 }
0x101e   :  { %vm1703_vm2 = vmor %vm1701_vm15, %vm1702_vm14 }
0x101f   :  { %v1697_v11 = vmul.f32 %v4684_v9, %v1696_v17 }
0x1021   :  { %v1698_v14 = vmul.f32 0.5, %v1697_v11 }
0x1023   :  { %v1699_v13 = vsub.f32 1.5, %v1698_v14 }
0x1025   :  { %v1700_v5 = vmul.f32 %v4684_v9, %v1699_v13 }
0x1027   :  { %v1704_v18 = vsel %vm1703_vm2, %v4684_v9, %v1700_v5  ;;  %v1920_v9 = vld [vmem:[%s6427_s29] sm:$0xff] }
0x1028   :  { %v1715_v19 = vmul.f32 %v1704_v18, %v1681_v56  ;;  %v1948_v17 = vsel %vm252_vm1, %v1920_v9, 0.0 }
0x1029   :  { %1949 = vadd.xlane.f32.xlu2 %v1948_v17  ;;  %v2029_v17 = vld [vmem:[%s6429_s8 + $0x18] sm:$0xff] }
0x102a   :  { %v1720_v21 = vmul.f32 %v4569_v16, %v1715_v19 }
0x102c   :  { %v1725_v22 = vadd.f32 %v4570_v20, %v1720_v21 }
0x102e   :  { %4263 = vmatmul.msk.f32.vlgmr.msra.gmra.mxu1 %vm252_vm1, %v1725_v22 }
0x1040   :  { %v1690_v24 = vpop.xlane.xlu2 %1689 }
0x1041   :  { %v1692_v27 = vmul.f32 %v1690_v24, %v5199_v52 }
0x1043   :  { %v1694_v25 = vadd.f32 1e-05, %v1692_v27 }
0x1045   :  { %4685 = vrsqrt.f32 %v1694_v25  ;;  %vm1711_vm6 = vweird.f32 %v1694_v25 }
0x104b   :  { %v4686_v10 = vpop.eup %4685 }
0x104c   :  { %v1706_v23 = vmul.f32 %v4686_v10, %v1694_v25  ;;  %vm1712_vm3 = vweird.f32 %v4686_v10 }
0x104d   :  { %vm1713_vm7 = vmor %vm1711_vm6, %vm1712_vm3 }
0x104e   :  { %v1707_v12 = vmul.f32 %v4686_v10, %v1706_v23  ;;  %v1922_v23 = vld [vmem:[%s6427_s29 + $0x10] sm:$0xff] }
0x1050   :  { %v1708_v28 = vmul.f32 0.5, %v1707_v12  ;;  %v1954_v12 = vsel %vm252_vm1, %v1922_v23, 0.0 }
0x1051   :  { %1955 = vadd.xlane.f32.xlu0 %v1954_v12 }
0x1052   :  { %v1709_v29 = vsub.f32 1.5, %v1708_v28 }
0x1054   :  { %v1710_v31 = vmul.f32 %v4686_v10, %v1709_v29 }
0x1056   :  { %v1714_v32 = vsel %vm1713_vm7, %v4686_v10, %v1710_v31  ;;  %vm1858_vm7 = vcmask 1040384  }
0x1057   :  { %v1716_v36 = vmul.f32 %v1714_v32, %v1682_v54  ;;  %v4572_v32 = vld [vmem:[%s6426_s2 + $0x1] ss:$0 sm:$0xff]  ;;  %s6444_s2 = sld [smem:[#allocation27_spill]] }
0x1059   :  { %v1721_v39 = vmul.f32 %v4569_v16, %v1716_v36 }
0x105b   :  { %v1726_v40 = vadd.f32 %v4570_v20, %v1721_v39 }
0x105d   :  { %4264 = vmatmul.msk.f32.gmra.mxu1 %vm252_vm1, %v1726_v40 }
0x109c   :  { %v1950_v44 = vpop.xlane.xlu2 %1949 }
0x10ab   :  { %v1760_v50 = vpop.f32.mrf.mxu1 }
0x10ac   :  { %v1761_v53 = vadd.f32 %v4571_v46, %v1760_v50 }
0x10ae   :  { %v4265_v26 = vmul.f32 -1.702, %v1761_v53 }
0x10b0   :  { %v1770_v58 = vmul.f32 1.442695, %v4265_v26 }
0x10b2   :  { %4687 = vpow2.f32 %v1770_v58 }
0x10b8   :  { %v4688_v63 = vpop.eup %4687 }
0x10b9   :  { %v1774_v56 = vadd.f32 1.0, %v4688_v63 }
0x10bb   :  { %4689 = vrcp.f32 %v1774_v56  ;;  %v1787_v0 = vand.u32 2147483648, %v1774_v56  ;;  %v1785_v1 = vand.u32 2147483647, %v1774_v56  ;;  %vm1781_vm12 = vweird.f32 %v1774_v56 }
0x10bd   :  { %v1788_v4 = vor.u32 1.1754944e-38, %v1787_v0  ;;  %vm1786_vm14 = vcmp.eq.f32.partialorder %v1785_v1, 8.507059e+37 }
0x10c1   :  { %v4690_v60 = vpop.eup %4689 }
0x10c2   :  { %v1777_v62 = vmul.f32 %v4690_v60, %v1774_v56  ;;  %vm1782_vm10 = vweird.f32 %v4690_v60 }
0x10c3   :  { %vm1783_vm13 = vmor %vm1781_vm12, %vm1782_vm10  ;;  %vm1862_vm10 = vcmask 254976  }
0x10c4   :  { %v1778_v3 = vsub.f32 1.0, %v1777_v62 }
0x10c6   :  { %v1779_v54 = vmul.f32 %v4690_v60, %v1778_v3 }
0x10c8   :  { %v1780_v2 = vadd.f32 %v4690_v60, %v1779_v54 }
0x10ca   :  { %v1784_v15 = vsel %vm1783_vm13, %v4690_v60, %v1780_v2 }
0x10cb   :  { %v1789_v6 = vsel %vm1786_vm14, %v1788_v4, %v1784_v15 }
0x10cc   :  { %v1806_v59 = vmul.f32 %v1789_v6, %v1761_v53  ;;  %v1956_v53 = vpop.xlane.xlu0 %1955 }
0x10cd   :  { %v1959_v26 = vmul.f32 %v1956_v53, %v5199_v52 }
0x10ce   :  { %4275 = vmatmul.msk.f32.vlgmr.msra.gmra.mxu2 %vm208_vm0, %v1806_v59 }
0x10cf   :  { %v5649_v56 = vsub.f32 %v1922_v23, %v1959_v26 }
0x10d1   :  { %v1965_v0 = vmul.f32 %v5649_v56, %v5649_v56 }
0x10d3   :  { %v1972_v2 = vsel %vm252_vm1, %v1965_v0, 0.0 }
0x10da   :  { %v1763_v61 = vpop.f32.mrf.mxu1 }
0x10db   :  { %v1764_v7 = vadd.f32 %v4571_v46, %v1763_v61  ;;  %v1957_v46 = vmul.f32 %v1950_v44, %v5199_v52  ;;  %v1896_v61 = vld [vmem:[%s6428_s3 + $0x18] sm:$0xff] }
0x10dc   :  { %1912 = vmatpush.msra.mxu3 %v1896_v61 }
0x10dd   :  { %v4266_v8 = vmul.f32 -1.702, %v1764_v7  ;;  %v5637_v49 = vsub.f32 %v1920_v9, %v1957_v46  ;;  %v1893_v9 = vld [vmem:[%s6428_s3] sm:$0xff] }
0x10df   :  { %v1772_v11 = vmul.f32 1.442695, %v4266_v8  ;;  %v1894_v8 = vld [vmem:[%s6428_s3 + $0x8] sm:$0xff] }
0x10e1   :  { %4691 = vpow2.f32 %v1772_v11  ;;  %v2028_v11 = vld [vmem:[%s6429_s8 + $0x10] sm:$0xff] }
0x10e7   :  { %v4692_v14 = vpop.eup %4691 }
0x10e8   :  { %v1775_v13 = vadd.f32 1.0, %v4692_v14 }
0x10ea   :  { %4693 = vrcp.f32 %v1775_v13  ;;  %v1802_v19 = vand.u32 2147483648, %v1775_v13  ;;  %v1800_v21 = vand.u32 2147483647, %v1775_v13  ;;  %vm1796_vm2 = vweird.f32 %v1775_v13 }
0x10ec   :  { %v1803_v24 = vor.u32 1.1754944e-38, %v1802_v19  ;;  %vm1801_vm6 = vcmp.eq.f32.partialorder %v1800_v21, 8.507059e+37 }
0x10f0   :  { %v4694_v5 = vpop.eup %4693 }
0x10f1   :  { %v1792_v16 = vmul.f32 %v4694_v5, %v1775_v13  ;;  %vm1797_vm15 = vweird.f32 %v4694_v5  ;;  %v2027_v13 = vld [vmem:[%s6429_s8 + $0x8] sm:$0xff] }
0x10f2   :  { %vm1798_vm3 = vmor %vm1796_vm2, %vm1797_vm15 }
0x10f3   :  { %v1793_v18 = vsub.f32 1.0, %v1792_v16 }
0x10f5   :  { %v1794_v20 = vmul.f32 %v4694_v5, %v1793_v18  ;;  %v2026_v18 = vld [vmem:[%s6429_s8] sm:$0xff] }
0x10f7   :  { %v1795_v22 = vadd.f32 %v4694_v5, %v1794_v20 }
0x10f9   :  { %v1799_v27 = vsel %vm1798_vm3, %v4694_v5, %v1795_v22 }
0x10fa   :  { %v1804_v25 = vsel %vm1801_vm6, %v1803_v24, %v1799_v27 }
0x10fb   :  { %v1807_v10 = vmul.f32 %v1804_v25, %v1764_v7  ;;  %v1895_v7 = vld [vmem:[%s6428_s3 + $0x10] sm:$0xff]  ;;  %s6446_s3 = sld [smem:[#allocation29_spill]] }
0x10fc   :  { %1913 = vmatpush.msra.mxu3 %v1895_v7 }
0x10fd   :  { %4276 = vmatmul.msk.f32.gmra.mxu2 %vm208_vm0, %v1807_v10 }
0x10fe   :  { %1914 = vmatpush.msra.mxu3 %v1894_v8 }
0x1100   :  { %1915 = vmatpush.msra.mxu3 %v1893_v9 }
0x1102   :  { %2055 = vmatpush.msrb.mxu3 %v2029_v17 }
0x1104   :  { %2056 = vmatpush.msrb.mxu3 %v2028_v11 }
0x1106   :  { %2057 = vmatpush.msrb.mxu3 %v2027_v13 }
0x1108   :  { %2058 = vmatpush.msrb.mxu3 %v2026_v18 }
0x1151   :  { %v1840_v28 = vpop.f32.mrf.mxu2 }
0x1152   :  { %v1846_v31 = vadd.f32 %v1840_v28, %v5590_v51  ;;  %v1951_v51 = vsel %vm252_vm1, %v1921_v47, 0.0 }
0x1154   :  { %v1853_v40 = vadd.f32 %v4572_v32, %v1846_v31 }
0x1180   :  { %v1843_v29 = vpop.f32.mrf.mxu2 }
0x1181   :  { %v1847_v36 = vadd.f32 %v1843_v29, %v5595_v57  ;;  %v1963_v57 = vmul.f32 %v5637_v49, %v5637_v49 }
0x1183   :  { %v1854_v39 = vadd.f32 %v4572_v32, %v1847_v36  ;;  %v1966_v50 = vsel %vm252_vm1, %v1963_v57, 0.0 }
0x1185   :  { %v1856_v41 = vrot.slane %v1854_v39, 7 }
0x1187   :  { %v1859_v43 = vsel %vm1858_vm7, %v1853_v40, %v1856_v41 }
0x1188   :  { %v1863_v45 = vsel %vm1862_vm10, %v1859_v43, 0.0 }
0x1189   :  { %1864 = vadd.xlane.f32.xlu1 %v1863_v45 }
0x1191   :  { %1952 = vadd.xlane.f32.xlu1 %v1951_v51 }
0x1199   :  { %1967 = vadd.xlane.f32.xlu1 %v1966_v50 }
0x11fc   :  { %v1865_v38 = vpop.xlane.xlu1 %1864 }
0x11fd   :  { %v1866_v55 = vmul.f32 %v1865_v38, %v5199_v52  ;;  %v4575_v38 = vld [vmem:[%s6431_s19] ss:$0 sm:$0xff] }
0x11ff   :  { %v5645_v58 = vsub.f32 %v1859_v43, %v1866_v55 }
0x1201   :  { %v1868_v63 = vmul.f32 %v5645_v58, %v5645_v58 }
0x1203   :  { %v1869_v60 = vsel %vm1862_vm10, %v1868_v63, 0.0 }
0x1204   :  { %1870 = vadd.xlane.f32.xlu2 %v1869_v60  ;;  %v1953_v62 = vpop.xlane.xlu1 %1952 }
0x1205   :  { %v1958_v3 = vmul.f32 %v1953_v62, %v5199_v52  ;;  %v4573_v62 = vld [vmem:[%s6432_s24] ss:$0 sm:$0xff] }
0x1207   :  { %v5655_v54 = vsub.f32 %v1921_v47, %v1958_v3  ;;  %v4574_v47 = vld [vmem:[%s6430_s14] ss:$0 sm:$0xff]  ;;  %s6447_s14 = sld [smem:[#allocation31_spill]] }
0x1209   :  { %v1964_v1 = vmul.f32 %v5655_v54, %v5655_v54 }
0x120b   :  { %v1969_v4 = vsel %vm252_vm1, %v1964_v1, 0.0 }
0x120c   :  { %1970 = vadd.xlane.f32.xlu0 %v1969_v4  ;;  %1973 = vadd.xlane.f32.xlu2 %v1972_v2  ;;  %v1968_v15 = vpop.xlane.xlu1 %1967 }
0x120d   :  { %v1975_v6 = vmul.f32 %v1968_v15, %v5199_v52  ;;  %v4576_v15 = vld [vmem:[%s6435_s12] ss:$0 sm:$0xff] }
0x120f   :  { %v1978_v59 = vadd.f32 1e-05, %v1975_v6 }
0x1211   :  { %4695 = vrsqrt.f32 %v1978_v59  ;;  %vm1987_vm12 = vweird.f32 %v1978_v59 }
0x1217   :  { %v4696_v5 = vpop.eup %4695 }
0x1218   :  { %v1982_v20 = vmul.f32 %v4696_v5, %v1978_v59  ;;  %vm1988_vm13 = vweird.f32 %v4696_v5 }
0x1219   :  { %vm5673_vm15 = vmor %vm1987_vm12, %vm1988_vm13 }
0x121a   :  { %v1983_v21 = vmul.f32 %v4696_v5, %v1982_v20 }
0x121c   :  { %v1984_v28 = vmul.f32 0.5, %v1983_v21 }
0x121e   :  { %v1985_v32 = vsub.f32 1.5, %v1984_v28 }
0x1220   :  { %v1986_v43 = vmul.f32 %v4696_v5, %v1985_v32 }
0x1222   :  { %v1990_v55 = vsel %vm5673_vm15, %v4696_v5, %v1986_v43 }
0x1223   :  { %v2011_v3 = vmul.f32 %v1990_v55, %v5637_v49 }
0x1277   :  { %v1871_v14 = vpop.xlane.xlu2 %1870 }
0x1278   :  { %v1872_v16 = vmul.f32 %v1871_v14, %v5199_v52 }
0x127a   :  { %v1873_v19 = vadd.f32 1e-05, %v1872_v16  ;;  %v4577_v16 = vld [vmem:[%s6436_s7] ss:$0 sm:$0xff] }
0x127c   :  { %4697 = vrsqrt.f32 %v1873_v19  ;;  %vm1880_vm2 = vweird.f32 %v1873_v19 }
0x127f   :  { %v1974_v22 = vpop.xlane.xlu2 %1973  ;;  %v1971_v24 = vpop.xlane.xlu0 %1970 }
0x1280   :  { %v1977_v27 = vmul.f32 %v1974_v22, %v5199_v52  ;;  %v1976_v25 = vmul.f32 %v1971_v24, %v5199_v52 }
0x1282   :  { %v4698_v10 = vpop.eup %4697  ;;  %v1980_v23 = vadd.f32 1e-05, %v1977_v27  ;;  %v1979_v12 = vadd.f32 1e-05, %v1976_v25 }
0x1283   :  { %v1875_v29 = vmul.f32 %v4698_v10, %v1873_v19  ;;  %vm1881_vm14 = vweird.f32 %v4698_v10 }
0x1284   :  { %4699 = vrsqrt.f32 %v1980_v23  ;;  %vm1882_vm3 = vmor %vm1880_vm2, %vm1881_vm14  ;;  %vm1997_vm6 = vweird.f32 %v1979_v12  ;;  %vm2007_vm14 = vweird.f32 %v1980_v23 }
0x1285   :  { %v1876_v31 = vmul.f32 %v4698_v10, %v1875_v29  ;;  %4701 = vrsqrt.f32 %v1979_v12 }
0x1287   :  { %v1877_v36 = vmul.f32 0.5, %v1876_v31 }
0x1289   :  { %v1878_v39 = vsub.f32 1.5, %v1877_v36 }
0x128a   :  { %v4700_v40 = vpop.eup %4699 }
0x128b   :  { %v4702_v41 = vpop.eup %4701  ;;  %v1879_v45 = vmul.f32 %v4698_v10, %v1878_v39  ;;  %v2002_v46 = vmul.f32 %v4700_v40, %v1980_v23  ;;  %vm2008_vm15 = vweird.f32 %v4700_v40 }
0x128c   :  { %v1992_v51 = vmul.f32 %v4702_v41, %v1979_v12  ;;  %vm1998_vm12 = vweird.f32 %v4702_v41  ;;  %vm2009_vm2 = vmor %vm2007_vm14, %vm2008_vm15 }
0x128d   :  { %v1883_v57 = vsel %vm1882_vm3, %v4698_v10, %v1879_v45  ;;  %v2003_v26 = vmul.f32 %v4700_v40, %v2002_v46  ;;  %vm1999_vm13 = vmor %vm1997_vm6, %vm1998_vm12 }
0x128e   :  { %v1884_v50 = vmul.f32 %v1883_v57, %v5645_v58  ;;  %v1993_v53 = vmul.f32 %v4702_v41, %v1992_v51  ;;  %v2017_v58 = vmul.f32 %v4573_v62, %v2011_v3  ;;  %v4954_v3 = vmov 0  }
0x128f   :  { %v2004_v2 = vmul.f32 0.5, %v2003_v26  ;;  %4554 = vset.pattern.permute.xlu0 %v4954_v3 }
0x1290   :  { %v1888_v63 = vmul.f32 %v4574_v47, %v1884_v50  ;;  %v1994_v60 = vmul.f32 0.5, %v1993_v53  ;;  %v2023_v61 = vadd.f32 %v4576_v15, %v2017_v58 }
0x1291   :  { %v2005_v6 = vsub.f32 1.5, %v2004_v2 }
0x1292   :  { %v1995_v0 = vsub.f32 1.5, %v1994_v60  ;;  %v1892_v1 = vadd.f32 %v4575_v38, %v1888_v63 }
0x1293   :  { %v2006_v49 = vmul.f32 %v4700_v40, %v2005_v6 }
0x1294   :  { %v1996_v4 = vmul.f32 %v4702_v41, %v1995_v0  ;;  %4278 = vmatmul.msk.f32.vlgmr.msra.gmra.mxu3 %vm252_vm1, %v1892_v1  ;;  %v1932_v0 = vld [vmem:[%s6437_s10] sm:$0x1]  ;;  %v1926_v1 = vand.u32 7, %v5284_v30 }
0x1295   :  { %v2010_v9 = vsel %vm2009_vm2, %v4700_v40, %v2006_v49  ;;  %vm1933_vm3 = vcmp.gt.f32.partialorder %v1932_v0, 0.5 }
0x1296   :  { %v2000_v59 = vsel %vm1999_vm13, %v4702_v41, %v1996_v4  ;;  %v2013_v11 = vmul.f32 %v2010_v9, %v5649_v56  ;;  %v1937_v2 = vsel %vm1933_vm3, 1, %v4954_v3  ;;  %vm1929_vm6 = vcmp.ge.s32.totalorder %v1926_v1, %v5289_v34 }
0x1297   :  { %v2012_v7 = vmul.f32 %v2000_v59, %v5655_v54  ;;  %v1938_v4 = vperm.slane %v1937_v2, 0  ;;  %vm1934_vm12 = vmand %vm5292_vm5, %vm1929_vm6 }
0x1298   :  { %v2019_v14 = vmul.f32 %v4573_v62, %v2013_v11 }
0x1299   :  { %v2018_v8 = vmul.f32 %v4573_v62, %v2012_v7  ;;  %vm5764_vm13 = vcmp.eq.s32.totalorder %v1938_v4, 1  ;;  %v1923_v7 = vadd.s32 16, %v5284_v30 }
0x129a   :  { %v2025_v13 = vadd.f32 %v4576_v15, %v2019_v14  ;;  %vm1940_vm14 = vmand %vm1934_vm12, %vm5764_vm13 }
0x129b   :  { %v2024_v17 = vadd.f32 %v4576_v15, %v2018_v8  ;;  %v1927_v15 = vand.u32 7, %v5307_v42  ;;  %v5772_v59 = vsel %vm1940_vm14, 0.0, %v4946_v37  ;;  %v1924_v9 = vshra.s32 %v1923_v7, 3 }
0x129c   :  { %4279 = vmatmul.msk.f32.vlgmr.msrb.gmra.mxu3 %vm252_vm1, %v2023_v61 }
0x129d   :  { %vm1930_vm15 = vcmp.ge.s32.totalorder %v1927_v15, %v5289_v34  ;;  %vm1925_vm3 = vcmp.eq.s32.totalorder %v1924_v9, %v5287_v33 }
0x129e   :  { %vm1935_vm5 = vmand %vm5312_vm9, %vm1930_vm15 }
0x129f   :  { %vm1941_vm2 = vmand %vm1935_vm5, %vm5764_vm13 }
0x12a0   :  { %v5793_v48 = vsel %vm1941_vm2, 0.0, %v4946_v37 }
0x12a4   :  { %4280 = vmatmul.msk.f32.gmra.mxu3 %vm252_vm1, %v2024_v17  ;;  %v1928_v17 = vand.u32 7, %v1923_v7 }
0x12a6   :  { %vm1931_vm6 = vcmp.ge.s32.totalorder %v1928_v17, %v5289_v34 }
0x12a7   :  { %vm1936_vm9 = vmand %vm1925_vm3, %vm1931_vm6 }
0x12a8   :  { %vm1942_vm12 = vmand %vm1936_vm9, %vm5764_vm13 }
0x12ac   :  { %4281 = vmatmul.msk.f32.gmra.mxu3 %vm252_vm1, %v2025_v13 }
0x1317   :  { %v5691_v5 = vpop.f32.mrf.mxu3 }
0x131f   :  { %v2060_v18 = vpop.f32.mrf.mxu3 }
0x1320   :  { %v5694_v54 = vadd.f32 %v4577_v16, %v2060_v18 }
0x1322   :  { %2205 = vrot.lane.b32.xlu2 %v5694_v54, %s4939_s0 }
0x1327   :  { %v2063_v19 = vpop.f32.mrf.mxu3 }
0x1328   :  { %v2064_v20 = vadd.f32 %v4577_v16, %v2063_v19 }
0x132a   :  { %2074 = vrot.lane.b32.xlu2 %v2064_v20, %s4940_s5  ;;  %2207 = vrot.lane.b32.xlu0 %v2064_v20, %s4939_s0 }
0x132f   :  { %v2066_v56 = vpop.f32.mrf.mxu3 }
0x1330   :  { %v2067_v21 = vadd.f32 %v4577_v16, %v2066_v56 }
0x1332   :  { %2209 = vrot.lane.b32.xlu1 %v2067_v21, %s4939_s0  ;;  %2475 = vrot.lane.b32.xlu2 %v2067_v21, %s4941_s9  ;;  %v5721_v22 = vpack.i.bf16 %v2064_v20, %v2067_v21 }
0x1333   :  { %2076 = vrot.lane.b32.xlu0 %v2067_v21, %s4940_s5 }
0x133a   :  { %2199 = vrot.lane.b32.xlu1 %v5694_v54, %s4942_s13  ;;  %2471 = vrot.lane.b32.xlu2 %v5694_v54, %s4941_s9 }
0x133b   :  { %2072 = vrot.lane.b32.xlu0 %v5694_v54, %s4940_s5 }
0x1342   :  { %2201 = vrot.lane.b32.xlu1 %v2064_v20, %s4942_s13  ;;  %2340 = vrot.lane.b32.xlu2 %v2064_v20, %s4943_s17 }
0x1343   :  { %2203 = vrot.lane.b32.xlu0 %v2067_v21, %s4942_s13 }
0x134a   :  { %2473 = vrot.lane.b32.xlu1 %v2064_v20, %s4941_s9  ;;  %2332 = vrot.lane.b32.xlu2 %v5694_v54, %s4944_s21 }
0x134b   :  { %2342 = vrot.lane.b32.xlu0 %v2067_v21, %s4943_s17 }
0x1352   :  { %2465 = vrot.lane.b32.xlu1 %v5694_v54, %s4945_s25  ;;  %2336 = vrot.lane.b32.xlu2 %v2067_v21, %s4944_s21 }
0x1353   :  { %2338 = vrot.lane.b32.xlu0 %v5694_v54, %s4943_s17 }
0x135a   :  { %2467 = vrot.lane.b32.xlu1 %v2064_v20, %s4945_s25  ;;  %4515 = vrot.lane.b32.xlu2 %v5721_v22, %s4947_s30 }
0x135b   :  { %2469 = vrot.lane.b32.xlu0 %v2067_v21, %s4945_s25 }
0x1362   :  { %2334 = vrot.lane.b32.xlu1 %v2064_v20, %s4944_s21 }
0x1363   :  { %2155 = vrot.lane.b32.xlu0 %v5694_v54, %s4949_s20 }
0x136a   :  { %2288 = vrot.lane.b32.xlu1 %v5694_v54, %s4947_s30 }
0x136b   :  { %4520 = vrot.lane.b32.xlu0 %v5721_v22, %s4949_s20 }
0x137c   :  { %v2206_v24 = vpop.permute.xlu2 %2205 }
0x1384   :  { %v2075_v27 = vpop.permute.xlu2 %2074 }
0x138c   :  { %v2476_v25 = vpop.permute.xlu2 %2475 }
0x1394   :  { %v2472_v10 = vpop.permute.xlu2 %2471 }
0x139c   :  { %v2341_v23 = vpop.permute.xlu2 %2340  ;;  %v2208_v12 = vpop.permute.xlu0 %2207 }
0x13a4   :  { %v2210_v28 = vpop.permute.xlu1 %2209  ;;  %v2333_v29 = vpop.permute.xlu2 %2332 }
0x13a5   :  { %v2077_v31 = vpop.permute.xlu0 %2076  ;;  %4291 = vmatpush.xpose.msk.msrb.mxu2 %vm455_vm4, %v2210_v28 }
0x13a6   :  { %4282 = vmatpush.xpose.msk.msra.mxu0 %vm455_vm4, %v2077_v31 }
0x13a9   :  { %4292 = vmatpush.xpose.msk.msrb.mxu2 %vm455_vm4, %v2208_v12 }
0x13aa   :  { %4283 = vmatpush.xpose.msk.msra.mxu0 %vm455_vm4, %v2075_v27  ;;  %v5805_v27 = vsel %vm1942_vm12, 0.0, %v4946_v37 }
0x13ac   :  { %v2200_v32 = vpop.permute.xlu1 %2199  ;;  %v2337_v36 = vpop.permute.xlu2 %2336 }
0x13ad   :  { %v2073_v39 = vpop.permute.xlu0 %2072  ;;  %4293 = vmatpush.xpose.msk.msrb.mxu2 %vm455_vm4, %v2206_v24 }
0x13ae   :  { %4284 = vmatpush.xpose.msk.msra.mxu0 %vm455_vm4, %v2073_v39 }
0x13b0   :  { %4294 = vmatmul.msk.f32.vlgmr.msrb.gmra.mxu2 %vm455_vm4, %v2200_v32 }
0x13b1   :  { %4309 = vmatpush.xpose.msk.msra.mxu2 %vm455_vm4, %v2476_v25  ;;  %4285 = vmatmul.msk.f32.vlgmr.msra.gmra.mxu0 %vm455_vm4, %v5694_v54 }
0x13b4   :  { %v2202_v40 = vpop.permute.xlu1 %2201  ;;  %v4516_v41 = vpop.permute.xlu2 %4515 }
0x13b5   :  { %v4517_v43 = vunpack.i.l.bf16 %v4516_v41  ;;  %v2204_v44 = vpop.permute.xlu0 %2203  ;;  %v4518_v45 = vunpack.i.h.bf16 %v4516_v41 }
0x13b7   :  { %2319 = vmatpush.msra.mxu3 %v4517_v43 }
0x13b8   :  { %4295 = vmatmul.msk.f32.gmra.mxu2 %vm455_vm4, %v2202_v40 }
0x13b9   :  { %4286 = vmatmul.msk.f32.gmra.mxu0 %vm455_vm4, %v2064_v20  ;;  %2320 = vmatpush.msra.mxu3 %v4518_v45 }
0x13bc   :  { %v2474_v46 = vpop.permute.xlu1 %2473 }
0x13bd   :  { %v2343_v47 = vpop.permute.xlu0 %2342  ;;  %4310 = vmatpush.xpose.msk.msra.mxu2 %vm455_vm4, %v2474_v46 }
0x13be   :  { %4300 = vmatpush.xpose.msk.msrb.mxu0 %vm455_vm4, %v2343_v47 }
0x13c0   :  { %4296 = vmatmul.msk.f32.gmra.mxu2 %vm455_vm4, %v2204_v44 }
0x13c1   :  { %4287 = vmatmul.msk.f32.gmra.mxu0 %vm455_vm4, %v2067_v21  ;;  %4311 = vmatpush.xpose.msk.msra.mxu2 %vm455_vm4, %v2472_v10 }
0x13c2   :  { %4301 = vmatpush.xpose.msk.msrb.mxu0 %vm455_vm4, %v2341_v23 }
0x13c4   :  { %v2466_v51 = vpop.permute.xlu1 %2465 }
0x13c5   :  { %v2339_v57 = vpop.permute.xlu0 %2338 }
0x13c6   :  { %4302 = vmatpush.xpose.msk.msrb.mxu0 %vm455_vm4, %v2339_v57 }
0x13c8   :  { %4312 = vmatmul.msk.f32.vlgmr.msra.gmra.mxu2 %vm455_vm4, %v2466_v51 }
0x13c9   :  { %4303 = vmatmul.msk.f32.vlgmr.msrb.gmra.mxu0 %vm455_vm4, %v2333_v29 }
0x13cc   :  { %v2468_v50 = vpop.permute.xlu1 %2467 }
0x13cd   :  { %v2470_v53 = vpop.permute.xlu0 %2469 }
0x13d0   :  { %4313 = vmatmul.msk.f32.gmra.mxu2 %vm455_vm4, %v2468_v50 }
0x13d4   :  { %v2335_v38 = vpop.permute.xlu1 %2334 }
0x13d5   :  { %v2156_v55 = vpop.permute.xlu0 %2155  ;;  %4304 = vmatmul.msk.f32.gmra.mxu0 %vm455_vm4, %v2335_v38 }
0x13d8   :  { %4314 = vmatmul.msk.f32.gmra.mxu2 %vm455_vm4, %v2470_v53 }
0x13dc   :  { %v2289_v26 = vpop.permute.xlu1 %2288 }
0x13dd   :  { %v4521_v63 = vpop.permute.xlu0 %4520  ;;  %2321 = vmatpush.msra.mxu3 %v2289_v26  ;;  %4305 = vmatmul.msk.f32.gmra.mxu0 %vm455_vm4, %v2337_v36 }
0x13de   :  { %v4522_v60 = vunpack.i.l.bf16 %v4521_v63  ;;  %v4523_v62 = vunpack.i.h.bf16 %v4521_v63 }
0x13e0   :  { %2186 = vmatpush.msrb.mxu1 %v4522_v60 }
0x13e2   :  { %2187 = vmatpush.msrb.mxu1 %v4523_v62 }
0x13e4   :  { %2188 = vmatpush.msrb.mxu1 %v2156_v55 }
0x142e   :  { %v2107_v6 = vpop.f32.mrf.mxu0 }
0x142f   :  { %v2116_v61 = vmul.f32 0.35355338, %v2107_v6 }
0x1431   :  { %v5777_v35 = vadd.f32 %v2116_v61, %v5772_v59 }
0x1433   :  { %v2240_v49 = vpop.f32.mrf.mxu2  ;;  %v2122_v8 = vsel %vm877_vm11, %v5777_v35, -inf }
0x1434   :  { %v2249_v42 = vmul.f32 0.35355338, %v2240_v49  ;;  %2123 = vmax.xlane.f32.xlu1 %v2122_v8 }
0x1436   :  { %v2110_v11 = vpop.f32.mrf.mxu0  ;;  %v5784_v14 = vadd.f32 %v2249_v42, %v5772_v59 }
0x1437   :  { %v2117_v13 = vmul.f32 0.35355338, %v2110_v11 }
0x1438   :  { %v2255_v16 = vsel %vm877_vm11, %v5784_v14, -inf }
0x1439   :  { %2256 = vmax.xlane.f32.xlu0 %v2255_v16  ;;  %v5796_v20 = vadd.f32 %v2117_v13, %v5793_v48 }
0x143b   :  { %v2243_v18 = vpop.f32.mrf.mxu2  ;;  %v2125_v34 = vsel %vm877_vm11, %v5796_v20, -inf }
0x143c   :  { %v2250_v19 = vmul.f32 0.35355338, %v2243_v18 }
0x143e   :  { %v2113_v56 = vpop.f32.mrf.mxu0  ;;  %v2253_v21 = vadd.f32 %v2250_v19, %v5793_v48 }
0x143f   :  { %v2118_v24 = vmul.f32 0.35355338, %v2113_v56 }
0x1440   :  { %v2258_v33 = vsel %vm877_vm11, %v2253_v21, -inf }
0x1441   :  { %2259 = vmax.xlane.f32.xlu2 %v2258_v33  ;;  %2126 = vmax.xlane.f32.xlu0 %v2125_v34  ;;  %v5808_v23 = vadd.f32 %v2118_v24, %v5805_v27 }
0x1443   :  { %v2246_v25 = vpop.f32.mrf.mxu2  ;;  %v2128_v31 = vsel %vm877_vm11, %v5808_v23, -inf }
0x1444   :  { %v2251_v10 = vmul.f32 0.35355338, %v2246_v25 }
0x1446   :  { %v2373_v12 = vpop.f32.mrf.mxu0  ;;  %v2254_v28 = vadd.f32 %v2251_v10, %v5805_v27 }
0x1447   :  { %v2382_v29 = vmul.f32 0.35355338, %v2373_v12 }
0x1448   :  { %v2261_v32 = vsel %vm877_vm11, %v2254_v28, -inf }
0x1449   :  { %2129 = vmax.xlane.f32.xlu2 %v2128_v31  ;;  %2262 = vmax.xlane.f32.xlu1 %v2261_v32  ;;  %v5815_v37 = vadd.f32 %v2382_v29, %v5772_v59 }
0x144b   :  { %v2506_v36 = vpop.f32.mrf.mxu2  ;;  %v2388_v43 = vsel %vm877_vm11, %v5815_v37, -inf }
0x144c   :  { %v2515_v39 = vmul.f32 0.35355338, %v2506_v36 }
0x144e   :  { %v5818_v40 = vadd.f32 %v2515_v39, %v5772_v59 }
0x1450   :  { %v2521_v41 = vsel %vm877_vm11, %v5818_v40, -inf }
0x1451   :  { %2522 = vmax.xlane.f32.xlu0 %v2521_v41  ;;  %2389 = vmax.xlane.f32.xlu1 %v2388_v43 }
0x1452   :  { %v2376_v44 = vpop.f32.mrf.mxu0 }
0x1453   :  { %v2383_v45 = vmul.f32 0.35355338, %v2376_v44  ;;  %v2509_v46 = vpop.f32.mrf.mxu2 }
0x1454   :  { %v2516_v47 = vmul.f32 0.35355338, %v2509_v46 }
0x1455   :  { %v5825_v51 = vadd.f32 %v2383_v45, %v5793_v48 }
0x1456   :  { %v5828_v57 = vadd.f32 %v2516_v47, %v5793_v48 }
0x1457   :  { %v2391_v50 = vsel %vm877_vm11, %v5825_v51, -inf }
0x1458   :  { %v2524_v53 = vsel %vm877_vm11, %v5828_v57, -inf }
0x1459   :  { %2525 = vmax.xlane.f32.xlu2 %v2524_v53  ;;  %2392 = vmax.xlane.f32.xlu0 %v2391_v50 }
0x145a   :  { %v2379_v38 = vpop.f32.mrf.mxu0 }
0x145b   :  { %v2384_v55 = vmul.f32 0.35355338, %v2379_v38  ;;  %v2512_v26 = vpop.f32.mrf.mxu2 }
0x145c   :  { %v2517_v63 = vmul.f32 0.35355338, %v2512_v26 }
0x145d   :  { %v5835_v60 = vadd.f32 %v2384_v55, %v5805_v27 }
0x145e   :  { %v5838_v62 = vadd.f32 %v2517_v63, %v5805_v27 }
0x145f   :  { %v2394_v3 = vsel %vm877_vm11, %v5835_v60, -inf }
0x1460   :  { %v2527_v0 = vsel %vm877_vm11, %v5838_v62, -inf }
0x1461   :  { %2395 = vmax.xlane.f32.xlu2 %v2394_v3  ;;  %2528 = vmax.xlane.f32.xlu1 %v2527_v0 }
0x14a7   :  { %v2124_v1 = vpop.xlane.xlu1 %2123 }
0x14a8   :  { %v2131_v2 = vsub.f32 %v5777_v35, %v2124_v1 }
0x14aa   :  { %v2134_v4 = vmul.f32 1.442695, %v2131_v2 }
0x14ac   :  { %4703 = vpow2.f32 %v2134_v4  ;;  %v2257_v58 = vpop.xlane.xlu0 %2256 }
0x14ad   :  { %v2264_v15 = vsub.f32 %v5784_v14, %v2257_v58 }
0x14af   :  { %v2267_v6 = vmul.f32 1.442695, %v2264_v15 }
0x14b1   :  { %4705 = vpow2.f32 %v2267_v6 }
0x14b2   :  { %v5846_v61 = vpop.eup %4703 }
0x14b3   :  { %v2140_v7 = vsel %vm877_vm11, %v5846_v61, 0.0 }
0x14b4   :  { %2141 = vadd.xlane.f32.xlu1 %v2140_v7  ;;  %v2260_v49 = vpop.xlane.xlu2 %2259  ;;  %v2127_v8 = vpop.xlane.xlu0 %2126 }
0x14b5   :  { %v2265_v42 = vsub.f32 %v2253_v21, %v2260_v49  ;;  %v2132_v9 = vsub.f32 %v5796_v20, %v2127_v8 }
0x14b7   :  { %v5851_v17 = vpop.eup %4705  ;;  %v2269_v35 = vmul.f32 1.442695, %v2265_v42  ;;  %v2136_v11 = vmul.f32 1.442695, %v2132_v9 }
0x14b8   :  { %v2273_v14 = vsel %vm877_vm11, %v5851_v17, 0.0 }
0x14b9   :  { %4707 = vpow2.f32 %v2269_v35  ;;  %2274 = vadd.xlane.f32.xlu0 %v2273_v14 }
0x14ba   :  { %4709 = vpow2.f32 %v2136_v11 }
0x14bc   :  { %v2130_v13 = vpop.xlane.xlu2 %2129  ;;  %v2263_v16 = vpop.xlane.xlu1 %2262 }
0x14bd   :  { %v2133_v18 = vsub.f32 %v5808_v23, %v2130_v13  ;;  %v2266_v19 = vsub.f32 %v2254_v28, %v2263_v16 }
0x14bf   :  { %v5856_v56 = vpop.eup %4707  ;;  %v2138_v21 = vmul.f32 1.442695, %v2133_v18  ;;  %v2271_v24 = vmul.f32 1.442695, %v2266_v19 }
0x14c0   :  { %v5858_v20 = vpop.eup %4709  ;;  %v2276_v33 = vsel %vm877_vm11, %v5856_v56, 0.0 }
0x14c1   :  { %4711 = vpow2.f32 %v2138_v21  ;;  %2277 = vadd.xlane.f32.xlu0 %v2276_v33  ;;  %v2143_v34 = vsel %vm877_vm11, %v5858_v20, 0.0 }
0x14c2   :  { %4713 = vpow2.f32 %v2271_v24  ;;  %2144 = vadd.xlane.f32.xlu2 %v2143_v34 }
0x14c4   :  { %v2390_v25 = vpop.xlane.xlu1 %2389  ;;  %v2523_v10 = vpop.xlane.xlu0 %2522 }
0x14c5   :  { %v2397_v23 = vsub.f32 %v5815_v37, %v2390_v25  ;;  %v2530_v12 = vsub.f32 %v5818_v40, %v2523_v10 }
0x14c7   :  { %v5866_v28 = vpop.eup %4711  ;;  %v2400_v29 = vmul.f32 1.442695, %v2397_v23  ;;  %v2533_v31 = vmul.f32 1.442695, %v2530_v12 }
0x14c8   :  { %v5868_v32 = vpop.eup %4713  ;;  %v2146_v36 = vsel %vm877_vm11, %v5866_v28, 0.0 }
0x14c9   :  { %4715 = vpow2.f32 %v2400_v29  ;;  %v2279_v39 = vsel %vm877_vm11, %v5868_v32, 0.0  ;;  %2147 = vadd.xlane.f32.xlu0 %v2146_v36 }
0x14ca   :  { %4717 = vpow2.f32 %v2533_v31  ;;  %2280 = vadd.xlane.f32.xlu1 %v2279_v39 }
0x14cc   :  { %v2526_v44 = vpop.xlane.xlu2 %2525  ;;  %v2393_v53 = vpop.xlane.xlu0 %2392 }
0x14cd   :  { %v2531_v45 = vsub.f32 %v5828_v57, %v2526_v44  ;;  %v2398_v38 = vsub.f32 %v5825_v51, %v2393_v53 }
0x14cf   :  { %v5874_v41 = vpop.eup %4715  ;;  %v2535_v46 = vmul.f32 1.442695, %v2531_v45 }
0x14d0   :  { %v5876_v37 = vpop.eup %4717  ;;  %v2406_v40 = vsel %vm877_vm11, %v5874_v41, 0.0 }
0x14d1   :  { %v2539_v43 = vsel %vm877_vm11, %v5876_v37, 0.0  ;;  %4719 = vpow2.f32 %v2535_v46 }
0x14d2   :  { %2407 = vadd.xlane.f32.xlu1 %v2406_v40  ;;  %2540 = vadd.xlane.f32.xlu2 %v2539_v43 }
0x14d4   :  { %v2529_v47 = vpop.xlane.xlu1 %2528 }
0x14d5   :  { %v2532_v50 = vsub.f32 %v5838_v62, %v2529_v47 }
0x14d7   :  { %v2537_v55 = vmul.f32 1.442695, %v2532_v50  ;;  %v5893_v26 = vpop.eup %4719 }
0x14d8   :  { %v2542_v63 = vsel %vm877_vm11, %v5893_v26, 0.0 }
0x14d9   :  { %4721 = vpow2.f32 %v2537_v55 }
0x14dd   :  { %4530 = vrot.lane.b32.xlu0 %v5721_v22, %s4950_s11 }
0x14df   :  { %v5897_v57 = vpop.eup %4721 }
0x14e0   :  { %v2545_v62 = vsel %vm877_vm11, %v5897_v57, 0.0 }
0x14ea   :  { %4525 = vrot.lane.b32.xlu2 %v5721_v22, %s4948_s6  ;;  %v2402_v22 = vmul.f32 1.442695, %v2398_v38 }
0x14eb   :  { %2554 = vrot.lane.b32.xlu1 %v5694_v54, %s4948_s6 }
0x14ec   :  { %4723 = vpow2.f32 %v2402_v22 }
0x14f2   :  { %v5902_v0 = vpop.eup %4723 }
0x14f3   :  { %2421 = vrot.lane.b32.xlu1 %v5694_v54, %s4950_s11  ;;  %v2396_v54 = vpop.xlane.xlu2 %2395  ;;  %v2409_v1 = vsel %vm877_vm11, %v5902_v0, 0.0 }
0x14f4   :  { %v2399_v3 = vsub.f32 %v5835_v60, %v2396_v54 }
0x14f6   :  { %v2404_v51 = vmul.f32 1.442695, %v2399_v3 }
0x14f8   :  { %4725 = vpow2.f32 %v2404_v51 }
0x14fe   :  { %v5906_v2 = vpop.eup %4725 }
0x14ff   :  { %v2412_v4 = vsel %vm877_vm11, %v5906_v2, 0.0 }
0x1507   :  { %2543 = vadd.xlane.f32.xlu0 %v2542_v63 }
0x150f   :  { %2546 = vadd.xlane.f32.xlu0 %v2545_v62  ;;  %v2646_v62 = vld [vmem:[%s6440_s23 + $0x18] sm:$0xff] }
0x1510   :  { %2668 = vmatpush.msra.mxu0 %v2646_v62  ;;  %v2774_v62 = vld [vmem:[%s6442_s28 + $0x10] sm:$0xff] }
0x1513   :  { %2410 = vadd.xlane.f32.xlu2 %v2409_v1 }
0x151d   :  { %2413 = vadd.xlane.f32.xlu1 %v2412_v4 }
0x1527   :  { %v2142_v58 = vpop.xlane.xlu1 %2141 }
0x1528   :  { %4727 = vrcp.f32 %v2142_v58  ;;  %v2644_v58 = vld [vmem:[%s6440_s23 + $0x8] sm:$0xff] }
0x152c   :  { %v2275_v60 = vpop.xlane.xlu0 %2274 }
0x152d   :  { %4729 = vrcp.f32 %v2275_v60  ;;  %v2643_v60 = vld [vmem:[%s6440_s23] sm:$0xff] }
0x152e   :  { %v4728_v15 = vpop.eup %4727 }
0x152f   :  { %v2152_v6 = vmul.f32 %v4728_v15, %v5846_v61 }
0x1531   :  { %4288 = vmatmul.msk.f32.vlgmr.msrb.gmra.mxu1 %vm877_vm11, %v2152_v6 }
0x1533   :  { %v4730_v7 = vpop.eup %4729 }
0x1534   :  { %v2285_v49 = vmul.f32 %v4730_v7, %v5851_v17  ;;  %v2278_v8 = vpop.xlane.xlu0 %2277 }
0x1535   :  { %v2145_v42 = vpop.xlane.xlu2 %2144  ;;  %4731 = vrcp.f32 %v2278_v8 }
0x1536   :  { %4733 = vrcp.f32 %v2145_v42  ;;  %4297 = vmatmul.msk.f32.vlgmr.msra.gmra.mxu3 %vm877_vm11, %v2285_v49 }
0x153b   :  { %v4732_v9 = vpop.eup %4731 }
0x153c   :  { %v4734_v35 = vpop.eup %4733  ;;  %v2148_v11 = vpop.xlane.xlu0 %2147  ;;  %v2286_v14 = vmul.f32 %v4732_v9, %v5856_v56 }
0x153d   :  { %v2281_v13 = vpop.xlane.xlu1 %2280  ;;  %4735 = vrcp.f32 %v2148_v11  ;;  %v2153_v61 = vmul.f32 %v4734_v35, %v5858_v20 }
0x153e   :  { %4737 = vrcp.f32 %v2281_v13  ;;  %4298 = vmatmul.msk.f32.gmra.mxu3 %vm877_vm11, %v2286_v14 }
0x153f   :  { %4289 = vmatmul.msk.f32.gmra.mxu1 %vm877_vm11, %v2153_v61 }
0x1543   :  { %v4736_v17 = vpop.eup %4735 }
0x1544   :  { %v4738_v16 = vpop.eup %4737  ;;  %v2154_v18 = vmul.f32 %v4736_v17, %v5866_v28 }
0x1545   :  { %v2541_v19 = vpop.xlane.xlu2 %2540  ;;  %v2287_v21 = vmul.f32 %v4738_v16, %v5868_v32  ;;  %v2408_v10 = vpop.xlane.xlu1 %2407 }
0x1546   :  { %4739 = vrcp.f32 %v2541_v19 }
0x1547   :  { %4290 = vmatmul.msk.f32.gmra.mxu1 %vm877_vm11, %v2154_v18  ;;  %4299 = vmatmul.msk.f32.gmra.mxu3 %vm877_vm11, %v2287_v21  ;;  %4741 = vrcp.f32 %v2408_v10 }
0x154c   :  { %v4740_v23 = vpop.eup %4739 }
0x154d   :  { %v4526_v56 = vpop.permute.xlu2 %4525  ;;  %v2551_v12 = vmul.f32 %v4740_v23, %v5876_v37  ;;  %v4742_v29 = vpop.eup %4741 }
0x154e   :  { %v4527_v24 = vunpack.i.l.bf16 %v4526_v56  ;;  %v4528_v20 = vunpack.i.h.bf16 %v4526_v56  ;;  %v2418_v31 = vmul.f32 %v4742_v29, %v5874_v41 }
0x154f   :  { %v4531_v33 = vpop.permute.xlu0 %4530 }
0x1550   :  { %2585 = vmatpush.msrb.mxu3 %v4527_v24  ;;  %v4532_v34 = vunpack.i.l.bf16 %v4531_v33  ;;  %v4533_v25 = vunpack.i.h.bf16 %v4531_v33  ;;  %v4578_v24 = vld [vmem:[%s6441_s22] ss:$0 sm:$0xff] }
0x1552   :  { %2586 = vmatpush.msrb.mxu3 %v4528_v20  ;;  %2452 = vmatpush.msra.mxu1 %v4532_v34  ;;  %v4853_v20 = vld [vmem:[%s6427_s29] sm:$0xff] }
0x1554   :  { %2453 = vmatpush.msra.mxu1 %v4533_v25 }
0x155d   :  { %v2555_v28 = vpop.permute.xlu1 %2554 }
0x155e   :  { %2587 = vmatpush.msrb.mxu3 %v2555_v28 }
0x155f   :  { %4315 = vmatmul.msk.f32.vlgmr.msrb.gmra.mxu3 %vm877_vm11, %v2551_v12  ;;  %v4854_v12 = vld [vmem:[%s6427_s29 + $0x8] sm:$0xff] }
0x1565   :  { %v2422_v32 = vpop.permute.xlu1 %2421 }
0x1566   :  { %2454 = vmatpush.msra.mxu1 %v2422_v32 }
0x1567   :  { %4306 = vmatmul.msk.f32.vlgmr.msra.gmra.mxu1 %vm877_vm11, %v2418_v31 }
0x157a   :  { %v2544_v36 = vpop.xlane.xlu0 %2543 }
0x157b   :  { %4743 = vrcp.f32 %v2544_v36  ;;  %v4855_v36 = vld [vmem:[%s6427_s29 + $0x10] sm:$0xff]  ;;  %s6445_s29 = sld [smem:[#allocation30_spill]] }
0x1581   :  { %v4744_v39 = vpop.eup %4743 }
0x1582   :  { %v2547_v40 = vpop.xlane.xlu0 %2546  ;;  %v2552_v43 = vmul.f32 %v4744_v39, %v5893_v26 }
0x1583   :  { %4745 = vrcp.f32 %v2547_v40 }
0x1584   :  { %4316 = vmatmul.msk.f32.gmra.mxu3 %vm877_vm11, %v2552_v43 }
0x1586   :  { %v2411_v37 = vpop.xlane.xlu2 %2410 }
0x1587   :  { %4747 = vrcp.f32 %v2411_v37 }
0x1589   :  { %v4746_v44 = vpop.eup %4745 }
0x158a   :  { %v2553_v45 = vmul.f32 %v4746_v44, %v5897_v57 }
0x158c   :  { %4317 = vmatmul.msk.f32.gmra.mxu3 %vm877_vm11, %v2553_v45 }
0x158d   :  { %v4748_v41 = vpop.eup %4747 }
0x158e   :  { %v2419_v46 = vmul.f32 %v4748_v41, %v5902_v0  ;;  %v2645_v0 = vld [vmem:[%s6440_s23 + $0x10] sm:$0xff] }
0x158f   :  { %2669 = vmatpush.msra.mxu0 %v2645_v0  ;;  %v2773_v0 = vld [vmem:[%s6442_s28 + $0x8] sm:$0xff] }
0x1590   :  { %v2414_v47 = vpop.xlane.xlu1 %2413  ;;  %4307 = vmatmul.msk.f32.gmra.mxu1 %vm877_vm11, %v2419_v46 }
0x1591   :  { %4749 = vrcp.f32 %v2414_v47  ;;  %2670 = vmatpush.msra.mxu0 %v2644_v58 }
0x1593   :  { %2671 = vmatpush.msra.mxu0 %v2643_v60 }
0x1597   :  { %v4750_v50 = vpop.eup %4749 }
0x1598   :  { %v2420_v53 = vmul.f32 %v4750_v50, %v5906_v2 }
0x159a   :  { %4308 = vmatmul.msk.f32.gmra.mxu1 %vm877_vm11, %v2420_v53 }
0x15ae   :  { %v2190_v26 = vpop.f32.mrf.mxu1 }
0x15b9   :  { %v2323_v38 = vpop.f32.mrf.mxu3 }
0x15ba   :  { %2601 = vrot.lane.b32.xlu2 %v2323_v38, %s4951_s16 }
0x15bc   :  { %v2193_v22 = vpop.f32.mrf.mxu1 }
0x15c1   :  { %v2326_v55 = vpop.f32.mrf.mxu3 }
0x15c2   :  { %2603 = vrot.lane.b32.xlu2 %v2326_v55, %s4951_s16 }
0x15c4   :  { %v2196_v54 = vpop.f32.mrf.mxu1 }
0x15ca   :  { %v2329_v63 = vpop.f32.mrf.mxu3 }
0x15e2   :  { %v2589_v57 = vpop.f32.mrf.mxu3 }
0x15e3   :  { %2625 = vrot.lane.b32.xlu1 %v2589_v57, %s4952_s15 }
0x15e4   :  { %v2456_v3 = vpop.f32.mrf.mxu1 }
0x15e5   :  { %2613 = vrot.lane.b32.xlu0 %v2456_v3, %s4953_s18  ;;  %v2775_v3 = vld [vmem:[%s6442_s28 + $0x18] sm:$0xff] }
0x15e6   :  { %2801 = vmatpush.msrb.mxu1 %v2775_v3  ;;  %v2878_v3 = vld [vmem:[%s6445_s29] sm:$0xff] }
0x15e8   :  { %2802 = vmatpush.msrb.mxu1 %v2774_v62 }
0x15ea   :  { %2803 = vmatpush.msrb.mxu1 %v2773_v0 }
0x1607   :  { %v2592_v51 = vpop.f32.mrf.mxu3 }
0x1608   :  { %2627 = vrot.lane.b32.xlu0 %v2592_v51, %s4952_s15  ;;  %v2772_v51 = vld [vmem:[%s6442_s28] sm:$0xff] }
0x1609   :  { %2804 = vmatpush.msrb.mxu1 %v2772_v51 }
0x160d   :  { %v2459_v1 = vpop.f32.mrf.mxu1 }
0x160e   :  { %2615 = vrot.lane.b32.xlu2 %v2459_v1, %s4953_s18 }
0x160f   :  { %v2595_v2 = vpop.f32.mrf.mxu3 }
0x1610   :  { %2629 = vrot.lane.b32.xlu1 %v2595_v2, %s4952_s15 }
0x1614   :  { %v2602_v15 = vpop.permute.xlu2 %2601 }
0x1615   :  { %v2634_v6 = vsel %vm455_vm4, %v2190_v26, %v2602_v15 }
0x1616   :  { %2605 = vrot.lane.b32.xlu2 %v2329_v63, %s4951_s16 }
0x1617   :  { %v2462_v4 = vpop.f32.mrf.mxu1 }
0x1618   :  { %2617 = vrot.lane.b32.xlu0 %v2462_v4, %s4953_s18 }
0x161c   :  { %v2604_v9 = vpop.permute.xlu2 %2603 }
0x161d   :  { %v2635_v11 = vsel %vm455_vm4, %v2193_v22, %v2604_v9 }
0x1655   :  { %v2626_v49 = vpop.permute.xlu1 %2625 }
0x1657   :  { %v2614_v7 = vpop.permute.xlu0 %2613 }
0x1658   :  { %v2637_v8 = vsel %vm491_vm8, %v2634_v6, %v2614_v7 }
0x1659   :  { %v2640_v42 = vsel %vm877_vm11, %v2637_v8, %v2626_v49  ;;  %v4579_v8 = vld [vmem:[%s6443_s1] ss:$0 sm:$0xff] }
0x165a   :  { %4318 = vmatmul.msk.f32.vlgmr.msra.gmra.mxu0 %vm252_vm1, %v2640_v42 }
0x1668   :  { %v2616_v35 = vpop.permute.xlu2 %2615 }
0x1669   :  { %v2638_v14 = vsel %vm491_vm8, %v2635_v11, %v2616_v35  ;;  %v4580_v35 = vld [vmem:[%s6444_s2] ss:$0 sm:$0xff] }
0x1670   :  { %v2606_v17 = vpop.permute.xlu2 %2605 }
0x1671   :  { %v2636_v16 = vsel %vm455_vm4, %v2196_v54, %v2606_v17 }
0x167a   :  { %v2628_v13 = vpop.permute.xlu0 %2627 }
0x167b   :  { %v2641_v61 = vsel %vm877_vm11, %v2638_v14, %v2628_v13 }
0x167c   :  { %4319 = vmatmul.msk.f32.gmra.mxu0 %vm252_vm1, %v2641_v61 }
0x1682   :  { %v2630_v19 = vpop.permute.xlu1 %2629 }
0x168a   :  { %v2618_v18 = vpop.permute.xlu0 %2617 }
0x168b   :  { %v2639_v21 = vsel %vm491_vm8, %v2636_v16, %v2618_v18 }
0x168c   :  { %v2642_v56 = vsel %vm877_vm11, %v2639_v21, %v2630_v19 }
0x168d   :  { %4320 = vmatmul.msk.f32.gmra.mxu0 %vm252_vm1, %v2642_v56 }
0x16d7   :  { %v2673_v33 = vpop.f32.mrf.mxu0 }
0x16d8   :  { %v2682_v34 = vadd.f32 %v4853_v20, %v2673_v33 }
0x16da   :  { %v5961_v25 = vadd.f32 %v4578_v24, %v2682_v34 }
0x16dc   :  { %v2694_v10 = vsel %vm252_vm1, %v5961_v25, 0.0 }
0x16dd   :  { %2695 = vadd.xlane.f32.xlu2 %v2694_v10 }
0x16f9   :  { %v2676_v23 = vpop.f32.mrf.mxu0 }
0x16fa   :  { %v2683_v28 = vadd.f32 %v4854_v12, %v2676_v23 }
0x16fc   :  { %v5966_v29 = vadd.f32 %v4578_v24, %v2683_v28 }
0x16fe   :  { %v2697_v31 = vsel %vm252_vm1, %v5966_v29, 0.0 }
0x16ff   :  { %2698 = vadd.xlane.f32.xlu0 %v2697_v31 }
0x170a   :  { %v2679_v32 = vpop.f32.mrf.mxu0 }
0x170b   :  { %v2684_v39 = vadd.f32 %v4855_v36, %v2679_v32 }
0x170d   :  { %v5971_v40 = vadd.f32 %v4578_v24, %v2684_v39 }
0x170f   :  { %v2700_v43 = vsel %vm252_vm1, %v5971_v40, 0.0 }
0x1710   :  { %2701 = vadd.xlane.f32.xlu1 %v2700_v43 }
0x1750   :  { %v2696_v37 = vpop.xlane.xlu2 %2695 }
0x1751   :  { %v2703_v44 = vmul.f32 %v2696_v37, %v5199_v52 }
0x1753   :  { %v2706_v45 = vsub.f32 %v5961_v25, %v2703_v44 }
0x1755   :  { %v2709_v41 = vmul.f32 %v2706_v45, %v2706_v45 }
0x1757   :  { %v2712_v46 = vsel %vm252_vm1, %v2709_v41, 0.0 }
0x1758   :  { %2713 = vadd.xlane.f32.xlu2 %v2712_v46 }
0x1772   :  { %v2699_v47 = vpop.xlane.xlu0 %2698 }
0x1773   :  { %v2704_v50 = vmul.f32 %v2699_v47, %v5199_v52  ;;  %v2885_v47 = vld [vmem:[%s6445_s29 + $0x38] sm:$0xff] }
0x1774   :  { %2903 = vmatpush.msrb.mxu2 %v2885_v47 }
0x1775   :  { %v2707_v53 = vsub.f32 %v5966_v29, %v2704_v50  ;;  %v2884_v50 = vld [vmem:[%s6445_s29 + $0x30] sm:$0xff] }
0x1776   :  { %2904 = vmatpush.msrb.mxu2 %v2884_v50 }
0x1777   :  { %v2710_v38 = vmul.f32 %v2707_v53, %v2707_v53 }
0x1779   :  { %v2715_v55 = vsel %vm252_vm1, %v2710_v38, 0.0  ;;  %v2882_v38 = vld [vmem:[%s6445_s29 + $0x20] sm:$0xff] }
0x177a   :  { %2716 = vadd.xlane.f32.xlu0 %v2715_v55  ;;  %v2881_v55 = vld [vmem:[%s6445_s29 + $0x18] sm:$0xff] }
0x1783   :  { %v2702_v26 = vpop.xlane.xlu1 %2701 }
0x1784   :  { %v2705_v22 = vmul.f32 %v2702_v26, %v5199_v52  ;;  %v4581_v26 = vld [vmem:[%s6446_s3] ss:$0 sm:$0xff] }
0x1786   :  { %v5983_v63 = vsub.f32 %v5971_v40, %v2705_v22  ;;  %v2880_v22 = vld [vmem:[%s6445_s29 + $0x10] sm:$0xff] }
0x1788   :  { %v2711_v54 = vmul.f32 %v5983_v63, %v5983_v63 }
0x178a   :  { %v2718_v57 = vsel %vm252_vm1, %v2711_v54, 0.0  ;;  %v2879_v54 = vld [vmem:[%s6445_s29 + $0x8] sm:$0xff] }
0x178b   :  { %2719 = vadd.xlane.f32.xlu1 %v2718_v57 }
0x17cb   :  { %v2714_v1 = vpop.xlane.xlu2 %2713 }
0x17cc   :  { %v2721_v2 = vmul.f32 %v2714_v1, %v5199_v52 }
0x17ce   :  { %v2724_v4 = vadd.f32 1e-05, %v2721_v2 }
0x17d0   :  { %4751 = vrsqrt.f32 %v2724_v4  ;;  %vm2733_vm14 = vweird.f32 %v2724_v4 }
0x17d6   :  { %v4752_v58 = vpop.eup %4751 }
0x17d7   :  { %v2728_v60 = vmul.f32 %v4752_v58, %v2724_v4  ;;  %vm2734_vm13 = vweird.f32 %v4752_v58 }
0x17d8   :  { %vm2735_vm15 = vmor %vm2733_vm14, %vm2734_vm13 }
0x17d9   :  { %v2729_v15 = vmul.f32 %v4752_v58, %v2728_v60 }
0x17db   :  { %v2730_v6 = vmul.f32 0.5, %v2729_v15 }
0x17dd   :  { %v2731_v7 = vsub.f32 1.5, %v2730_v6 }
0x17df   :  { %v2732_v49 = vmul.f32 %v4752_v58, %v2731_v7 }
0x17e1   :  { %v2736_v42 = vsel %vm2735_vm15, %v4752_v58, %v2732_v49 }
0x17e2   :  { %v2757_v9 = vmul.f32 %v2736_v42, %v2706_v45 }
0x17e4   :  { %v2763_v11 = vmul.f32 %v4579_v8, %v2757_v9 }
0x17e6   :  { %v2769_v14 = vadd.f32 %v4580_v35, %v2763_v11 }
0x17e8   :  { %4321 = vmatmul.msk.f32.vlgmr.msrb.gmra.mxu1 %vm252_vm1, %v2769_v14 }
0x17ed   :  { %v2717_v13 = vpop.xlane.xlu0 %2716 }
0x17ee   :  { %v2722_v61 = vmul.f32 %v2717_v13, %v5199_v52 }
0x17f0   :  { %v2725_v17 = vadd.f32 1e-05, %v2722_v61 }
0x17f2   :  { %4753 = vrsqrt.f32 %v2725_v17  ;;  %vm2743_vm2 = vweird.f32 %v2725_v17 }
0x17f8   :  { %v4754_v16 = vpop.eup %4753 }
0x17f9   :  { %v2738_v18 = vmul.f32 %v4754_v16, %v2725_v17  ;;  %vm2744_vm5 = vweird.f32 %v4754_v16 }
0x17fa   :  { %vm2745_vm3 = vmor %vm2743_vm2, %vm2744_vm5 }
0x17fb   :  { %v2739_v19 = vmul.f32 %v4754_v16, %v2738_v18 }
0x17fd   :  { %v2740_v21 = vmul.f32 0.5, %v2739_v19 }
0x17fe   :  { %v2720_v56 = vpop.xlane.xlu1 %2719 }
0x17ff   :  { %v2741_v24 = vsub.f32 1.5, %v2740_v21  ;;  %v2723_v33 = vmul.f32 %v2720_v56, %v5199_v52 }
0x1801   :  { %v2742_v20 = vmul.f32 %v4754_v16, %v2741_v24  ;;  %v2726_v34 = vadd.f32 1e-05, %v2723_v33 }
0x1803   :  { %v2746_v10 = vsel %vm2745_vm3, %v4754_v16, %v2742_v20  ;;  %4755 = vrsqrt.f32 %v2726_v34  ;;  %vm2753_vm9 = vweird.f32 %v2726_v34 }
0x1804   :  { %v2758_v23 = vmul.f32 %v2746_v10, %v2707_v53  ;;  %v2883_v53 = vld [vmem:[%s6445_s29 + $0x28] sm:$0xff] }
0x1805   :  { %2905 = vmatpush.msrb.mxu2 %v2883_v53 }
0x1806   :  { %v2764_v12 = vmul.f32 %v4579_v8, %v2758_v23 }
0x1807   :  { %2906 = vmatpush.msrb.mxu2 %v2882_v38 }
0x1808   :  { %v2770_v28 = vadd.f32 %v4580_v35, %v2764_v12 }
0x1809   :  { %v4756_v31 = vpop.eup %4755  ;;  %2907 = vmatpush.msrb.mxu2 %v2881_v55 }
0x180a   :  { %v2748_v32 = vmul.f32 %v4756_v31, %v2726_v34  ;;  %4322 = vmatmul.msk.f32.gmra.mxu1 %vm252_vm1, %v2770_v28  ;;  %vm2754_vm6 = vweird.f32 %v4756_v31 }
0x180b   :  { %vm2755_vm12 = vmor %vm2753_vm9, %vm2754_vm6  ;;  %2908 = vmatpush.msrb.mxu2 %v2880_v22 }
0x180c   :  { %v2749_v36 = vmul.f32 %v4756_v31, %v2748_v32 }
0x180d   :  { %2909 = vmatpush.msrb.mxu2 %v2879_v54 }
0x180e   :  { %v2750_v39 = vmul.f32 0.5, %v2749_v36 }
0x180f   :  { %2910 = vmatpush.msrb.mxu2 %v2878_v3 }
0x1810   :  { %v2751_v43 = vsub.f32 1.5, %v2750_v39 }
0x1812   :  { %v2752_v37 = vmul.f32 %v4756_v31, %v2751_v43 }
0x1814   :  { %v2756_v44 = vsel %vm2755_vm12, %v4756_v31, %v2752_v37 }
0x1815   :  { %v2759_v45 = vmul.f32 %v2756_v44, %v5983_v63 }
0x1817   :  { %v2765_v41 = vmul.f32 %v4579_v8, %v2759_v45 }
0x1819   :  { %v2771_v46 = vadd.f32 %v4580_v35, %v2765_v41 }
0x181b   :  { %4323 = vmatmul.msk.f32.gmra.mxu1 %vm252_vm1, %v2771_v46 }
0x1865   :  { %v2806_v63 = vpop.f32.mrf.mxu1 }
0x1866   :  { %v2807_v57 = vadd.f32 %v4581_v26, %v2806_v63 }
0x1868   :  { %v4324_v62 = vmul.f32 -1.702, %v2807_v57 }
0x186a   :  { %v2821_v0 = vmul.f32 1.442695, %v4324_v62 }
0x186c   :  { %4757 = vpow2.f32 %v2821_v0 }
0x1872   :  { %v4758_v51 = vpop.eup %4757 }
0x1873   :  { %v2827_v1 = vadd.f32 1.0, %v4758_v51 }
0x1875   :  { %4759 = vrcp.f32 %v2827_v1  ;;  %v2841_v60 = vand.u32 2147483648, %v2827_v1  ;;  %v2839_v6 = vand.u32 2147483647, %v2827_v1  ;;  %vm2835_vm14 = vweird.f32 %v2827_v1 }
0x1877   :  { %v2842_v49 = vor.u32 1.1754944e-38, %v2841_v60  ;;  %vm2840_vm5 = vcmp.eq.f32.partialorder %v2839_v6, 8.507059e+37 }
0x187b   :  { %v4760_v2 = vpop.eup %4759 }
0x187c   :  { %v2831_v4 = vmul.f32 %v4760_v2, %v2827_v1  ;;  %vm2836_vm13 = vweird.f32 %v4760_v2 }
0x187d   :  { %vm2837_vm15 = vmor %vm2835_vm14, %vm2836_vm13 }
0x187e   :  { %v2832_v58 = vsub.f32 1.0, %v2831_v4 }
0x1880   :  { %v2833_v15 = vmul.f32 %v4760_v2, %v2832_v58 }
0x1882   :  { %v2834_v7 = vadd.f32 %v4760_v2, %v2833_v15 }
0x1884   :  { %v2838_v8 = vsel %vm2837_vm15, %v4760_v2, %v2834_v7 }
0x1885   :  { %v2843_v42 = vsel %vm2840_vm5, %v2842_v49, %v2838_v8 }
0x1886   :  { %v2875_v9 = vmul.f32 %v2843_v42, %v2807_v57 }
0x1887   :  { %v2809_v35 = vpop.f32.mrf.mxu1 }
0x1888   :  { %v2810_v11 = vadd.f32 %v4581_v26, %v2809_v35  ;;  %4327 = vmatmul.msk.f32.vlgmr.msrb.gmra.mxu2 %vm208_vm0, %v2875_v9 }
0x188a   :  { %v4325_v14 = vmul.f32 -1.702, %v2810_v11 }
0x188c   :  { %v2823_v13 = vmul.f32 1.442695, %v4325_v14 }
0x188e   :  { %4761 = vpow2.f32 %v2823_v13 }
0x1894   :  { %v4762_v61 = vpop.eup %4761 }
0x1895   :  { %v2828_v17 = vadd.f32 1.0, %v4762_v61  ;;  %v4335_v61 = vld [vmem:[%s6429_s8 + $0x38] sm:$0xff] }
0x1896   :  { %3044 = vmatpush.msra.mxu3 %v4335_v61 }
0x1897   :  { %4763 = vrcp.f32 %v2828_v17  ;;  %v2856_v20 = vand.u32 2147483648, %v2828_v17  ;;  %v2854_v10 = vand.u32 2147483647, %v2828_v17  ;;  %vm2850_vm3 = vweird.f32 %v2828_v17 }
0x1898   :  { %v2812_v16 = vpop.f32.mrf.mxu1 }
0x1899   :  { %v2813_v18 = vadd.f32 %v4581_v26, %v2812_v16  ;;  %v2857_v28 = vor.u32 1.1754944e-38, %v2856_v20  ;;  %vm2855_vm9 = vcmp.eq.f32.partialorder %v2854_v10, 8.507059e+37  ;;  %v4582_v26 = vld [vmem:[%s6447_s14] ss:$0 sm:$0xff]  ;;  %v4333_v16 = vld [vmem:[%s6429_s8 + $0x28] sm:$0xff] }
0x189b   :  { %v4326_v19 = vmul.f32 -1.702, %v2813_v18 }
0x189d   :  { %v4764_v21 = vpop.eup %4763  ;;  %v2825_v56 = vmul.f32 1.442695, %v4326_v19 }
0x189e   :  { %v2846_v24 = vmul.f32 %v4764_v21, %v2828_v17  ;;  %vm2851_vm2 = vweird.f32 %v4764_v21  ;;  %v4334_v17 = vld [vmem:[%s6429_s8 + $0x30] sm:$0xff] }
0x189f   :  { %4765 = vpow2.f32 %v2825_v56  ;;  %vm2852_vm6 = vmor %vm2850_vm3, %vm2851_vm2  ;;  %3045 = vmatpush.msra.mxu3 %v4334_v17 }
0x18a0   :  { %v2847_v33 = vsub.f32 1.0, %v2846_v24 }
0x18a1   :  { %3046 = vmatpush.msra.mxu3 %v4333_v16 }
0x18a2   :  { %v2848_v34 = vmul.f32 %v4764_v21, %v2847_v33 }
0x18a4   :  { %v2849_v23 = vadd.f32 %v4764_v21, %v2848_v34 }
0x18a5   :  { %v4766_v12 = vpop.eup %4765 }
0x18a6   :  { %v2853_v31 = vsel %vm2852_vm6, %v4764_v21, %v2849_v23  ;;  %v2829_v32 = vadd.f32 1.0, %v4766_v12  ;;  %v4583_v12 = vld [vmem:[%s6432_s24 + $0x1] ss:$0 sm:$0xff] }
0x18a7   :  { %v2858_v36 = vsel %vm2855_vm9, %v2857_v28, %v2853_v31 }
0x18a8   :  { %v2876_v39 = vmul.f32 %v2858_v36, %v2810_v11  ;;  %4767 = vrcp.f32 %v2829_v32  ;;  %v2871_v45 = vand.u32 2147483648, %v2829_v32  ;;  %v2869_v46 = vand.u32 2147483647, %v2829_v32 }
0x18a9   :  { %vm2865_vm13 = vweird.f32 %v2829_v32 }
0x18aa   :  { %4328 = vmatmul.msk.f32.gmra.mxu2 %vm208_vm0, %v2876_v39  ;;  %v2872_v50 = vor.u32 1.1754944e-38, %v2871_v45  ;;  %vm2870_vm15 = vcmp.eq.f32.partialorder %v2869_v46, 8.507059e+37 }
0x18ae   :  { %v4768_v43 = vpop.eup %4767 }
0x18af   :  { %v2861_v37 = vmul.f32 %v4768_v43, %v2829_v32  ;;  %vm2866_vm12 = vweird.f32 %v4768_v43  ;;  %v4584_v32 = vld [vmem:[%s6435_s12 + $0x1] ss:$0 sm:$0xff] }
0x18b0   :  { %vm2867_vm14 = vmor %vm2865_vm13, %vm2866_vm12 }
0x18b1   :  { %v2862_v44 = vsub.f32 1.0, %v2861_v37 }
0x18b3   :  { %v2863_v41 = vmul.f32 %v4768_v43, %v2862_v44 }
0x18b5   :  { %v2864_v47 = vadd.f32 %v4768_v43, %v2863_v41 }
0x18b7   :  { %v2868_v53 = vsel %vm2867_vm14, %v4768_v43, %v2864_v47 }
0x18b8   :  { %v2873_v38 = vsel %vm2870_vm15, %v2872_v50, %v2868_v53 }
0x18b9   :  { %v2877_v55 = vmul.f32 %v2873_v38, %v2813_v18  ;;  %v4332_v18 = vld [vmem:[%s6429_s8 + $0x20] sm:$0xff] }
0x18ba   :  { %3047 = vmatpush.msra.mxu3 %v4332_v18 }
0x18bb   :  { %4329 = vmatmul.msk.f32.gmra.mxu2 %vm208_vm0, %v2877_v55 }
0x190b   :  { %v2912_v22 = vpop.f32.mrf.mxu2 }
0x190c   :  { %v2921_v63 = vadd.f32 %v2912_v22, %v5961_v25 }
0x190e   :  { %v6015_v54 = vadd.f32 %v4582_v26, %v2921_v63 }
0x1910   :  { %v2935_v57 = vsel %vm252_vm1, %v6015_v54, 0.0 }
0x1911   :  { %2936 = vadd.xlane.f32.xlu2 %v2935_v57 }
0x192d   :  { %v2915_v3 = vpop.f32.mrf.mxu2 }
0x192e   :  { %v2922_v62 = vadd.f32 %v2915_v3, %v5966_v29 }
0x1930   :  { %v6020_v0 = vadd.f32 %v4582_v26, %v2922_v62 }
0x1932   :  { %v2938_v51 = vsel %vm252_vm1, %v6020_v0, 0.0 }
0x1933   :  { %2939 = vadd.xlane.f32.xlu0 %v2938_v51 }
0x193e   :  { %v2918_v1 = vpop.f32.mrf.mxu2 }
0x193f   :  { %v2923_v2 = vadd.f32 %v2918_v1, %v5971_v40 }
0x1941   :  { %v6025_v4 = vadd.f32 %v4582_v26, %v2923_v2 }
0x1943   :  { %v2941_v25 = vsel %vm252_vm1, %v6025_v4, 0.0 }
0x1944   :  { %2942 = vadd.xlane.f32.xlu1 %v2941_v25 }
0x1984   :  { %v2937_v58 = vpop.xlane.xlu2 %2936 }
0x1985   :  { %v2944_v60 = vmul.f32 %v2937_v58, %v5199_v52 }
0x1987   :  { %v2947_v29 = vsub.f32 %v6015_v54, %v2944_v60 }
0x1989   :  { %v2950_v15 = vmul.f32 %v2947_v29, %v2947_v29 }
0x198b   :  { %v2953_v6 = vsel %vm252_vm1, %v2950_v15, 0.0 }
0x198c   :  { %2954 = vadd.xlane.f32.xlu2 %v2953_v6 }
0x19a6   :  { %v2940_v7 = vpop.xlane.xlu0 %2939 }
0x19a7   :  { %v2945_v40 = vmul.f32 %v2940_v7, %v5199_v52  ;;  %v4585_v7 = vld [vmem:[%s6436_s7 + $0x1] ss:$0 sm:$0xff] }
0x19a9   :  { %v2948_v49 = vsub.f32 %v6020_v0, %v2945_v40 }
0x19ab   :  { %v2951_v8 = vmul.f32 %v2948_v49, %v2948_v49 }
0x19ad   :  { %v2956_v42 = vsel %vm252_vm1, %v2951_v8, 0.0 }
0x19ae   :  { %2957 = vadd.xlane.f32.xlu0 %v2956_v42 }
0x19b7   :  { %v2943_v9 = vpop.xlane.xlu1 %2942 }
0x19b8   :  { %v2946_v35 = vmul.f32 %v2943_v9, %v5199_v52 }
0x19ba   :  { %v6037_v11 = vsub.f32 %v6025_v4, %v2946_v35 }
0x19bc   :  { %v2952_v14 = vmul.f32 %v6037_v11, %v6037_v11 }
0x19be   :  { %v2959_v13 = vsel %vm252_vm1, %v2952_v14, 0.0 }
0x19bf   :  { %2960 = vadd.xlane.f32.xlu1 %v2959_v13 }
0x19ff   :  { %v2955_v19 = vpop.xlane.xlu2 %2954 }
0x1a00   :  { %v2962_v21 = vmul.f32 %v2955_v19, %v5199_v52 }
0x1a02   :  { %v2965_v56 = vadd.f32 1e-05, %v2962_v21 }
0x1a04   :  { %4769 = vrsqrt.f32 %v2965_v56  ;;  %vm2974_vm2 = vweird.f32 %v2965_v56 }
0x1a0a   :  { %v4770_v24 = vpop.eup %4769 }
0x1a0b   :  { %v2969_v33 = vmul.f32 %v4770_v24, %v2965_v56  ;;  %vm2975_vm5 = vweird.f32 %v4770_v24 }
0x1a0c   :  { %vm2976_vm3 = vmor %vm2974_vm2, %vm2975_vm5 }
0x1a0d   :  { %v2970_v20 = vmul.f32 %v4770_v24, %v2969_v33 }
0x1a0f   :  { %v2971_v34 = vmul.f32 0.5, %v2970_v20 }
0x1a11   :  { %v2972_v10 = vsub.f32 1.5, %v2971_v34 }
0x1a13   :  { %v2973_v23 = vmul.f32 %v4770_v24, %v2972_v10 }
0x1a15   :  { %v2977_v28 = vsel %vm2976_vm3, %v4770_v24, %v2973_v23 }
0x1a16   :  { %v2998_v31 = vmul.f32 %v2977_v28, %v2947_v29 }
0x1a18   :  { %v3004_v36 = vmul.f32 %v4583_v12, %v2998_v31 }
0x1a1a   :  { %v3010_v39 = vadd.f32 %v4584_v32, %v3004_v36 }
0x1a1c   :  { %4337 = vmatmul.msk.f32.vlgmr.msra.gmra.mxu3 %vm252_vm1, %v3010_v39 }
0x1a21   :  { %v2958_v43 = vpop.xlane.xlu0 %2957 }
0x1a22   :  { %v2963_v37 = vmul.f32 %v2958_v43, %v5199_v52 }
0x1a24   :  { %v2966_v44 = vadd.f32 1e-05, %v2963_v37 }
0x1a26   :  { %4771 = vrsqrt.f32 %v2966_v44  ;;  %vm2984_vm9 = vweird.f32 %v2966_v44 }
0x1a2c   :  { %v4772_v45 = vpop.eup %4771 }
0x1a2d   :  { %v2979_v41 = vmul.f32 %v4772_v45, %v2966_v44  ;;  %vm2985_vm6 = vweird.f32 %v4772_v45 }
0x1a2e   :  { %vm2986_vm12 = vmor %vm2984_vm9, %vm2985_vm6 }
0x1a2f   :  { %v2980_v46 = vmul.f32 %v4772_v45, %v2979_v41 }
0x1a31   :  { %v2981_v47 = vmul.f32 0.5, %v2980_v46 }
0x1a32   :  { %v2961_v50 = vpop.xlane.xlu1 %2960 }
0x1a33   :  { %v2982_v53 = vsub.f32 1.5, %v2981_v47  ;;  %v2964_v38 = vmul.f32 %v2961_v50, %v5199_v52 }
0x1a35   :  { %v2983_v55 = vmul.f32 %v4772_v45, %v2982_v53  ;;  %v2967_v26 = vadd.f32 1e-05, %v2964_v38 }
0x1a37   :  { %v2987_v22 = vsel %vm2986_vm12, %v4772_v45, %v2983_v55  ;;  %4773 = vrsqrt.f32 %v2967_v26  ;;  %vm2994_vm14 = vweird.f32 %v2967_v26 }
0x1a38   :  { %v2999_v63 = vmul.f32 %v2987_v22, %v2948_v49 }
0x1a3a   :  { %v3005_v57 = vmul.f32 %v4583_v12, %v2999_v63 }
0x1a3c   :  { %v3011_v3 = vadd.f32 %v4584_v32, %v3005_v57 }
0x1a3d   :  { %v4774_v62 = vpop.eup %4773 }
0x1a3e   :  { %v2989_v51 = vmul.f32 %v4774_v62, %v2967_v26  ;;  %4338 = vmatmul.msk.f32.gmra.mxu3 %vm252_vm1, %v3011_v3  ;;  %vm2995_vm13 = vweird.f32 %v4774_v62 }
0x1a3f   :  { %vm2996_vm15 = vmor %vm2994_vm14, %vm2995_vm13 }
0x1a40   :  { %v2990_v1 = vmul.f32 %v4774_v62, %v2989_v51 }
0x1a42   :  { %v2991_v2 = vmul.f32 0.5, %v2990_v1 }
0x1a44   :  { %v2992_v25 = vsub.f32 1.5, %v2991_v2 }
0x1a46   :  { %v2993_v58 = vmul.f32 %v4774_v62, %v2992_v25 }
0x1a48   :  { %v2997_v60 = vsel %vm2996_vm15, %v4774_v62, %v2993_v58 }
0x1a49   :  { %v3000_v29 = vmul.f32 %v2997_v60, %v6037_v11 }
0x1a4b   :  { %v3006_v15 = vmul.f32 %v4583_v12, %v3000_v29 }
0x1a4d   :  { %v3012_v6 = vadd.f32 %v4584_v32, %v3006_v15 }
0x1a4f   :  { %4339 = vmatmul.msk.f32.gmra.mxu3 %vm252_vm1, %v3012_v6 }
0x1a9f   :  { %v3049_v40 = vpop.f32.mrf.mxu3 }
0x1aa0   :  { %v6056_v49 = vadd.f32 %v4585_v7, %v3049_v40 }
0x1aa2   :  { %3194 = vrot.lane.b32.xlu1 %v6056_v49, %s4939_s0 }
0x1ac1   :  { %v3052_v8 = vpop.f32.mrf.mxu3 }
0x1ac2   :  { %v3053_v42 = vadd.f32 %v4585_v7, %v3052_v8 }
0x1ac4   :  { %3196 = vrot.lane.b32.xlu0 %v3053_v42, %s4939_s0  ;;  %3063 = vrot.lane.b32.xlu1 %v3053_v42, %s4940_s5 }
0x1ad2   :  { %v3055_v9 = vpop.f32.mrf.mxu3 }
0x1ad3   :  { %v3056_v35 = vadd.f32 %v4585_v7, %v3055_v9 }
0x1ad5   :  { %3464 = vrot.lane.b32.xlu1 %v3056_v35, %s4941_s9  ;;  %3065 = vrot.lane.b32.xlu0 %v3056_v35, %s4940_s5  ;;  %v6083_v11 = vpack.i.bf16 %v3053_v42, %v3056_v35 }
0x1ad6   :  { %3198 = vrot.lane.b32.xlu2 %v3056_v35, %s4939_s0  ;;  %s3928_s0 = sld [smem:[#allocation4]] }
0x1add   :  { %3460 = vrot.lane.b32.xlu1 %v6056_v49, %s4941_s9  ;;  %3061 = vrot.lane.b32.xlu0 %v6056_v49, %s4940_s5  ;;  %s4409_s5 = sld [smem:[#allocation4 + $0x1]] }
0x1ade   :  { %3188 = vrot.lane.b32.xlu2 %v6056_v49, %s4942_s13 }
0x1ae5   :  { %3329 = vrot.lane.b32.xlu1 %v3053_v42, %s4943_s17  ;;  %3192 = vrot.lane.b32.xlu0 %v3056_v35, %s4942_s13 }
0x1ae6   :  { %3190 = vrot.lane.b32.xlu2 %v3053_v42, %s4942_s13  ;;  %s6448_s13 = sld [smem:[#allocation32_spill]] }
0x1aed   :  { %3321 = vrot.lane.b32.xlu1 %v6056_v49, %s4944_s21  ;;  %3331 = vrot.lane.b32.xlu0 %v3056_v35, %s4943_s17 }
0x1aee   :  { %3462 = vrot.lane.b32.xlu2 %v3053_v42, %s4941_s9  ;;  %s4410_s9 = sld [smem:[#allocation4 + $0x2]] }
0x1af5   :  { %3325 = vrot.lane.b32.xlu1 %v3056_v35, %s4944_s21  ;;  %3327 = vrot.lane.b32.xlu0 %v6056_v49, %s4943_s17  ;;  %s4131_s17 = sshll.u32 %s5160_s26, 4  ;;  %s4132_s17 = int_to_ptr.hbm [resolvable:$true] %s4131_s17 }
0x1af6   :  { %3454 = vrot.lane.b32.xlu2 %v6056_v49, %s4945_s25 }
0x1afd   :  { %4535 = vrot.lane.b32.xlu1 %v6083_v11, %s4947_s30  ;;  %3458 = vrot.lane.b32.xlu0 %v3056_v35, %s4945_s25 }
0x1afe   :  { %3456 = vrot.lane.b32.xlu2 %v3053_v42, %s4945_s25 }
0x1b05   :  { %4545 = vrot.lane.b32.xlu1 %v6083_v11, %s4948_s6  ;;  %4540 = vrot.lane.b32.xlu0 %v6083_v11, %s4949_s20 }
0x1b06   :  { %3323 = vrot.lane.b32.xlu2 %v3053_v42, %s4944_s21  ;;  %s4880_s21 = sshra.s32 %s4132_s17, 4  ;;  %s4881_s21 = int_to_ptr.hbm [resolvable:$true] %s4880_s21 }
0x1b07   :  { %s4882_s25 = scalar_lea.hbm %s4881_s21, 2  ;;  %p4885_p6 = scmp.lt.s32.totalorder %s4881_s21, %s5160_s26 }
0x1b08   :  { %p4883_p5 = scmp.ne.s32.totalorder %s4881_s21, %s4882_s25 }
0x1b0e   :  { %3277 = vrot.lane.b32.xlu2 %v6056_v49, %s4947_s30  ;;  %s4884_s30 = scalar_lea.hbm %s5160_s26, 2 }
0x1b0f   :  { %p4886_p7 = scmp.lt.s32.totalorder %s4884_s30, %s4882_s25 }
0x1b11   :  { %p4887_p8 = por %p4886_p7, %p4885_p6 }
0x1b13   :  { %p4888_p9 = pnand %p4887_p8, %p4883_p5 }
0x1b14   :  { %v3195_v61 = vpop.permute.xlu1 %3194 }
0x1b16   :  { %3144 = vrot.lane.b32.xlu2 %v6056_v49, %s4949_s20 }
0x1b30   :  { %v3199_v14 = vpop.permute.xlu2 %3198 }
0x1b31   :  { %4349 = vmatpush.xpose.msk.msra.mxu2 %vm455_vm4, %v3199_v14 }
0x1b36   :  { %v3197_v13 = vpop.permute.xlu0 %3196  ;;  %v3064_v16 = vpop.permute.xlu1 %3063 }
0x1b37   :  { %4350 = vmatpush.xpose.msk.msra.mxu2 %vm455_vm4, %v3197_v13 }
0x1b38   :  { %v3189_v17 = vpop.permute.xlu2 %3188 }
0x1b3b   :  { %4351 = vmatpush.xpose.msk.msra.mxu2 %vm455_vm4, %v3195_v61 }
0x1b3e   :  { %4352 = vmatmul.msk.f32.vlgmr.msra.gmra.mxu2 %vm455_vm4, %v3189_v17 }
0x1b40   :  { %v3191_v18 = vpop.permute.xlu2 %3190 }
0x1b46   :  { %4353 = vmatmul.msk.f32.gmra.mxu2 %vm455_vm4, %v3191_v18 }
0x1b47   :  { %v3066_v19 = vpop.permute.xlu0 %3065  ;;  %v3465_v21 = vpop.permute.xlu1 %3464 }
0x1b48   :  { %4340 = vmatpush.xpose.msk.msrb.mxu0 %vm455_vm4, %v3066_v19  ;;  %4367 = vmatpush.xpose.msk.msrb.mxu2 %vm455_vm4, %v3465_v21  ;;  %v3463_v56 = vpop.permute.xlu2 %3462 }
0x1b4c   :  { %4341 = vmatpush.xpose.msk.msrb.mxu0 %vm455_vm4, %v3064_v16  ;;  %4368 = vmatpush.xpose.msk.msrb.mxu2 %vm455_vm4, %v3463_v56 }
0x1b4f   :  { %v3062_v24 = vpop.permute.xlu0 %3061  ;;  %v3461_v33 = vpop.permute.xlu1 %3460 }
0x1b50   :  { %4342 = vmatpush.xpose.msk.msrb.mxu0 %vm455_vm4, %v3062_v24  ;;  %4369 = vmatpush.xpose.msk.msrb.mxu2 %vm455_vm4, %v3461_v33  ;;  %v3455_v20 = vpop.permute.xlu2 %3454 }
0x1b53   :  { %4343 = vmatmul.msk.f32.vlgmr.msrb.gmra.mxu0 %vm455_vm4, %v6056_v49 }
0x1b57   :  { %v3193_v34 = vpop.permute.xlu0 %3192  ;;  %v3330_v10 = vpop.permute.xlu1 %3329 }
0x1b58   :  { %4354 = vmatmul.msk.f32.gmra.mxu2 %vm455_vm4, %v3193_v34  ;;  %v3457_v23 = vpop.permute.xlu2 %3456 }
0x1b5b   :  { %4344 = vmatmul.msk.f32.gmra.mxu0 %vm455_vm4, %v3053_v42 }
0x1b5f   :  { %v3332_v12 = vpop.permute.xlu0 %3331  ;;  %v3322_v28 = vpop.permute.xlu1 %3321 }
0x1b60   :  { %4358 = vmatpush.xpose.msk.msra.mxu0 %vm455_vm4, %v3332_v12  ;;  %4370 = vmatmul.msk.f32.vlgmr.msrb.gmra.mxu2 %vm455_vm4, %v3455_v20  ;;  %v3324_v36 = vpop.permute.xlu2 %3323 }
0x1b63   :  { %4345 = vmatmul.msk.f32.gmra.mxu0 %vm455_vm4, %v3056_v35 }
0x1b64   :  { %4359 = vmatpush.xpose.msk.msra.mxu0 %vm455_vm4, %v3330_v10 }
0x1b67   :  { %v3328_v31 = vpop.permute.xlu0 %3327  ;;  %v3326_v32 = vpop.permute.xlu1 %3325 }
0x1b68   :  { %4360 = vmatpush.xpose.msk.msra.mxu0 %vm455_vm4, %v3328_v31  ;;  %4371 = vmatmul.msk.f32.gmra.mxu2 %vm455_vm4, %v3457_v23  ;;  %v3278_v45 = vpop.permute.xlu2 %3277 }
0x1b6b   :  { %4361 = vmatmul.msk.f32.vlgmr.msra.gmra.mxu0 %vm455_vm4, %v3322_v28 }
0x1b6f   :  { %v3459_v39 = vpop.permute.xlu0 %3458  ;;  %v4536_v43 = vpop.permute.xlu1 %4535 }
0x1b70   :  { %v4537_v37 = vunpack.i.l.bf16 %v4536_v43  ;;  %4372 = vmatmul.msk.f32.gmra.mxu2 %vm455_vm4, %v3459_v39  ;;  %v4538_v44 = vunpack.i.h.bf16 %v4536_v43  ;;  %v3145_v55 = vpop.permute.xlu2 %3144 }
0x1b72   :  { %3308 = vmatpush.msrb.mxu3 %v4537_v37 }
0x1b73   :  { %4362 = vmatmul.msk.f32.gmra.mxu0 %vm455_vm4, %v3324_v36 }
0x1b74   :  { %3309 = vmatpush.msrb.mxu3 %v4538_v44 }
0x1b76   :  { %3310 = vmatpush.msrb.mxu3 %v3278_v45 }
0x1b77   :  { %v4541_v41 = vpop.permute.xlu0 %4540  ;;  %v4546_v46 = vpop.permute.xlu1 %4545 }
0x1b78   :  { %v4542_v47 = vunpack.i.l.bf16 %v4541_v41  ;;  %v4547_v50 = vunpack.i.l.bf16 %v4546_v46  ;;  %v4543_v53 = vunpack.i.h.bf16 %v4541_v41  ;;  %v4548_v38 = vunpack.i.h.bf16 %v4546_v46 }
0x1b7a   :  { %3175 = vmatpush.msra.mxu1 %v4542_v47  ;;  %3574 = vmatpush.msra.mxu3 %v4547_v50 }
0x1b7b   :  { %4363 = vmatmul.msk.f32.gmra.mxu0 %vm455_vm4, %v3326_v32 }
0x1b7c   :  { %3176 = vmatpush.msra.mxu1 %v4543_v53  ;;  %3575 = vmatpush.msra.mxu3 %v4548_v38 }
0x1b7e   :  { %3177 = vmatpush.msra.mxu1 %v3145_v55 }
0x1bc1   :  { %v3229_v26 = vpop.f32.mrf.mxu2 }
0x1bc2   :  { %v3238_v22 = vmul.f32 0.35355338, %v3229_v26 }
0x1bc4   :  { %v3241_v63 = vadd.f32 %v3238_v22, %v5772_v59 }
0x1bc6   :  { %v3244_v57 = vsel %vm877_vm11, %v3241_v63, -inf }
0x1bc7   :  { %3245 = vmax.xlane.f32.xlu0 %v3244_v57 }
0x1bc9   :  { %v3232_v3 = vpop.f32.mrf.mxu2 }
0x1bca   :  { %v3239_v62 = vmul.f32 0.35355338, %v3232_v3 }
0x1bcc   :  { %v3242_v51 = vadd.f32 %v3239_v62, %v5793_v48 }
0x1bce   :  { %v3247_v1 = vsel %vm877_vm11, %v3242_v51, -inf }
0x1bcf   :  { %3248 = vmax.xlane.f32.xlu1 %v3247_v1 }
0x1bd0   :  { %v3096_v2 = vpop.f32.mrf.mxu0 }
0x1bd1   :  { %v3105_v25 = vmul.f32 0.35355338, %v3096_v2 }
0x1bd3   :  { %v3108_v58 = vadd.f32 %v3105_v25, %v5772_v59 }
0x1bd5   :  { %v3111_v60 = vsel %vm877_vm11, %v3108_v58, -inf }
0x1bd6   :  { %3112 = vmax.xlane.f32.xlu2 %v3111_v60 }
0x1bd8   :  { %v3099_v29 = vpop.f32.mrf.mxu0 }
0x1bd9   :  { %v3106_v15 = vmul.f32 0.35355338, %v3099_v29 }
0x1bdb   :  { %v6130_v6 = vadd.f32 %v3106_v15, %v5793_v48  ;;  %v3235_v7 = vpop.f32.mrf.mxu2 }
0x1bdc   :  { %v3240_v40 = vmul.f32 0.35355338, %v3235_v7 }
0x1bdd   :  { %v3114_v8 = vsel %vm877_vm11, %v6130_v6, -inf }
0x1bde   :  { %v6135_v42 = vadd.f32 %v3240_v40, %v5805_v27  ;;  %3115 = vmax.xlane.f32.xlu0 %v3114_v8 }
0x1be0   :  { %v3102_v9 = vpop.f32.mrf.mxu0  ;;  %v3250_v35 = vsel %vm877_vm11, %v6135_v42, -inf }
0x1be1   :  { %v3107_v14 = vmul.f32 0.35355338, %v3102_v9  ;;  %3251 = vmax.xlane.f32.xlu2 %v3250_v35 }
0x1be3   :  { %v6140_v13 = vadd.f32 %v3107_v14, %v5805_v27  ;;  %v3495_v61 = vpop.f32.mrf.mxu2 }
0x1be4   :  { %v3504_v17 = vmul.f32 0.35355338, %v3495_v61 }
0x1be5   :  { %v3117_v16 = vsel %vm877_vm11, %v6140_v13, -inf }
0x1be6   :  { %v6145_v18 = vadd.f32 %v3504_v17, %v5772_v59  ;;  %3118 = vmax.xlane.f32.xlu1 %v3117_v16 }
0x1be8   :  { %v3362_v19 = vpop.f32.mrf.mxu0  ;;  %v3510_v21 = vsel %vm877_vm11, %v6145_v18, -inf }
0x1be9   :  { %v3371_v56 = vmul.f32 0.35355338, %v3362_v19  ;;  %3511 = vmax.xlane.f32.xlu0 %v3510_v21 }
0x1beb   :  { %v6150_v24 = vadd.f32 %v3371_v56, %v5772_v59  ;;  %v3498_v33 = vpop.f32.mrf.mxu2 }
0x1bec   :  { %v3505_v20 = vmul.f32 0.35355338, %v3498_v33 }
0x1bed   :  { %v3377_v34 = vsel %vm877_vm11, %v6150_v24, -inf }
0x1bee   :  { %v6155_v10 = vadd.f32 %v3505_v20, %v5793_v48  ;;  %3378 = vmax.xlane.f32.xlu2 %v3377_v34 }
0x1bf0   :  { %v3365_v23 = vpop.f32.mrf.mxu0  ;;  %v3513_v12 = vsel %vm877_vm11, %v6155_v10, -inf }
0x1bf1   :  { %v3372_v28 = vmul.f32 0.35355338, %v3365_v23  ;;  %3514 = vmax.xlane.f32.xlu1 %v3513_v12 }
0x1bf3   :  { %v6160_v31 = vadd.f32 %v3372_v28, %v5793_v48  ;;  %v3501_v59 = vpop.f32.mrf.mxu2 }
0x1bf4   :  { %v3506_v32 = vmul.f32 0.35355338, %v3501_v59 }
0x1bf5   :  { %v3380_v36 = vsel %vm877_vm11, %v6160_v31, -inf }
0x1bf6   :  { %v6165_v39 = vadd.f32 %v3506_v32, %v5805_v27  ;;  %3381 = vmax.xlane.f32.xlu0 %v3380_v36 }
0x1bf8   :  { %v3368_v43 = vpop.f32.mrf.mxu0  ;;  %v3516_v37 = vsel %vm877_vm11, %v6165_v39, -inf }
0x1bf9   :  { %v3373_v44 = vmul.f32 0.35355338, %v3368_v43  ;;  %3517 = vmax.xlane.f32.xlu2 %v3516_v37 }
0x1bfb   :  { %v6170_v45 = vadd.f32 %v3373_v44, %v5805_v27 }
0x1bfd   :  { %v3383_v48 = vsel %vm877_vm11, %v6170_v45, -inf }
0x1bfe   :  { %3384 = vmax.xlane.f32.xlu1 %v3383_v48 }
0x1c3a   :  { %v3246_v41 = vpop.xlane.xlu0 %3245 }
0x1c3b   :  { %v3253_v46 = vsub.f32 %v3241_v63, %v3246_v41 }
0x1c3d   :  { %v3256_v47 = vmul.f32 1.442695, %v3253_v46 }
0x1c3f   :  { %4775 = vpow2.f32 %v3256_v47 }
0x1c42   :  { %v3249_v50 = vpop.xlane.xlu1 %3248 }
0x1c43   :  { %v3254_v53 = vsub.f32 %v3242_v51, %v3249_v50 }
0x1c45   :  { %v6174_v38 = vpop.eup %4775  ;;  %v3258_v55 = vmul.f32 1.442695, %v3254_v53 }
0x1c46   :  { %v3262_v26 = vsel %vm877_vm11, %v6174_v38, 0.0 }
0x1c47   :  { %4777 = vpow2.f32 %v3258_v55  ;;  %3263 = vadd.xlane.f32.xlu0 %v3262_v26 }
0x1c49   :  { %v3113_v27 = vpop.xlane.xlu2 %3112 }
0x1c4a   :  { %v3120_v22 = vsub.f32 %v3108_v58, %v3113_v27 }
0x1c4c   :  { %v3123_v57 = vmul.f32 1.442695, %v3120_v22 }
0x1c4d   :  { %v6178_v3 = vpop.eup %4777 }
0x1c4e   :  { %4779 = vpow2.f32 %v3123_v57  ;;  %v3265_v63 = vsel %vm877_vm11, %v6178_v3, 0.0 }
0x1c4f   :  { %3266 = vadd.xlane.f32.xlu0 %v3265_v63 }
0x1c51   :  { %v3116_v62 = vpop.xlane.xlu0 %3115 }
0x1c52   :  { %v3121_v51 = vsub.f32 %v6130_v6, %v3116_v62 }
0x1c54   :  { %v6183_v1 = vpop.eup %4779  ;;  %v3125_v2 = vmul.f32 1.442695, %v3121_v51  ;;  %v3252_v25 = vpop.xlane.xlu2 %3251 }
0x1c55   :  { %v3255_v60 = vsub.f32 %v6135_v42, %v3252_v25  ;;  %v3129_v58 = vsel %vm877_vm11, %v6183_v1, 0.0 }
0x1c56   :  { %4781 = vpow2.f32 %v3125_v2  ;;  %3130 = vadd.xlane.f32.xlu2 %v3129_v58 }
0x1c57   :  { %v3260_v29 = vmul.f32 1.442695, %v3255_v60 }
0x1c59   :  { %4783 = vpow2.f32 %v3260_v29  ;;  %v3119_v15 = vpop.xlane.xlu1 %3118 }
0x1c5a   :  { %v3122_v7 = vsub.f32 %v6140_v13, %v3119_v15 }
0x1c5c   :  { %v6189_v40 = vpop.eup %4781  ;;  %v3127_v8 = vmul.f32 1.442695, %v3122_v7  ;;  %v3512_v6 = vpop.xlane.xlu0 %3511 }
0x1c5d   :  { %v3519_v9 = vsub.f32 %v6145_v18, %v3512_v6  ;;  %v3132_v35 = vsel %vm877_vm11, %v6189_v40, 0.0 }
0x1c5e   :  { %4785 = vpow2.f32 %v3127_v8  ;;  %3133 = vadd.xlane.f32.xlu1 %v3132_v35 }
0x1c5f   :  { %v6194_v42 = vpop.eup %4783  ;;  %v3522_v14 = vmul.f32 1.442695, %v3519_v9 }
0x1c60   :  { %v3268_v61 = vsel %vm877_vm11, %v6194_v42, 0.0 }
0x1c61   :  { %4787 = vpow2.f32 %v3522_v14  ;;  %3269 = vadd.xlane.f32.xlu0 %v3268_v61  ;;  %v3379_v19 = vpop.xlane.xlu2 %3378 }
0x1c62   :  { %v3386_v21 = vsub.f32 %v6150_v24, %v3379_v19 }
0x1c64   :  { %v6198_v13 = vpop.eup %4785  ;;  %v3515_v56 = vpop.xlane.xlu1 %3514  ;;  %v3389_v33 = vmul.f32 1.442695, %v3386_v21 }
0x1c65   :  { %v3135_v17 = vsel %vm877_vm11, %v6198_v13, 0.0  ;;  %v3520_v34 = vsub.f32 %v6155_v10, %v3515_v56 }
0x1c66   :  { %3136 = vadd.xlane.f32.xlu2 %v3135_v17  ;;  %4789 = vpow2.f32 %v3389_v33 }
0x1c67   :  { %v6202_v16 = vpop.eup %4787  ;;  %v3524_v28 = vmul.f32 1.442695, %v3520_v34 }
0x1c68   :  { %v3528_v18 = vsel %vm877_vm11, %v6202_v16, 0.0 }
0x1c69   :  { %3529 = vadd.xlane.f32.xlu1 %v3528_v18  ;;  %v3382_v20 = vpop.xlane.xlu0 %3381  ;;  %4791 = vpow2.f32 %v3524_v28 }
0x1c6a   :  { %v3387_v23 = vsub.f32 %v6160_v31, %v3382_v20 }
0x1c6c   :  { %v3391_v59 = vmul.f32 1.442695, %v3387_v23  ;;  %v3518_v32 = vpop.xlane.xlu2 %3517  ;;  %v6216_v36 = vpop.eup %4789 }
0x1c6d   :  { %v3395_v43 = vsel %vm877_vm11, %v6216_v36, 0.0 }
0x1c6e   :  { %4793 = vpow2.f32 %v3391_v59 }
0x1c6f   :  { %v6221_v37 = vpop.eup %4791 }
0x1c71   :  { %v3385_v12 = vpop.xlane.xlu1 %3384 }
0x1c74   :  { %v6223_v31 = vpop.eup %4793 }
0x1c75   :  { %3543 = vrot.lane.b32.xlu0 %v6056_v49, %s4948_s6  ;;  %v3398_v44 = vsel %vm877_vm11, %v6223_v31, 0.0 }
0x1c7e   :  { %4550 = vrot.lane.b32.xlu2 %v6083_v11, %s4950_s11  ;;  %v3388_v11 = vsub.f32 %v6170_v45, %v3385_v12  ;;  %v3531_v45 = vsel %vm877_vm11, %v6221_v37, 0.0 }
0x1c80   :  { %v3393_v24 = vmul.f32 1.442695, %v3388_v11 }
0x1c82   :  { %3410 = vrot.lane.b32.xlu1 %v6056_v49, %s4950_s11  ;;  %v3521_v49 = vsub.f32 %v6165_v39, %v3518_v32  ;;  %4795 = vpow2.f32 %v3393_v24 }
0x1c84   :  { %v3526_v10 = vmul.f32 1.442695, %v3521_v49 }
0x1c86   :  { %4797 = vpow2.f32 %v3526_v10 }
0x1c88   :  { %v6229_v39 = vpop.eup %4795 }
0x1c89   :  { %v3401_v41 = vsel %vm877_vm11, %v6229_v39, 0.0 }
0x1c8c   :  { %v6231_v48 = vpop.eup %4797 }
0x1c8d   :  { %v3534_v46 = vsel %vm877_vm11, %v6231_v48, 0.0 }
0x1c9f   :  { %3396 = vadd.xlane.f32.xlu0 %v3395_v43 }
0x1ca7   :  { %3399 = vadd.xlane.f32.xlu0 %v3398_v44  ;;  %3532 = vadd.xlane.f32.xlu2 %v3531_v45  ;;  %v4379_v45 = vld [vmem:[%s6440_s23 + $0x38] sm:$0xff] }
0x1ca8   :  { %3658 = vmatpush.msrb.mxu0 %v4379_v45 }
0x1cac   :  { %3402 = vadd.xlane.f32.xlu1 %v3401_v41  ;;  %v4376_v41 = vld [vmem:[%s6440_s23 + $0x20] sm:$0xff] }
0x1caf   :  { %3535 = vadd.xlane.f32.xlu2 %v3534_v46 }
0x1cba   :  { %v3264_v47 = vpop.xlane.xlu0 %3263 }
0x1cbb   :  { %4799 = vrcp.f32 %v3264_v47 }
0x1cc1   :  { %v4800_v50 = vpop.eup %4799 }
0x1cc2   :  { %v3274_v53 = vmul.f32 %v4800_v50, %v6174_v38  ;;  %v3267_v55 = vpop.xlane.xlu0 %3266 }
0x1cc3   :  { %4801 = vrcp.f32 %v3267_v55 }
0x1cc4   :  { %4355 = vmatmul.msk.f32.vlgmr.msrb.gmra.mxu3 %vm877_vm11, %v3274_v53 }
0x1cc9   :  { %v4802_v26 = vpop.eup %4801  ;;  %v3131_v27 = vpop.xlane.xlu2 %3130 }
0x1cca   :  { %4803 = vrcp.f32 %v3131_v27  ;;  %v3275_v22 = vmul.f32 %v4802_v26, %v6178_v3 }
0x1ccc   :  { %4356 = vmatmul.msk.f32.gmra.mxu3 %vm877_vm11, %v3275_v22 }
0x1cd0   :  { %v4804_v57 = vpop.eup %4803 }
0x1cd1   :  { %v3141_v63 = vmul.f32 %v4804_v57, %v6183_v1  ;;  %v3134_v62 = vpop.xlane.xlu1 %3133 }
0x1cd2   :  { %4805 = vrcp.f32 %v3134_v62 }
0x1cd3   :  { %4346 = vmatmul.msk.f32.vlgmr.msra.gmra.mxu1 %vm877_vm11, %v3141_v63 }
0x1cd4   :  { %v3270_v51 = vpop.xlane.xlu0 %3269 }
0x1cd5   :  { %4807 = vrcp.f32 %v3270_v51 }
0x1cd8   :  { %v4806_v38 = vpop.eup %4805 }
0x1cd9   :  { %v3137_v2 = vpop.xlane.xlu2 %3136  ;;  %v3142_v25 = vmul.f32 %v4806_v38, %v6189_v40 }
0x1cda   :  { %4809 = vrcp.f32 %v3137_v2 }
0x1cdb   :  { %v4808_v60 = vpop.eup %4807  ;;  %4347 = vmatmul.msk.f32.gmra.mxu1 %vm877_vm11, %v3142_v25 }
0x1cdc   :  { %v3530_v3 = vpop.xlane.xlu1 %3529  ;;  %v3276_v58 = vmul.f32 %v4808_v60, %v6194_v42 }
0x1cdd   :  { %4811 = vrcp.f32 %v3530_v3 }
0x1cde   :  { %4357 = vmatmul.msk.f32.gmra.mxu3 %vm877_vm11, %v3276_v58 }
0x1ce0   :  { %v4810_v1 = vpop.eup %4809 }
0x1ce1   :  { %v4551_v29 = vpop.permute.xlu2 %4550  ;;  %v3143_v15 = vmul.f32 %v4810_v1, %v6198_v13  ;;  %v4586_v1 = vld [vmem:[%s6441_s22 + $0x1] ss:$0 sm:$0xff] }
0x1ce2   :  { %v4552_v7 = vunpack.i.l.bf16 %v4551_v29  ;;  %v4553_v6 = vunpack.i.h.bf16 %v4551_v29 }
0x1ce3   :  { %4348 = vmatmul.msk.f32.gmra.mxu1 %vm877_vm11, %v3143_v15  ;;  %v4812_v8 = vpop.eup %4811 }
0x1ce4   :  { %3441 = vmatpush.msrb.mxu1 %v4552_v7  ;;  %v3540_v40 = vmul.f32 %v4812_v8, %v6202_v16 }
0x1ce6   :  { %3442 = vmatpush.msrb.mxu1 %v4553_v6 }
0x1ce7   :  { %v3544_v9 = vpop.permute.xlu0 %3543 }
0x1ce8   :  { %3576 = vmatpush.msra.mxu3 %v3544_v9 }
0x1ce9   :  { %4373 = vmatmul.msk.f32.vlgmr.msra.gmra.mxu3 %vm877_vm11, %v3540_v40 }
0x1cf4   :  { %v3411_v35 = vpop.permute.xlu1 %3410 }
0x1cf5   :  { %3443 = vmatpush.msrb.mxu1 %v3411_v35 }
0x1d12   :  { %v3397_v42 = vpop.xlane.xlu0 %3396 }
0x1d13   :  { %4813 = vrcp.f32 %v3397_v42 }
0x1d19   :  { %v4814_v14 = vpop.eup %4813 }
0x1d1a   :  { %v3407_v61 = vmul.f32 %v4814_v14, %v6216_v36  ;;  %v3400_v13 = vpop.xlane.xlu0 %3399  ;;  %v3533_v17 = vpop.xlane.xlu2 %3532 }
0x1d1b   :  { %4815 = vrcp.f32 %v3400_v13 }
0x1d1c   :  { %4817 = vrcp.f32 %v3533_v17  ;;  %4364 = vmatmul.msk.f32.vlgmr.msrb.gmra.mxu1 %vm877_vm11, %v3407_v61 }
0x1d1f   :  { %v3403_v18 = vpop.xlane.xlu1 %3402 }
0x1d20   :  { %4819 = vrcp.f32 %v3403_v18 }
0x1d21   :  { %v4816_v19 = vpop.eup %4815 }
0x1d22   :  { %v4818_v16 = vpop.eup %4817  ;;  %v3536_v21 = vpop.xlane.xlu2 %3535  ;;  %v3408_v56 = vmul.f32 %v4816_v19, %v6223_v31 }
0x1d23   :  { %4821 = vrcp.f32 %v3536_v21  ;;  %v3541_v33 = vmul.f32 %v4818_v16, %v6221_v37 }
0x1d24   :  { %4365 = vmatmul.msk.f32.gmra.mxu1 %vm877_vm11, %v3408_v56 }
0x1d25   :  { %4374 = vmatmul.msk.f32.gmra.mxu3 %vm877_vm11, %v3541_v33 }
0x1d26   :  { %v4820_v20 = vpop.eup %4819 }
0x1d27   :  { %v3409_v23 = vmul.f32 %v4820_v20, %v6229_v39  ;;  %v4378_v39 = vld [vmem:[%s6440_s23 + $0x30] sm:$0xff] }
0x1d28   :  { %3659 = vmatpush.msrb.mxu0 %v4378_v39 }
0x1d29   :  { %v4822_v34 = vpop.eup %4821 }
0x1d2a   :  { %v3542_v12 = vmul.f32 %v4822_v34, %v6231_v48  ;;  %v4377_v48 = vld [vmem:[%s6440_s23 + $0x28] sm:$0xff] }
0x1d2b   :  { %3660 = vmatpush.msrb.mxu0 %v4377_v48  ;;  %v4587_v48 = vld [vmem:[%s6443_s1 + $0x1] ss:$0 sm:$0xff] }
0x1d2c   :  { %4366 = vmatmul.msk.f32.gmra.mxu1 %vm877_vm11, %v3409_v23 }
0x1d2d   :  { %4375 = vmatmul.msk.f32.gmra.mxu3 %vm877_vm11, %v3542_v12  ;;  %3661 = vmatpush.msrb.mxu0 %v4376_v41 }
0x1d47   :  { %v3312_v28 = vpop.f32.mrf.mxu3 }
0x1d48   :  { %3590 = vrot.lane.b32.xlu0 %v3312_v28, %s4951_s16 }
0x1d4f   :  { %v3315_v59 = vpop.f32.mrf.mxu3 }
0x1d50   :  { %3592 = vrot.lane.b32.xlu0 %v3315_v59, %s4951_s16  ;;  %v3179_v36 = vpop.f32.mrf.mxu1  ;;  %v4389_v59 = vld [vmem:[%s6442_s28 + $0x38] sm:$0xff] }
0x1d51   :  { %3796 = vmatpush.msra.mxu1 %v4389_v59 }
0x1d58   :  { %v3182_v49 = vpop.f32.mrf.mxu1 }
0x1d60   :  { %v3185_v24 = vpop.f32.mrf.mxu1 }
0x1d61   :  { %v3318_v32 = vpop.f32.mrf.mxu3 }
0x1d6c   :  { %v3578_v11 = vpop.f32.mrf.mxu3 }
0x1d6d   :  { %3614 = vrot.lane.b32.xlu1 %v3578_v11, %s4952_s15  ;;  %v4387_v11 = vld [vmem:[%s6442_s28 + $0x28] sm:$0xff] }
0x1d75   :  { %3594 = vrot.lane.b32.xlu1 %v3318_v32, %s4951_s16  ;;  %v4388_v32 = vld [vmem:[%s6442_s28 + $0x30] sm:$0xff] }
0x1d76   :  { %3797 = vmatpush.msra.mxu1 %v4388_v32 }
0x1d78   :  { %3798 = vmatpush.msra.mxu1 %v4387_v11 }
0x1d99   :  { %v3445_v43 = vpop.f32.mrf.mxu1 }
0x1d9a   :  { %3602 = vrot.lane.b32.xlu2 %v3445_v43, %s4953_s18 }
0x1da1   :  { %v3448_v10 = vpop.f32.mrf.mxu1 }
0x1da2   :  { %3604 = vrot.lane.b32.xlu0 %v3448_v10, %s4953_s18 }
0x1da8   :  { %v3581_v37 = vpop.f32.mrf.mxu3 }
0x1da9   :  { %3616 = vrot.lane.b32.xlu2 %v3581_v37, %s4952_s15  ;;  %v3451_v31 = vpop.f32.mrf.mxu1 }
0x1daa   :  { %3606 = vrot.lane.b32.xlu0 %v3451_v31, %s4953_s18 }
0x1db0   :  { %v3584_v44 = vpop.f32.mrf.mxu3 }
0x1db1   :  { %3618 = vrot.lane.b32.xlu2 %v3584_v44, %s4952_s15 }
0x1dba   :  { %v3591_v46 = vpop.permute.xlu0 %3590 }
0x1dbb   :  { %v3623_v47 = vsel %vm455_vm4, %v3179_v36, %v3591_v46  ;;  %v4386_v36 = vld [vmem:[%s6442_s28 + $0x20] sm:$0xff] }
0x1dbc   :  { %3799 = vmatpush.msra.mxu1 %v4386_v36  ;;  %v4588_v46 = vld [vmem:[%s6444_s2 + $0x1] ss:$0 sm:$0xff] }
0x1dc2   :  { %v3593_v27 = vpop.permute.xlu0 %3592 }
0x1dc3   :  { %v3624_v57 = vsel %vm455_vm4, %v3182_v49, %v3593_v27 }
0x1ddf   :  { %v3615_v53 = vpop.permute.xlu1 %3614 }
0x1de7   :  { %v3595_v38 = vpop.permute.xlu1 %3594 }
0x1de8   :  { %v3625_v2 = vsel %vm455_vm4, %v3185_v24, %v3595_v38 }
0x1df4   :  { %v3603_v50 = vpop.permute.xlu2 %3602 }
0x1df5   :  { %v3626_v55 = vsel %vm491_vm8, %v3623_v47, %v3603_v50 }
0x1df6   :  { %v3629_v26 = vsel %vm877_vm11, %v3626_v55, %v3615_v53 }
0x1df7   :  { %4380 = vmatmul.msk.f32.vlgmr.msrb.gmra.mxu0 %vm252_vm1, %v3629_v26 }
0x1e03   :  { %v3617_v22 = vpop.permute.xlu2 %3616 }
0x1e0b   :  { %v3619_v60 = vpop.permute.xlu2 %3618 }
0x1e14   :  { %v3605_v63 = vpop.permute.xlu0 %3604 }
0x1e15   :  { %v3627_v62 = vsel %vm491_vm8, %v3624_v57, %v3605_v63 }
0x1e16   :  { %v3630_v51 = vsel %vm877_vm11, %v3627_v62, %v3617_v22 }
0x1e17   :  { %4381 = vmatmul.msk.f32.gmra.mxu0 %vm252_vm1, %v3630_v51 }
0x1e1c   :  { %v3607_v25 = vpop.permute.xlu0 %3606 }
0x1e1d   :  { %v3628_v3 = vsel %vm491_vm8, %v3625_v2, %v3607_v25 }
0x1e1e   :  { %v3631_v58 = vsel %vm877_vm11, %v3628_v3, %v3619_v60 }
0x1e1f   :  { %4382 = vmatmul.msk.f32.gmra.mxu0 %vm252_vm1, %v3631_v58 }
0x1e74   :  { %v3663_v29 = vpop.f32.mrf.mxu0 }
0x1e75   :  { %v3672_v15 = vadd.f32 %v3663_v29, %v6015_v54 }
0x1e77   :  { %v6288_v7 = vadd.f32 %v4586_v1, %v3672_v15 }
0x1e79   :  { %v3687_v8 = vsel %vm252_vm1, %v6288_v7, 0.0 }
0x1e7a   :  { %3688 = vadd.xlane.f32.xlu1 %v3687_v8 }
0x1e94   :  { %v3666_v6 = vpop.f32.mrf.mxu0 }
0x1e95   :  { %v3673_v40 = vadd.f32 %v3666_v6, %v6020_v0 }
0x1e97   :  { %v6293_v9 = vadd.f32 %v4586_v1, %v3673_v40 }
0x1e99   :  { %v3690_v35 = vsel %vm252_vm1, %v6293_v9, 0.0 }
0x1e9a   :  { %3691 = vadd.xlane.f32.xlu0 %v3690_v35 }
0x1e9c   :  { %v3669_v42 = vpop.f32.mrf.mxu0 }
0x1e9d   :  { %v3674_v14 = vadd.f32 %v3669_v42, %v6025_v4 }
0x1e9f   :  { %v6298_v61 = vadd.f32 %v4586_v1, %v3674_v14 }
0x1ea1   :  { %v3693_v54 = vsel %vm252_vm1, %v6298_v61, 0.0 }
0x1ea2   :  { %3694 = vadd.xlane.f32.xlu2 %v3693_v54 }
0x1eed   :  { %v3689_v13 = vpop.xlane.xlu1 %3688 }
0x1eee   :  { %v3696_v17 = vmul.f32 %v3689_v13, %v5199_v52 }
0x1ef0   :  { %v3699_v0 = vsub.f32 %v6288_v7, %v3696_v17 }
0x1ef2   :  { %v3702_v18 = vmul.f32 %v3699_v0, %v3699_v0 }
0x1ef4   :  { %v3705_v19 = vsel %vm252_vm1, %v3702_v18, 0.0  ;;  %v4403_v18 = vld [vmem:[%s6445_s29 + $0x70] sm:$0xff] }
0x1ef5   :  { %3706 = vadd.xlane.f32.xlu1 %v3705_v19  ;;  %v4402_v19 = vld [vmem:[%s6445_s29 + $0x68] sm:$0xff] }
0x1f0d   :  { %v3692_v16 = vpop.xlane.xlu0 %3691 }
0x1f0e   :  { %v3697_v4 = vmul.f32 %v3692_v16, %v5199_v52  ;;  %v4401_v16 = vld [vmem:[%s6445_s29 + $0x60] sm:$0xff] }
0x1f10   :  { %v3700_v21 = vsub.f32 %v6293_v9, %v3697_v4  ;;  %v4400_v4 = vld [vmem:[%s6445_s29 + $0x58] sm:$0xff] }
0x1f12   :  { %v3703_v56 = vmul.f32 %v3700_v21, %v3700_v21 }
0x1f14   :  { %v3708_v33 = vsel %vm252_vm1, %v3703_v56, 0.0  ;;  %v4399_v56 = vld [vmem:[%s6445_s29 + $0x50] sm:$0xff] }
0x1f15   :  { %3709 = vadd.xlane.f32.xlu0 %v3708_v33  ;;  %v3695_v20 = vpop.xlane.xlu2 %3694 }
0x1f16   :  { %v3698_v34 = vmul.f32 %v3695_v20, %v5199_v52  ;;  %v4398_v20 = vld [vmem:[%s6445_s29 + $0x48] sm:$0xff] }
0x1f18   :  { %v6310_v23 = vsub.f32 %v6298_v61, %v3698_v34 }
0x1f1a   :  { %v3704_v12 = vmul.f32 %v6310_v23, %v6310_v23 }
0x1f1c   :  { %v3711_v28 = vsel %vm252_vm1, %v3704_v12, 0.0 }
0x1f1d   :  { %3712 = vadd.xlane.f32.xlu2 %v3711_v28 }
0x1f68   :  { %v3707_v49 = vpop.xlane.xlu1 %3706 }
0x1f69   :  { %v3714_v24 = vmul.f32 %v3707_v49, %v5199_v52 }
0x1f6b   :  { %v3717_v43 = vadd.f32 1e-05, %v3714_v24 }
0x1f6d   :  { %4823 = vrsqrt.f32 %v3717_v43  ;;  %vm3726_vm8 = vweird.f32 %v3717_v43 }
0x1f73   :  { %v4824_v10 = vpop.eup %4823 }
0x1f74   :  { %v3721_v37 = vmul.f32 %v4824_v10, %v3717_v43  ;;  %vm3727_vm4 = vweird.f32 %v4824_v10 }
0x1f75   :  { %vm3728_vm11 = vmor %vm3726_vm8, %vm3727_vm4 }
0x1f76   :  { %v3722_v31 = vmul.f32 %v4824_v10, %v3721_v37 }
0x1f78   :  { %v3723_v44 = vmul.f32 0.5, %v3722_v31 }
0x1f7a   :  { %v3724_v45 = vsub.f32 1.5, %v3723_v44 }
0x1f7c   :  { %v3725_v39 = vmul.f32 %v4824_v10, %v3724_v45 }
0x1f7e   :  { %v3729_v41 = vsel %vm3728_vm11, %v4824_v10, %v3725_v39 }
0x1f7f   :  { %v3750_v47 = vmul.f32 %v3729_v41, %v3699_v0  ;;  %v4404_v0 = vld [vmem:[%s6445_s29 + $0x78] sm:$0xff] }
0x1f80   :  { %3899 = vmatpush.msra.mxu2 %v4404_v0 }
0x1f81   :  { %v3756_v50 = vmul.f32 %v4587_v48, %v3750_v47 }
0x1f82   :  { %3900 = vmatpush.msra.mxu2 %v4403_v18 }
0x1f83   :  { %v3762_v53 = vadd.f32 %v4588_v46, %v3756_v50 }
0x1f84   :  { %3901 = vmatpush.msra.mxu2 %v4402_v19 }
0x1f85   :  { %4391 = vmatmul.msk.f32.vlgmr.msra.gmra.mxu1 %vm252_vm1, %v3762_v53 }
0x1f86   :  { %3902 = vmatpush.msra.mxu2 %v4401_v16 }
0x1f88   :  { %v3710_v55 = vpop.xlane.xlu0 %3709  ;;  %3903 = vmatpush.msra.mxu2 %v4400_v4  ;;  %v4590_v4 = vld [vmem:[%s6447_s14 + $0x1] ss:$0 sm:$0xff] }
0x1f89   :  { %v3715_v26 = vmul.f32 %v3710_v55, %v5199_v52 }
0x1f8a   :  { %3904 = vmatpush.msra.mxu2 %v4399_v56 }
0x1f8b   :  { %v3718_v27 = vadd.f32 1e-05, %v3715_v26 }
0x1f8c   :  { %3905 = vmatpush.msra.mxu2 %v4398_v20  ;;  %v3942_v20 = vstv %s4409_s5 }
0x1f8d   :  { %4825 = vrsqrt.f32 %v3718_v27  ;;  %vm3736_vm2 = vweird.f32 %v3718_v27 }
0x1f90   :  { %v3713_v22 = vpop.xlane.xlu2 %3712 }
0x1f91   :  { %v3716_v57 = vmul.f32 %v3713_v22, %v5199_v52 }
0x1f93   :  { %v4826_v63 = vpop.eup %4825  ;;  %v3719_v62 = vadd.f32 1e-05, %v3716_v57 }
0x1f94   :  { %v3731_v51 = vmul.f32 %v4826_v63, %v3718_v27  ;;  %vm3737_vm5 = vweird.f32 %v4826_v63 }
0x1f95   :  { %4827 = vrsqrt.f32 %v3719_v62  ;;  %vm3738_vm3 = vmor %vm3736_vm2, %vm3737_vm5  ;;  %vm3746_vm9 = vweird.f32 %v3719_v62 }
0x1f96   :  { %v3732_v38 = vmul.f32 %v4826_v63, %v3731_v51 }
0x1f98   :  { %v3733_v2 = vmul.f32 0.5, %v3732_v38 }
0x1f9a   :  { %v3734_v25 = vsub.f32 1.5, %v3733_v2 }
0x1f9b   :  { %v4828_v60 = vpop.eup %4827 }
0x1f9c   :  { %v3735_v3 = vmul.f32 %v4826_v63, %v3734_v25  ;;  %v3741_v58 = vmul.f32 %v4828_v60, %v3719_v62  ;;  %vm3747_vm6 = vweird.f32 %v4828_v60 }
0x1f9d   :  { %vm3748_vm12 = vmor %vm3746_vm9, %vm3747_vm6 }
0x1f9e   :  { %v3739_v1 = vsel %vm3738_vm3, %v4826_v63, %v3735_v3  ;;  %v3742_v29 = vmul.f32 %v4828_v60, %v3741_v58 }
0x1f9f   :  { %v3751_v15 = vmul.f32 %v3739_v1, %v3700_v21  ;;  %v4589_v21 = vld [vmem:[%s6446_s3 + $0x1] ss:$0 sm:$0xff] }
0x1fa0   :  { %v3743_v8 = vmul.f32 0.5, %v3742_v29 }
0x1fa1   :  { %v3757_v6 = vmul.f32 %v4587_v48, %v3751_v15 }
0x1fa2   :  { %v3744_v40 = vsub.f32 1.5, %v3743_v8 }
0x1fa3   :  { %v3763_v35 = vadd.f32 %v4588_v46, %v3757_v6 }
0x1fa4   :  { %v3745_v42 = vmul.f32 %v4828_v60, %v3744_v40 }
0x1fa5   :  { %4392 = vmatmul.msk.f32.gmra.mxu1 %vm252_vm1, %v3763_v35 }
0x1fa6   :  { %v3749_v14 = vsel %vm3748_vm12, %v4828_v60, %v3745_v42 }
0x1fa7   :  { %v3752_v54 = vmul.f32 %v3749_v14, %v6310_v23  ;;  %v4397_v23 = vld [vmem:[%s6445_s29 + $0x40] sm:$0xff] }
0x1fa8   :  { %3906 = vmatpush.msra.mxu2 %v4397_v23 }
0x1fa9   :  { %v3758_v13 = vmul.f32 %v4587_v48, %v3752_v54 }
0x1fab   :  { %v3764_v17 = vadd.f32 %v4588_v46, %v3758_v13 }
0x1fad   :  { %4393 = vmatmul.msk.f32.gmra.mxu1 %vm252_vm1, %v3764_v17 }
0x2002   :  { %v3801_v33 = vpop.f32.mrf.mxu1 }
0x2003   :  { %v3802_v34 = vadd.f32 %v4589_v21, %v3801_v33 }
0x2005   :  { %v4394_v12 = vmul.f32 -1.702, %v3802_v34 }
0x2007   :  { %v3816_v28 = vmul.f32 1.442695, %v4394_v12 }
0x2009   :  { %4829 = vpow2.f32 %v3816_v28 }
0x200f   :  { %v4830_v59 = vpop.eup %4829 }
0x2010   :  { %v3822_v32 = vadd.f32 1.0, %v4830_v59 }
0x2012   :  { %4831 = vrcp.f32 %v3822_v32  ;;  %v3836_v24 = vand.u32 2147483648, %v3822_v32  ;;  %v3834_v10 = vand.u32 2147483647, %v3822_v32  ;;  %vm3830_vm14 = vweird.f32 %v3822_v32 }
0x2014   :  { %v3837_v31 = vor.u32 1.1754944e-38, %v3836_v24  ;;  %vm3835_vm4 = vcmp.eq.f32.partialorder %v3834_v10, 8.507059e+37 }
0x2018   :  { %v4832_v11 = vpop.eup %4831 }
0x2019   :  { %v3826_v36 = vmul.f32 %v4832_v11, %v3822_v32  ;;  %vm3831_vm13 = vweird.f32 %v4832_v11 }
0x201a   :  { %vm3832_vm15 = vmor %vm3830_vm14, %vm3831_vm13 }
0x201b   :  { %v3827_v49 = vsub.f32 1.0, %v3826_v36  ;;  %v3955_v36 = vstv %s4410_s9 }
0x201c   :  { %vm3956_vm14 = vcmp.eq.s32.totalorder %v5284_v30, %v3955_v36 }
0x201d   :  { %v3828_v43 = vmul.f32 %v4832_v11, %v3827_v49 }
0x201f   :  { %v3829_v37 = vadd.f32 %v4832_v11, %v3828_v43 }
0x2021   :  { %v3833_v44 = vsel %vm3832_vm15, %v4832_v11, %v3829_v37  ;;  %vm3968_vm15 = vcmask 1041408  }
0x2022   :  { %v3838_v45 = vsel %vm3835_vm4, %v3837_v31, %v3833_v44  ;;  %v3804_v39 = vpop.f32.mrf.mxu1  ;;  %vm3972_vm4 = vcmask 256000  }
0x2023   :  { %v3870_v48 = vmul.f32 %v3838_v45, %v3802_v34  ;;  %v3805_v41 = vadd.f32 %v4589_v21, %v3804_v39 }
0x2025   :  { %v4395_v46 = vmul.f32 -1.702, %v3805_v41  ;;  %4405 = vmatmul.msk.f32.vlgmr.msra.gmra.mxu2 %vm208_vm0, %v3870_v48 }
0x2027   :  { %v3818_v47 = vmul.f32 1.442695, %v4395_v46 }
0x2029   :  { %4833 = vpow2.f32 %v3818_v47 }
0x202a   :  { %v3807_v50 = vpop.f32.mrf.mxu1 }
0x202b   :  { %v3808_v53 = vadd.f32 %v4589_v21, %v3807_v50  ;;  %v3929_v21 = vstv %s3928_s0 }
0x202c   :  { %vm3930_vm13 = vcmp.eq.s32.totalorder %v5284_v30, %v3929_v21 }
0x202d   :  { %v4396_v55 = vmul.f32 -1.702, %v3808_v53 }
0x202f   :  { %v4834_v26 = vpop.eup %4833  ;;  %v3820_v27 = vmul.f32 1.442695, %v4396_v55 }
0x2030   :  { %v3823_v22 = vadd.f32 1.0, %v4834_v26 }
0x2031   :  { %4835 = vpow2.f32 %v3820_v27 }
0x2032   :  { %4837 = vrcp.f32 %v3823_v22  ;;  %v3851_v2 = vand.u32 2147483648, %v3823_v22  ;;  %v3849_v60 = vand.u32 2147483647, %v3823_v22  ;;  %vm3845_vm11 = vweird.f32 %v3823_v22 }
0x2034   :  { %v3852_v1 = vor.u32 1.1754944e-38, %v3851_v2  ;;  %vm3850_vm2 = vcmp.eq.f32.partialorder %v3849_v60, 8.507059e+37 }
0x2037   :  { %v4836_v57 = vpop.eup %4835 }
0x2038   :  { %v4838_v63 = vpop.eup %4837  ;;  %v3824_v62 = vadd.f32 1.0, %v4836_v57 }
0x2039   :  { %v3841_v51 = vmul.f32 %v4838_v63, %v3823_v22  ;;  %vm3846_vm8 = vweird.f32 %v4838_v63 }
0x203a   :  { %4839 = vrcp.f32 %v3824_v62  ;;  %vm3847_vm5 = vmor %vm3845_vm11, %vm3846_vm8  ;;  %v3866_v35 = vand.u32 2147483648, %v3824_v62  ;;  %v3864_v14 = vand.u32 2147483647, %v3824_v62  ;;  %vm3860_vm6 = vweird.f32 %v3824_v62 }
0x203b   :  { %v3842_v38 = vsub.f32 1.0, %v3841_v51 }
0x203c   :  { %v3867_v13 = vor.u32 1.1754944e-38, %v3866_v35  ;;  %vm3865_vm12 = vcmp.eq.f32.partialorder %v3864_v14, 8.507059e+37 }
0x203d   :  { %v3843_v25 = vmul.f32 %v4838_v63, %v3842_v38 }
0x203f   :  { %v3844_v3 = vadd.f32 %v4838_v63, %v3843_v25 }
0x2040   :  { %v4840_v58 = vpop.eup %4839 }
0x2041   :  { %v3848_v29 = vsel %vm3847_vm5, %v4838_v63, %v3844_v3  ;;  %v3856_v15 = vmul.f32 %v4840_v58, %v3824_v62  ;;  %vm3861_vm3 = vweird.f32 %v4840_v58  ;;  %v4030_v62 = vmul.f32 %v5691_v5, %v5691_v5 }
0x2042   :  { %v3853_v8 = vsel %vm3850_vm2, %v3852_v1, %v3848_v29  ;;  %vm3862_vm9 = vmor %vm3860_vm6, %vm3861_vm3  ;;  %v4005_v1 = vld [vmem:[%s5149_s4 + $0x10] sm:$0xff]  ;;  %v4004_v29 = vld [vmem:[%s5149_s4 + $0x8] sm:$0xff] }
0x2043   :  { %v3871_v6 = vmul.f32 %v3853_v8, %v3805_v41  ;;  %v3857_v40 = vsub.f32 1.0, %v3856_v15  ;;  %v4031_v51 = vsel %vm1862_vm10, %v4030_v62, 0.0  ;;  %v4003_v15 = vld [vmem:[%s5149_s4] sm:$0xff] }
0x2045   :  { %v3858_v42 = vmul.f32 %v4840_v58, %v3857_v40  ;;  %4406 = vmatmul.msk.f32.gmra.mxu2 %vm208_vm0, %v3871_v6 }
0x2047   :  { %v3859_v54 = vadd.f32 %v4840_v58, %v3858_v42 }
0x2049   :  { %v3863_v17 = vsel %vm3862_vm9, %v4840_v58, %v3859_v54  ;;  %v4006_v58 = vld [vmem:[%s5149_s4 + $0x18] sm:$0xff] }
0x204a   :  { %v3868_v0 = vsel %vm3865_vm12, %v3867_v13, %v3863_v17  ;;  %4022 = vmatpush.msrb.mxu3 %v4006_v58  ;;  %vm4098_vm12 = vcmask 17408  }
0x204b   :  { %v3872_v18 = vmul.f32 %v3868_v0, %v3808_v53  ;;  %v4591_v0 = vld [vmem:[%s6448_s13] ss:$0 sm:$0xff] }
0x204c   :  { %4023 = vmatpush.msrb.mxu3 %v4005_v1 }
0x204d   :  { %4407 = vmatmul.msk.f32.gmra.mxu2 %vm208_vm0, %v3872_v18  ;;  %vm3943_vm0 = vcmp.eq.s32.totalorder %v5284_v30, %v3942_v20 }
0x204e   :  { %4024 = vmatpush.msrb.mxu3 %v4004_v29 }
0x2050   :  { %4025 = vmatpush.msrb.mxu3 %v4003_v15 }
0x20a8   :  { %v3908_v19 = vpop.f32.mrf.mxu2 }
0x20a9   :  { %v3917_v16 = vadd.f32 %v3908_v19, %v6288_v7  ;;  %v4592_v19 = vld [vmem:[%s5144_s27] ss:$0 sm:$0xff]  ;;  %s4955_s27 = smov [#allocation7]  }
0x20aa   :  { %s4129_s4 = sshll.u32 %s4955_s27, 4  ;;  %s4130_s4 = int_to_ptr.vmem [resolvable:$true] %s4129_s4 }
0x20ab   :  { %v3925_v56 = vadd.f32 %v4590_v4, %v3917_v16 }
0x20ad   :  { %v3933_v33 = vsel %vm3930_vm13, %v3925_v56, 0.0 }
0x20ae   :  { %v3934_v23 = vsel %vm252_vm1, %v3933_v33, 0.0 }
0x20af   :  { %v3935_v59 = vrot.slane %v3934_v23, 4 }
0x20b1   :  { %v3936_v49 = vadd.f32 %v3935_v59, %v3934_v23  ;;  %v4088_v23 = vld [vmem:[#allocation3] sm:$0x1] }
0x20b3   :  { %v3937_v44 = vrot.slane %v3936_v49, 2 }
0x20b5   :  { %v3938_v41 = vadd.f32 %v3937_v44, %v3936_v49 }
0x20b7   :  { %v3939_v53 = vrot.slane %v3938_v41, 1 }
0x20b9   :  { %v3940_v22 = vadd.f32 %v3939_v53, %v3938_v41 }
0x20c8   :  { %v3911_v34 = vpop.f32.mrf.mxu2 }
0x20c9   :  { %v3918_v12 = vadd.f32 %v3911_v34, %v6293_v9 }
0x20cb   :  { %v3926_v28 = vadd.f32 %v4590_v4, %v3918_v12  ;;  %v4089_v12 = vmul.f32 1.442695, %v4088_v23 }
0x20cd   :  { %v3946_v32 = vsel %vm3943_vm0, %v3926_v28, 0.0 }
0x20ce   :  { %v3947_v7 = vsel %vm252_vm1, %v3946_v32, 0.0 }
0x20cf   :  { %v3948_v11 = vrot.slane %v3947_v7, 4 }
0x20d0   :  { %v3914_v24 = vpop.f32.mrf.mxu2 }
0x20d1   :  { %v3949_v43 = vadd.f32 %v3948_v11, %v3947_v7  ;;  %v3919_v10 = vadd.f32 %v3914_v24, %v6298_v61 }
0x20d3   :  { %v3950_v37 = vrot.slane %v3949_v43, 2  ;;  %v3927_v31 = vadd.f32 %v4590_v4, %v3919_v10 }
0x20d5   :  { %v3959_v9 = vsel %vm3956_vm14, %v3927_v31, 0.0  ;;  %v3951_v45 = vadd.f32 %v3950_v37, %v3949_v43 }
0x20d6   :  { %v3960_v39 = vsel %vm252_vm1, %v3959_v9, 0.0 }
0x20d7   :  { %v3961_v48 = vrot.slane %v3960_v39, 4  ;;  %v3952_v47 = vrot.slane %v3951_v45, 1 }
0x20d9   :  { %v3962_v46 = vadd.f32 %v3961_v48, %v3960_v39  ;;  %v3953_v26 = vadd.f32 %v3952_v47, %v3951_v45 }
0x20db   :  { %v3963_v50 = vrot.slane %v3962_v46, 2  ;;  %v3967_v61 = vsel %vm1858_vm7, %v3940_v22, %v3953_v26 }
0x20dd   :  { %v3964_v55 = vadd.f32 %v3963_v50, %v3962_v46 }
0x20df   :  { %v3965_v27 = vrot.slane %v3964_v55, 1 }
0x20e1   :  { %v3966_v30 = vadd.f32 %v3965_v27, %v3964_v55 }
0x20e3   :  { %v3969_v57 = vsel %vm3968_vm15, %v3967_v61, %v3966_v30 }
0x20e4   :  { %v3973_v63 = vsel %vm3972_vm4, %v3969_v57, 0.0 }
0x20e5   :  { %3974 = vadd.xlane.f32.xlu1 %v3973_v63 }
0x20ed   :  { %4032 = vadd.xlane.f32.xlu1 %v4031_v51 }
0x2158   :  { %v3975_v38 = vpop.xlane.xlu1 %3974 }
0x2159   :  { %v3976_v2 = vmul.f32 %v3975_v38, %v5199_v52 }
0x215b   :  { %v3977_v25 = vsub.f32 %v3969_v57, %v3976_v2 }
0x215d   :  { %v3978_v60 = vmul.f32 %v3977_v25, %v3977_v25 }
0x215f   :  { %v3979_v3 = vsel %vm3972_vm4, %v3978_v60, 0.0 }
0x2160   :  { %3980 = vadd.xlane.f32.xlu0 %v3979_v3  ;;  %v4033_v20 = vpop.xlane.xlu1 %4032 }
0x2161   :  { %v4034_v34 = vadd.f32 1e-12, %v4033_v20 }
0x2163   :  { %vm4041_vm3 = vweird.f32 %v4034_v34 }
0x21d3   :  { %v3981_v8 = vpop.xlane.xlu0 %3980 }
0x21d4   :  { %v3982_v6 = vmul.f32 %v3981_v8, %v5199_v52 }
0x21d6   :  { %v3983_v40 = vadd.f32 1e-05, %v3982_v6 }
0x21d8   :  { %4841 = vrsqrt.f32 %v3983_v40  ;;  %vm3990_vm10 = vweird.f32 %v3983_v40 }
0x21d9   :  { %4843 = vrsqrt.f32 %v4034_v34 }
0x21da   :  { %4845 = vpow2.f32 %v4089_v12 }
0x21de   :  { %v4842_v35 = vpop.eup %4841 }
0x21df   :  { %v3985_v42 = vmul.f32 %v4842_v35, %v3983_v40  ;;  %vm3991_vm7 = vweird.f32 %v4842_v35  ;;  %v4844_v28 = vpop.eup %4843 }
0x21e0   :  { %vm3992_vm8 = vmor %vm3990_vm10, %vm3991_vm7  ;;  %v4036_v32 = vmul.f32 %v4844_v28, %v4034_v34  ;;  %v4846_v11 = vpop.eup %4845  ;;  %vm4042_vm5 = vweird.f32 %v4844_v28 }
0x21e1   :  { %v3986_v14 = vmul.f32 %v4842_v35, %v3985_v42  ;;  %v4092_v36 = vperm.slane %v4846_v11, 0  ;;  %vm4043_vm9 = vmor %vm4041_vm3, %vm4042_vm5 }
0x21e2   :  { %v4037_v49 = vmul.f32 %v4844_v28, %v4036_v32 }
0x21e3   :  { %v3987_v54 = vmul.f32 0.5, %v3986_v14  ;;  %4094 = vperm.xlu0 %4554, %v4092_v36  }
0x21e4   :  { %v4038_v43 = vmul.f32 0.5, %v4037_v49 }
0x21e5   :  { %v3988_v13 = vsub.f32 1.5, %v3987_v54 }
0x21e6   :  { %v4039_v31 = vsub.f32 1.5, %v4038_v43 }
0x21e7   :  { %v3989_v17 = vmul.f32 %v4842_v35, %v3988_v13 }
0x21e8   :  { %v4040_v45 = vmul.f32 %v4844_v28, %v4039_v31 }
0x21e9   :  { %v3993_v18 = vsel %vm3992_vm8, %v4842_v35, %v3989_v17 }
0x21ea   :  { %v3994_v16 = vmul.f32 %v3993_v18, %v3977_v25  ;;  %v4044_v41 = vsel %vm4043_vm9, %v4844_v28, %v4040_v45 }
0x21eb   :  { %v4045_v47 = vmul.f32 %v4044_v41, %v5691_v5 }
0x21ec   :  { %v3998_v4 = vmul.f32 %v4591_v0, %v3994_v16 }
0x21ee   :  { %v4002_v21 = vadd.f32 %v4592_v19, %v3998_v4 }
0x21f0   :  { %4411 = vmatmul.msk.f32.vlgmr.msrb.gmra.mxu3 %vm252_vm1, %v4002_v21 }
0x2255   :  { %v4095_v50 = vpop.permute.xlu0 %4094 }
0x2273   :  { %v4027_v52 = vpop.f32.mrf.mxu3 }
0x2274   :  { %v4046_v56 = vmul.f32 %v4027_v52, %v4027_v52 }
0x2276   :  { %v4047_v33 = vsel %vm3972_vm4, %v4046_v56, 0.0 }
0x2277   :  { %4048 = vadd.xlane.f32.xlu2 %v4047_v33 }
0x22ea   :  { %v4049_v59 = vpop.xlane.xlu2 %4048 }
0x22eb   :  { %v4050_v7 = vadd.f32 1e-12, %v4049_v59 }
0x22ed   :  { %4847 = vrsqrt.f32 %v4050_v7  ;;  %vm4057_vm2 = vweird.f32 %v4050_v7 }
0x22f3   :  { %v4848_v24 = vpop.eup %4847 }
0x22f4   :  { %v4052_v10 = vmul.f32 %v4848_v24, %v4050_v7  ;;  %vm4058_vm11 = vweird.f32 %v4848_v24 }
0x22f5   :  { %vm4059_vm6 = vmor %vm4057_vm2, %vm4058_vm11 }
0x22f6   :  { %v4053_v37 = vmul.f32 %v4848_v24, %v4052_v10 }
0x22f8   :  { %v4054_v44 = vmul.f32 0.5, %v4053_v37 }
0x22fa   :  { %v4055_v9 = vsub.f32 1.5, %v4054_v44 }
0x22fc   :  { %v4056_v39 = vmul.f32 %v4848_v24, %v4055_v9 }
0x22fe   :  { %v4060_v48 = vsel %vm4059_vm6, %v4848_v24, %v4056_v39 }
0x22ff   :  { %v4061_v46 = vmul.f32 %v4060_v48, %v4027_v52 }
0x2301   :  { %4412 = vmatpush.xpose.msk.msra.mxu0 %vm252_vm1, %v4061_v46 }
0x2304   :  { %4413 = vmatmul.msk.f32.vlgmr.msra.gmra.mxu0 %vm252_vm1, %v4045_v47 }
0x2381   :  { %v4085_v53 = vpop.f32.mrf.mxu0 }
0x2382   :  { %v4097_v55 = vmul.f32 %v4095_v50, %v4085_v53 }
0x2384   :  { %v4099_v26 = vsel %vm4098_vm12, %v4097_v55, -inf }
0x2385   :  { %4100 = vmax.xlane.f32.xlu2 %v4099_v26 }
0x23f8   :  { %v4101_v27 = vpop.xlane.xlu2 %4100 }
0x23f9   :  { %v4102_v22 = vsub.f32 %v4097_v55, %v4101_v27 }
0x23fb   :  { %v4103_v30 = vmul.f32 1.442695, %v4102_v22 }
0x23fd   :  { %4849 = vpow2.f32 %v4103_v30 }
0x2403   :  { %v4850_v61 = vpop.eup %4849 }
0x2404   :  { %v4105_v57 = vsel %vm4098_vm12, %v4850_v61, 0.0 }
0x2405   :  { %4106 = vadd.xlane.f32.xlu1 %v4105_v57 }
0x2478   :  { %v4107_v63 = vpop.xlane.xlu1 %4106 }
0x2479   :  { %4851 = vrcp.f32 %v4107_v63  ;;  %v4119_v38 = vand.u32 2147483648, %v4107_v63  ;;  %v4117_v25 = vand.u32 2147483647, %v4107_v63  ;;  %vm4113_vm13 = vweird.f32 %v4107_v63 }
0x247b   :  { %v4120_v3 = vor.u32 1.1754944e-38, %v4119_v38  ;;  %vm4118_vm14 = vcmp.eq.f32.partialorder %v4117_v25, 8.507059e+37 }
0x247f   :  { %v4852_v5 = vpop.eup %4851 }
0x2480   :  { %v4109_v62 = vmul.f32 %v4852_v5, %v4107_v63  ;;  %vm4114_vm1 = vweird.f32 %v4852_v5 }
0x2481   :  { %vm4115_vm0 = vmor %vm4113_vm13, %vm4114_vm1 }
0x2482   :  { %v4110_v51 = vsub.f32 1.0, %v4109_v62 }
0x2484   :  { %v4111_v2 = vmul.f32 %v4852_v5, %v4110_v51 }
0x2486   :  { %v4112_v60 = vadd.f32 %v4852_v5, %v4111_v2 }
0x2488   :  { %v4116_v58 = vsel %vm4115_vm0, %v4852_v5, %v4112_v60 }
0x2489   :  { %v4121_v1 = vsel %vm4118_vm14, %v4120_v3, %v4116_v58 }
0x248a   :  { %v4122_v29 = vmul.f32 %v4850_v61, %v4121_v1 }
0x248c   :  { %4123 = vst.msk [vmem:[#allocation7] sm:$0x3] %vm4098_vm12, %v4122_v29 }
0x248d   :  { %4891 = shalt.err (!%p4888_p9)
}
0x248e   :  { %4134 = dma.vmem_to_hbm [thread:$0]  %s4130_s4, 32, %s4132_s17, [#allocation5]  }
0x248f   :  { %4894 = dma.done.wait [#allocation5], 32  }
0x2490   :  { %4895 = vsyncadd [#allocation5], 4294967264 }
0x2491   :  { %4139 = vsyncpa [#allocation5], 1 }
0x2492   :  { %4140 = vsyncpa [#allocation6], 1 }

</bundles_post_ra>
